<compile_context>
chip_gen: v6e
topology: v6e:2x2x1
jax: 0.10.0
libtpu: 0.0.40
codegen_flags: <defaults>
</compile_context>

<pallas_src>
import functools

import jax
import jax.numpy as jnp
from jax import lax
from jax.experimental import pallas as pl
from jax.experimental.pallas import tpu as pltpu


def _min_value(dtype):
    """Identity element for max in this dtype."""
    if jnp.issubdtype(dtype, jnp.floating):
        return jnp.array(-jnp.inf, dtype)
    return jnp.array(jnp.iinfo(dtype).min, dtype)


def _maxpool3d_kernel(x_ref, o_ref, xp_ref, t_ref, u_ref, *,
                      K, stride, padding, dilation, Do, Ho, Wf):
    # x_ref : (TN, D,  H,  W )   TN (batch*channel) volumes
    # o_ref : (TN, Do, Ho, Wf)   D/H decimated, W pooled at full resolution
    # xp_ref: (TN, Dp, Hp, Wq)   D/H padded both sides, W high side only
    # t_ref : (TN, Do, Hp, Wq)   after D-pass
    # u_ref : (TN, Do, Ho, Wq2)  after H-pass, with -inf W low-pad column(s)
    TN, D, H, W = x_ref.shape
    _, Dp, Hp, Wq = xp_ref.shape
    dtype = xp_ref.dtype
    minv = _min_value(dtype)
    P = padding

    # ---- 1) -inf border shells (only the ones that are actually read). ----
    # Static (trace-time) conditions: which pads are reachable by the taps.
    d_hi_needed = (K - 1) * dilation + (Do - 1) * stride >= P + D
    h_hi_needed = (K - 1) * dilation + (Ho - 1) * stride >= P + H
    w_hi_needed = (K - 1) * dilation + (Wf - 1) >= P + W
    if P > 0:
        # low pads (always read by the k=0 tap of output 0)
        xp_ref[:, pl.ds(0, P), :, :] = jnp.full((TN, P, Hp, Wq), minv, dtype)
        xp_ref[:, :, pl.ds(0, P), :] = jnp.full((TN, Dp, P, Wq), minv, dtype)
        u_ref[:, :, :, pl.ds(0, P)] = jnp.full((TN, Do, Ho, P), minv, dtype)
        if d_hi_needed:
            xp_ref[:, pl.ds(P + D, P), :, :] = jnp.full((TN, P, Hp, Wq), minv, dtype)
        if h_hi_needed:
            xp_ref[:, :, pl.ds(P + H, P), :] = jnp.full((TN, Dp, P, Wq), minv, dtype)
        if w_hi_needed:
            xp_ref[:, :, :, pl.ds(W, P)] = jnp.full((TN, Dp, Hp, P), minv, dtype)

    # ---- 2) Lane-aligned interior copy (W starts at lane 0). -------------
    xp_ref[:, pl.ds(P, D), pl.ds(P, H), pl.ds(0, W)] = x_ref[...]

    # ---- 3) D-pass: taps + stride decimation via leading-dim strided reads
    #         (free address arithmetic). ----------------------------------
    t_ref[...] = functools.reduce(
        jnp.maximum,
        [xp_ref[:, pl.ds(kd * dilation, Do, stride), :, :] for kd in range(K)],
    )

    # ---- 4) H-pass: taps + stride decimation via sublane-strided reads.
    #         Stored at lane offset P so u_ref's persistent -inf low columns
    #         provide the W low pad (keeps step 2 lane-aligned). ------------
    u_ref[:, :, :, pl.ds(P, Wq)] = functools.reduce(
        jnp.maximum,
        [t_ref[:, :, pl.ds(kh * dilation, Ho, stride), :] for kh in range(K)],
    )

    # ---- 5) W-pass: contiguous shifted lane taps at full W resolution. ----
    o_ref[...] = functools.reduce(
        jnp.maximum,
        [u_ref[:, :, :, pl.ds(kw * dilation, Wf)] for kw in range(K)],
    )


def _ceil_to(a, m):
    return -(-a // m) * m


def _choose_tn(N, D, H, W, Do, Ho, Wf, padding, itemsize,
               budget_bytes=10 * 1024 * 1024):
    """Largest divisor of N whose blocked buffers fit a conservative VMEM budget."""
    Dp, Hp = D + 2 * padding, H + 2 * padding
    Wq, Wq2 = W + padding, W + 2 * padding

    def buf(lead, sub, lane):
        return lead * _ceil_to(sub, 8) * _ceil_to(max(lane, 1), 128) * itemsize

    per_vol = (2 * buf(D, H, W)          # input block (double-buffered)
               + 2 * buf(Do, Ho, Wf)     # output block (double-buffered)
               + buf(Dp, Hp, Wq)         # xp scratch
               + buf(Do, Hp, Wq)         # t scratch
               + buf(Do, Ho, Wq2))       # u scratch
    tn = 1
    for d in range(1, N + 1):
        if N % d == 0 and d * per_vol <= budget_bytes:
            tn = d
    return tn


@functools.partial(jax.jit,
                   static_argnames=("kernel_size", "stride", "padding", "dilation"))
def maxpool3d(x, *, kernel_size=3, stride=2, padding=1, dilation=3):
    """x: (B, C, D, H, W) -> (B, C, Do, Ho, Wo); matches torch.nn.MaxPool3d
    (ceil_mode=False, return_indices=False)."""
    B, C, D, H, W = x.shape

    def out_dim(n):
        return (n + 2 * padding - dilation * (kernel_size - 1) - 1) // stride + 1

    Do, Ho, Wo = out_dim(D), out_dim(H), out_dim(W)
    Wf = (Wo - 1) * stride + 1                       # full-res width kept along W
    Dp, Hp = D + 2 * padding, H + 2 * padding
    Wq, Wq2 = W + padding, W + 2 * padding
    N = B * C

    xr = x.reshape(N, D, H, W)                       # free reshape

    itemsize = jnp.dtype(x.dtype).itemsize
    TN = _choose_tn(N, D, H, W, Do, Ho, Wf, padding, itemsize)

    kernel = functools.partial(
        _maxpool3d_kernel,
        K=kernel_size, stride=stride, padding=padding, dilation=dilation,
        Do=Do, Ho=Ho, Wf=Wf)

    cost = pl.CostEstimate(
        flops=2 * N * (kernel_size - 1)
              * (Do * Hp * Wq + Do * Ho * Wq + Do * Ho * Wf),
        transcendentals=0,
        bytes_accessed=N * (D * H * W + Do * Ho * Wf) * itemsize,
    )

    out_full = pl.pallas_call(
        kernel,
        out_shape=jax.ShapeDtypeStruct((N, Do, Ho, Wf), x.dtype),
        grid=(N // TN,),
        in_specs=[pl.BlockSpec((TN, D, H, W), lambda n: (n, 0, 0, 0))],
        out_specs=pl.BlockSpec((TN, Do, Ho, Wf), lambda n: (n, 0, 0, 0)),
        scratch_shapes=[
            pltpu.VMEM((TN, Dp, Hp, Wq), x.dtype),    # padded input volumes
            pltpu.VMEM((TN, Do, Hp, Wq), x.dtype),    # after D-pass
            pltpu.VMEM((TN, Do, Ho, Wq2), x.dtype),   # after H-pass (+W low pad)
        ],
        compiler_params=pltpu.CompilerParams(
            dimension_semantics=("parallel",),
            vmem_limit_bytes=32 * 1024 * 1024),
        cost_estimate=cost,
    )(xr)

    # Final stride decimation along W on the (small) kernel output, then back
    # to NCDHW output shape.
    # TODO(synk): move this decimation into the kernel once a lane-strided
    # load / lane-compaction path is reliably supported.
    out = lax.slice(out_full, (0, 0, 0, 0), out_full.shape, (1, 1, 1, stride))
    return out.reshape(B, C, Do, Ho, Wo)


def _reference_maxpool3d(x, *, kernel_size=3, stride=2, padding=1, dilation=3):
    # Pure-JAX reference matching torch.nn.MaxPool3d (ceil_mode=False).
    return lax.reduce_window(
        x,
        -jnp.inf,
        lax.max,
        window_dimensions=(1, 1, kernel_size, kernel_size, kernel_size),
        window_strides=(1, 1, stride, stride, stride),
        padding=((0, 0), (0, 0), (padding, padding), (padding, padding),
                 (padding, padding)),
        window_dilation=(1, 1, dilation, dilation, dilation),
    )


if __name__ == "__main__":
    key = jax.random.PRNGKey(0)
    B, C, D, H, W = 2, 4, 16, 16, 16
    x = jax.random.normal(key, (B, C, D, H, W), dtype=jnp.float32)

    y = maxpool3d(x, kernel_size=3, stride=2, padding=1, dilation=3)
    y = jax.block_until_ready(y)

    y_ref = _reference_maxpool3d(x, kernel_size=3, stride=2, padding=1, dilation=3)
    assert y.shape == y_ref.shape, (y.shape, y_ref.shape)
    assert jnp.allclose(y, y_ref), "Pallas maxpool3d mismatch vs reference"

    print("KERNEL_OK")
</pallas_src>

<mosaic_0001>
module attributes {stable_mosaic.version = 11 : i64} {
  func.func @_maxpool3d_kernel(%arg0: i32, %arg1: memref<8x16x16x16xf32, #tpu.memory_space<vmem>>, %arg2: memref<8x6x6x11xf32, #tpu.memory_space<vmem>>, %arg3: memref<8x18x18x17xf32, #tpu.memory_space<vmem>>, %arg4: memref<8x6x18x17xf32, #tpu.memory_space<vmem>>, %arg5: memref<8x6x6x18xf32, #tpu.memory_space<vmem>>) attributes {dimension_semantics = [#tpu.dimension_semantics<parallel>], iteration_bounds = array<i64: 1>, scalar_prefetch = 0 : i64, scratch_operands = 3 : i64, tpu.core_type = #tpu.core_type<tc>, window_params = [{transform_indices = @transform_0, window_bounds = array<i64: 8, 16, 16, 16>}, {transform_indices = @transform_1, window_bounds = array<i64: 8, 6, 6, 11>}]} {
    %cst = arith.constant 0xFF800000 : f32
    %0 = vector.broadcast %cst : f32 to vector<8x1x18x17xf32>
    %c0 = arith.constant 0 : index
    %c0_0 = arith.constant 0 : index
    %c0_1 = arith.constant 0 : index
    %c0_2 = arith.constant 0 : index
    %1 = vector.load %arg3[%c0, %c0_0, %c0_1, %c0_2] : memref<8x18x18x17xf32, #tpu.memory_space<vmem>>, vector<8x1x18x17xf32>
    tpu.vector_store %arg3[%c0, %c0_0, %c0_1, %c0_2], %0 {strides = array<i32>} : memref<8x18x18x17xf32, #tpu.memory_space<vmem>>, vector<8x1x18x17xf32>,
    %cst_3 = arith.constant 0xFF800000 : f32
    %2 = vector.broadcast %cst_3 : f32 to vector<8x18x1x17xf32>
    %c0_4 = arith.constant 0 : index
    %c0_5 = arith.constant 0 : index
    %c0_6 = arith.constant 0 : index
    %c0_7 = arith.constant 0 : index
    %3 = vector.load %arg3[%c0_4, %c0_5, %c0_6, %c0_7] : memref<8x18x18x17xf32, #tpu.memory_space<vmem>>, vector<8x18x1x17xf32>
    tpu.vector_store %arg3[%c0_4, %c0_5, %c0_6, %c0_7], %2 {strides = array<i32>} : memref<8x18x18x17xf32, #tpu.memory_space<vmem>>, vector<8x18x1x17xf32>,
    %cst_8 = arith.constant 0xFF800000 : f32
    %4 = vector.broadcast %cst_8 : f32 to vector<8x6x6x1xf32>
    %c0_9 = arith.constant 0 : index
    %c0_10 = arith.constant 0 : index
    %c0_11 = arith.constant 0 : index
    %c0_12 = arith.constant 0 : index
    %5 = vector.load %arg5[%c0_9, %c0_10, %c0_11, %c0_12] : memref<8x6x6x18xf32, #tpu.memory_space<vmem>>, vector<8x6x6x1xf32>
    tpu.vector_store %arg5[%c0_9, %c0_10, %c0_11, %c0_12], %4 {strides = array<i32>} : memref<8x6x6x18xf32, #tpu.memory_space<vmem>>, vector<8x6x6x1xf32>,
    %c0_13 = arith.constant 0 : index
    %c0_14 = arith.constant 0 : index
    %c0_15 = arith.constant 0 : index
    %c0_16 = arith.constant 0 : index
    %6 = vector.load %arg1[%c0_13, %c0_14, %c0_15, %c0_16] : memref<8x16x16x16xf32, #tpu.memory_space<vmem>>, vector<8x16x16x16xf32>
    %c0_17 = arith.constant 0 : index
    %c1 = arith.constant 1 : index
    %c1_18 = arith.constant 1 : index
    %c0_19 = arith.constant 0 : index
    %7 = vector.load %arg3[%c0_17, %c1, %c1_18, %c0_19] : memref<8x18x18x17xf32, #tpu.memory_space<vmem>>, vector<8x16x16x16xf32>
    tpu.vector_store %arg3[%c0_17, %c1, %c1_18, %c0_19], %6 {strides = array<i32>} : memref<8x18x18x17xf32, #tpu.memory_space<vmem>>, vector<8x16x16x16xf32>,
    %c0_20 = arith.constant 0 : index
    %c0_21 = arith.constant 0 : index
    %c0_22 = arith.constant 0 : index
    %c0_23 = arith.constant 0 : index
    %8 = tpu.strided_load %arg3[%c0_20, %c0_21, %c0_22, %c0_23] {strides = array<i32: 1, 2, 1, 1>} : memref<8x18x18x17xf32, #tpu.memory_space<vmem>>, vector<8x6x18x17xf32>
    %c0_24 = arith.constant 0 : index
    %c3 = arith.constant 3 : index
    %c0_25 = arith.constant 0 : index
    %c0_26 = arith.constant 0 : index
    %9 = tpu.strided_load %arg3[%c0_24, %c3, %c0_25, %c0_26] {strides = array<i32: 1, 2, 1, 1>} : memref<8x18x18x17xf32, #tpu.memory_space<vmem>>, vector<8x6x18x17xf32>
    %c0_27 = arith.constant 0 : index
    %c6 = arith.constant 6 : index
    %c0_28 = arith.constant 0 : index
    %c0_29 = arith.constant 0 : index
    %10 = tpu.strided_load %arg3[%c0_27, %c6, %c0_28, %c0_29] {strides = array<i32: 1, 2, 1, 1>} : memref<8x18x18x17xf32, #tpu.memory_space<vmem>>, vector<8x6x18x17xf32>
    %11 = arith.maximumf %8, %9 : vector<8x6x18x17xf32>
    %12 = arith.maximumf %11, %10 : vector<8x6x18x17xf32>
    %c0_30 = arith.constant 0 : index
    %c0_31 = arith.constant 0 : index
    %c0_32 = arith.constant 0 : index
    %c0_33 = arith.constant 0 : index
    %13 = vector.load %arg4[%c0_30, %c0_31, %c0_32, %c0_33] : memref<8x6x18x17xf32, #tpu.memory_space<vmem>>, vector<8x6x18x17xf32>
    tpu.vector_store %arg4[%c0_30, %c0_31, %c0_32, %c0_33], %12 {strides = array<i32>} : memref<8x6x18x17xf32, #tpu.memory_space<vmem>>, vector<8x6x18x17xf32>,
    %c0_34 = arith.constant 0 : index
    %c0_35 = arith.constant 0 : index
    %c0_36 = arith.constant 0 : index
    %c0_37 = arith.constant 0 : index
    %14 = tpu.strided_load %arg4[%c0_34, %c0_35, %c0_36, %c0_37] {strides = array<i32: 1, 1, 2, 1>} : memref<8x6x18x17xf32, #tpu.memory_space<vmem>>, vector<8x6x6x17xf32>
    %c0_38 = arith.constant 0 : index
    %c0_39 = arith.constant 0 : index
    %c3_40 = arith.constant 3 : index
    %c0_41 = arith.constant 0 : index
    %15 = tpu.strided_load %arg4[%c0_38, %c0_39, %c3_40, %c0_41] {strides = array<i32: 1, 1, 2, 1>} : memref<8x6x18x17xf32, #tpu.memory_space<vmem>>, vector<8x6x6x17xf32>
    %c0_42 = arith.constant 0 : index
    %c0_43 = arith.constant 0 : index
    %c6_44 = arith.constant 6 : index
    %c0_45 = arith.constant 0 : index
    %16 = tpu.strided_load %arg4[%c0_42, %c0_43, %c6_44, %c0_45] {strides = array<i32: 1, 1, 2, 1>} : memref<8x6x18x17xf32, #tpu.memory_space<vmem>>, vector<8x6x6x17xf32>
    %17 = arith.maximumf %14, %15 : vector<8x6x6x17xf32>
    %18 = arith.maximumf %17, %16 : vector<8x6x6x17xf32>
    %c0_46 = arith.constant 0 : index
    %c0_47 = arith.constant 0 : index
    %c0_48 = arith.constant 0 : index
    %c1_49 = arith.constant 1 : index
    %19 = vector.load %arg5[%c0_46, %c0_47, %c0_48, %c1_49] : memref<8x6x6x18xf32, #tpu.memory_space<vmem>>, vector<8x6x6x17xf32>
    tpu.vector_store %arg5[%c0_46, %c0_47, %c0_48, %c1_49], %18 {strides = array<i32>} : memref<8x6x6x18xf32, #tpu.memory_space<vmem>>, vector<8x6x6x17xf32>,
    %c0_50 = arith.constant 0 : index
    %c0_51 = arith.constant 0 : index
    %c0_52 = arith.constant 0 : index
    %c0_53 = arith.constant 0 : index
    %20 = vector.load %arg5[%c0_50, %c0_51, %c0_52, %c0_53] : memref<8x6x6x18xf32, #tpu.memory_space<vmem>>, vector<8x6x6x11xf32>
    %c0_54 = arith.constant 0 : index
    %c0_55 = arith.constant 0 : index
    %c0_56 = arith.constant 0 : index
    %c3_57 = arith.constant 3 : index
    %21 = vector.load %arg5[%c0_54, %c0_55, %c0_56, %c3_57] : memref<8x6x6x18xf32, #tpu.memory_space<vmem>>, vector<8x6x6x11xf32>
    %c0_58 = arith.constant 0 : index
    %c0_59 = arith.constant 0 : index
    %c0_60 = arith.constant 0 : index
    %c6_61 = arith.constant 6 : index
    %22 = vector.load %arg5[%c0_58, %c0_59, %c0_60, %c6_61] : memref<8x6x6x18xf32, #tpu.memory_space<vmem>>, vector<8x6x6x11xf32>
    %23 = arith.maximumf %20, %21 : vector<8x6x6x11xf32>
    %24 = arith.maximumf %23, %22 : vector<8x6x6x11xf32>
    %c0_62 = arith.constant 0 : index
    %c0_63 = arith.constant 0 : index
    %c0_64 = arith.constant 0 : index
    %c0_65 = arith.constant 0 : index
    %25 = vector.load %arg2[%c0_62, %c0_63, %c0_64, %c0_65] : memref<8x6x6x11xf32, #tpu.memory_space<vmem>>, vector<8x6x6x11xf32>
    tpu.vector_store %arg2[%c0_62, %c0_63, %c0_64, %c0_65], %24 {strides = array<i32>} : memref<8x6x6x11xf32, #tpu.memory_space<vmem>>, vector<8x6x6x11xf32>,
    return
  }
  func.func @transform_0(%arg0: i32) -> (i32, i32, i32, i32) {
    %c0_i32 = arith.constant 0 : i32
    %c0_i32_0 = arith.constant 0 : i32
    %c0_i32_1 = arith.constant 0 : i32
    %c0_i32_2 = arith.constant 0 : i32
    return %arg0, %c0_i32, %c0_i32_0, %c0_i32_1 : i32, i32, i32, i32
  }
  func.func @transform_1(%arg0: i32) -> (i32, i32, i32, i32) {
    %c0_i32 = arith.constant 0 : i32
    %c0_i32_0 = arith.constant 0 : i32
    %c0_i32_1 = arith.constant 0 : i32
    %c0_i32_2 = arith.constant 0 : i32
    return %arg0, %c0_i32, %c0_i32_0, %c0_i32_1 : i32, i32, i32, i32
  }
}

</mosaic_0001>

<bundles_post_ra>
// kernel: maxpool3d.1
= control target key start
LH: loop header
LB: loop body
LE: loop exit
PB: predicated region body
PF: predicated region fallthrough
CT: control target
= control target key end

     0   :  { %6 = vsyncpa [#allocation6], 0  ;;  %s2809_s6 = smov [#allocation5]   ;;  %s4556_s0 = inlined_call_operand.hbm [shape: f32[8,16,16,16], index: 0, kind: input, shape index: {}]   ;;  %s4557_s1 = inlined_call_operand.vmem [shape: f32[8,6,6,11], index: 1, kind: output, shape index: {}]  }
   0x1   :  { %s12_s7 = sshll.u32 %s2809_s6, 4  ;;  %s13_s7 = int_to_ptr.vmem [resolvable:$true] %s12_s7 }
   0x2   :  { %s2795_s8 = scalar_lea.vmem %s13_s7, 32768  ;;  %p2800_p1 = scmp.lt.s32.totalorder %s13_s7, %s13_s7 }
   0x3   :  { %p2796_p0 = scmp.ne.s32.totalorder %s13_s7, %s2795_s8  ;;  %p2801_p2 = scmp.lt.s32.totalorder %s2795_s8, %s2795_s8 }
   0x5   :  { %p2802_p3 = por %p2801_p2, %p2800_p1 }
   0x7   :  { %p2803_p4 = pnand %p2802_p3, %p2796_p0 }
   0x9   :  { %2806 = shalt.err (!%p2803_p4)
}
   0xa   :  { %s2810_s9 = smov 128   ;;  %s2811_s10 = smov 8  }
   0xb   :  { %18 = dma.hbm_to_vmem [thread:$0]  %s4556_s0, 32768, %s13_s7, [#allocation6], %s2810_s9, %s2810_s9, %s2811_s10  }
   0xc   :  { %2807 = dma.done.wait [#allocation6], 32768  }
   0xd   :  { %2808 = vsyncadd [#allocation6], 4294934528  ;;  %vm48_vm0 = vcmask 131072   ;;  %vm22_vm1 = vcmask 138240   ;;  %v2812_v0 = vmov -inf   ;;  %vm25_vm2 = vcmask 132096  }
   0xe   :  { %51 = vst.msk [vmem:[#allocation2 + $0x30] sm:$0x1] %vm48_vm0, %v2812_v0  ;;  %52 = vst.msk [vmem:[#allocation2 + $0x48] sm:$0x1] %vm48_vm0, %v2812_v0  ;;  %vm499_vm3 = vcmask 130048   ;;  %v246_v1 = vld [vmem:[#allocation5 + $0x20] sm:$0xff] }
   0xf   :  { %53 = vst.msk [vmem:[#allocation2 + $0x60] sm:$0x1] %vm48_vm0, %v2812_v0  ;;  %54 = vst.msk [vmem:[#allocation2 + $0x78] sm:$0x1] %vm48_vm0, %v2812_v0  ;;  %v247_v2 = vld [vmem:[#allocation5 + $0x28] sm:$0xff]  ;;  %v252_v3 = vld [vmem:[#allocation5 + $0x50] sm:$0xff] }
  0x10   :  { %55 = vst.msk [vmem:[#allocation2 + $0x90] sm:$0x1] %vm48_vm0, %v2812_v0  ;;  %56 = vst.msk [vmem:[#allocation2 + $0xa8] sm:$0x1] %vm48_vm0, %v2812_v0  ;;  %v253_v4 = vld [vmem:[#allocation5 + $0x58] sm:$0xff]  ;;  %v248_v5 = vld [vmem:[#allocation5 + $0x30] sm:$0xff] }
  0x11   :  { %57 = vst.msk [vmem:[#allocation2 + $0xc0] sm:$0x1] %vm48_vm0, %v2812_v0  ;;  %58 = vst.msk [vmem:[#allocation2 + $0xd8] sm:$0x1] %vm48_vm0, %v2812_v0  ;;  %v249_v6 = vld [vmem:[#allocation5 + $0x38] sm:$0xff]  ;;  %v254_v7 = vld [vmem:[#allocation5 + $0x60] sm:$0xff] }
  0x12   :  { %59 = vst.msk [vmem:[#allocation2 + $0xf0] sm:$0x1] %vm48_vm0, %v2812_v0  ;;  %60 = vst.msk [vmem:[#allocation2 + $0x108] sm:$0x1] %vm48_vm0, %v2812_v0  ;;  %v255_v9 = vld [vmem:[#allocation5 + $0x68] sm:$0xff]  ;;  %v260_v10 = vld [vmem:[#allocation5 + $0x90] sm:$0xff] }
  0x13   :  { %61 = vst.msk [vmem:[#allocation2 + $0x120] sm:$0x1] %vm48_vm0, %v2812_v0  ;;  %62 = vst.msk [vmem:[#allocation2 + $0x138] sm:$0x1] %vm48_vm0, %v2812_v0  ;;  %v261_v11 = vld [vmem:[#allocation5 + $0x98] sm:$0xff]  ;;  %v244_v14 = vld [vmem:[#allocation5 + $0x10] sm:$0xff] }
  0x14   :  { %63 = vst.msk [vmem:[#allocation2 + $0x150] sm:$0x1] %vm48_vm0, %v2812_v0  ;;  %65 = vst.msk [vmem:[#allocation2 + $0x180] sm:$0x1] %vm48_vm0, %v2812_v0  ;;  %v245_v15 = vld [vmem:[#allocation5 + $0x18] sm:$0xff]  ;;  %v250_v16 = vld [vmem:[#allocation5 + $0x40] sm:$0xff] }
  0x15   :  { %69 = vst.msk [vmem:[#allocation2 + $0x1e0] sm:$0x1] %vm48_vm0, %v2812_v0  ;;  %70 = vst.msk [vmem:[#allocation2 + $0x1f8] sm:$0x1] %vm48_vm0, %v2812_v0  ;;  %v251_v17 = vld [vmem:[#allocation5 + $0x48] sm:$0xff]  ;;  %v256_v18 = vld [vmem:[#allocation5 + $0x70] sm:$0xff] }
  0x16   :  { %71 = vst.msk [vmem:[#allocation2 + $0x210] sm:$0x1] %vm48_vm0, %v2812_v0  ;;  %72 = vst.msk [vmem:[#allocation2 + $0x228] sm:$0x1] %vm48_vm0, %v2812_v0  ;;  %v257_v19 = vld [vmem:[#allocation5 + $0x78] sm:$0xff]  ;;  %v258_v20 = vld [vmem:[#allocation5 + $0x80] sm:$0xff] }
  0x17   :  { %73 = vst.msk [vmem:[#allocation2 + $0x240] sm:$0x1] %vm48_vm0, %v2812_v0  ;;  %74 = vst.msk [vmem:[#allocation2 + $0x258] sm:$0x1] %vm48_vm0, %v2812_v0  ;;  %v259_v21 = vld [vmem:[#allocation5 + $0x88] sm:$0xff]  ;;  %v264_v22 = vld [vmem:[#allocation5 + $0xb0] sm:$0xff] }
  0x18   :  { %75 = vst.msk [vmem:[#allocation2 + $0x270] sm:$0x1] %vm48_vm0, %v2812_v0  ;;  %76 = vst.msk [vmem:[#allocation2 + $0x288] sm:$0x1] %vm48_vm0, %v2812_v0  ;;  %v265_v24 = vld [vmem:[#allocation5 + $0xb8] sm:$0xff]  ;;  %v262_v25 = vld [vmem:[#allocation5 + $0xa0] sm:$0xff] }
  0x19   :  { %77 = vst.msk [vmem:[#allocation2 + $0x2a0] sm:$0x1] %vm48_vm0, %v2812_v0  ;;  %78 = vst.msk [vmem:[#allocation2 + $0x2b8] sm:$0x1] %vm48_vm0, %v2812_v0  ;;  %s2813_s0 = smov 1   ;;  %vm193_vm4 = vcmask 5120  }
  0x1a   :  { %79 = vst.msk [vmem:[#allocation2 + $0x2d0] sm:$0x1] %vm48_vm0, %v2812_v0  ;;  %80 = vst.msk [vmem:[#allocation2 + $0x2e8] sm:$0x1] %vm48_vm0, %v2812_v0  ;;  %vm2197_vm5 = vcmask 144392   ;;  %s2814_s13 = smov 125  }
  0x1b   :  { %81 = vst.msk [vmem:[#allocation2 + $0x300] sm:$0x1] %vm48_vm0, %v2812_v0  ;;  %83 = vst.msk [vmem:[#allocation2 + $0x330] sm:$0x1] %vm48_vm0, %v2812_v0  ;;  %s2815_s14 = smov 122   ;;  %vm2726_vm6 = vcmask 87040  }
  0x1c   :  { %87 = vst.msk [vmem:[#allocation2 + $0x390] sm:$0x1] %vm48_vm0, %v2812_v0  ;;  %88 = vst.msk [vmem:[#allocation2 + $0x3a8] sm:$0x1] %vm48_vm0, %v2812_v0 }
  0x1d   :  { %89 = vst.msk [vmem:[#allocation2 + $0x3c0] sm:$0x1] %vm48_vm0, %v2812_v0  ;;  %90 = vst.msk [vmem:[#allocation2 + $0x3d8] sm:$0x1] %vm48_vm0, %v2812_v0 }
  0x1e   :  { %91 = vst.msk [vmem:[#allocation2 + $0x3f0] sm:$0x1] %vm48_vm0, %v2812_v0  ;;  %92 = vst.msk [vmem:[#allocation2 + $0x408] sm:$0x1] %vm48_vm0, %v2812_v0 }
  0x1f   :  { %93 = vst.msk [vmem:[#allocation2 + $0x420] sm:$0x1] %vm48_vm0, %v2812_v0  ;;  %94 = vst.msk [vmem:[#allocation2 + $0x438] sm:$0x1] %vm48_vm0, %v2812_v0 }
  0x20   :  { %95 = vst.msk [vmem:[#allocation2 + $0x450] sm:$0x1] %vm48_vm0, %v2812_v0  ;;  %96 = vst.msk [vmem:[#allocation2 + $0x468] sm:$0x1] %vm48_vm0, %v2812_v0 }
  0x21   :  { %97 = vst.msk [vmem:[#allocation2 + $0x480] sm:$0x1] %vm48_vm0, %v2812_v0  ;;  %98 = vst.msk [vmem:[#allocation2 + $0x498] sm:$0x1] %vm48_vm0, %v2812_v0 }
  0x22   :  { %99 = vst.msk [vmem:[#allocation2 + $0x4b0] sm:$0x1] %vm48_vm0, %v2812_v0  ;;  %101 = vst.msk [vmem:[#allocation2 + $0x4e0] sm:$0x1] %vm48_vm0, %v2812_v0 }
  0x23   :  { %105 = vst.msk [vmem:[#allocation2 + $0x540] sm:$0x1] %vm48_vm0, %v2812_v0  ;;  %106 = vst.msk [vmem:[#allocation2 + $0x558] sm:$0x1] %vm48_vm0, %v2812_v0 }
  0x24   :  { %107 = vst.msk [vmem:[#allocation2 + $0x570] sm:$0x1] %vm48_vm0, %v2812_v0  ;;  %108 = vst.msk [vmem:[#allocation2 + $0x588] sm:$0x1] %vm48_vm0, %v2812_v0 }
  0x25   :  { %109 = vst.msk [vmem:[#allocation2 + $0x5a0] sm:$0x1] %vm48_vm0, %v2812_v0  ;;  %110 = vst.msk [vmem:[#allocation2 + $0x5b8] sm:$0x1] %vm48_vm0, %v2812_v0 }
  0x26   :  { %111 = vst.msk [vmem:[#allocation2 + $0x5d0] sm:$0x1] %vm48_vm0, %v2812_v0  ;;  %112 = vst.msk [vmem:[#allocation2 + $0x5e8] sm:$0x1] %vm48_vm0, %v2812_v0 }
  0x27   :  { %113 = vst.msk [vmem:[#allocation2 + $0x600] sm:$0x1] %vm48_vm0, %v2812_v0  ;;  %114 = vst.msk [vmem:[#allocation2 + $0x618] sm:$0x1] %vm48_vm0, %v2812_v0 }
  0x28   :  { %115 = vst.msk [vmem:[#allocation2 + $0x630] sm:$0x1] %vm48_vm0, %v2812_v0  ;;  %116 = vst.msk [vmem:[#allocation2 + $0x648] sm:$0x1] %vm48_vm0, %v2812_v0 }
  0x29   :  { %117 = vst.msk [vmem:[#allocation2 + $0x660] sm:$0x1] %vm48_vm0, %v2812_v0  ;;  %119 = vst.msk [vmem:[#allocation2 + $0x690] sm:$0x1] %vm48_vm0, %v2812_v0 }
  0x2a   :  { %123 = vst.msk [vmem:[#allocation2 + $0x6f0] sm:$0x1] %vm48_vm0, %v2812_v0  ;;  %124 = vst.msk [vmem:[#allocation2 + $0x708] sm:$0x1] %vm48_vm0, %v2812_v0 }
  0x2b   :  { %125 = vst.msk [vmem:[#allocation2 + $0x720] sm:$0x1] %vm48_vm0, %v2812_v0  ;;  %126 = vst.msk [vmem:[#allocation2 + $0x738] sm:$0x1] %vm48_vm0, %v2812_v0 }
  0x2c   :  { %127 = vst.msk [vmem:[#allocation2 + $0x750] sm:$0x1] %vm48_vm0, %v2812_v0  ;;  %128 = vst.msk [vmem:[#allocation2 + $0x768] sm:$0x1] %vm48_vm0, %v2812_v0 }
  0x2d   :  { %129 = vst.msk [vmem:[#allocation2 + $0x780] sm:$0x1] %vm48_vm0, %v2812_v0  ;;  %130 = vst.msk [vmem:[#allocation2 + $0x798] sm:$0x1] %vm48_vm0, %v2812_v0 }
  0x2e   :  { %131 = vst.msk [vmem:[#allocation2 + $0x7b0] sm:$0x1] %vm48_vm0, %v2812_v0  ;;  %132 = vst.msk [vmem:[#allocation2 + $0x7c8] sm:$0x1] %vm48_vm0, %v2812_v0 }
  0x2f   :  { %133 = vst.msk [vmem:[#allocation2 + $0x7e0] sm:$0x1] %vm48_vm0, %v2812_v0  ;;  %134 = vst.msk [vmem:[#allocation2 + $0x7f8] sm:$0x1] %vm48_vm0, %v2812_v0 }
  0x30   :  { %135 = vst.msk [vmem:[#allocation2 + $0x810] sm:$0x1] %vm48_vm0, %v2812_v0  ;;  %137 = vst.msk [vmem:[#allocation2 + $0x840] sm:$0x1] %vm48_vm0, %v2812_v0 }
  0x31   :  { %141 = vst.msk [vmem:[#allocation2 + $0x8a0] sm:$0x1] %vm48_vm0, %v2812_v0  ;;  %142 = vst.msk [vmem:[#allocation2 + $0x8b8] sm:$0x1] %vm48_vm0, %v2812_v0 }
  0x32   :  { %143 = vst.msk [vmem:[#allocation2 + $0x8d0] sm:$0x1] %vm48_vm0, %v2812_v0  ;;  %144 = vst.msk [vmem:[#allocation2 + $0x8e8] sm:$0x1] %vm48_vm0, %v2812_v0 }
  0x33   :  { %145 = vst.msk [vmem:[#allocation2 + $0x900] sm:$0x1] %vm48_vm0, %v2812_v0  ;;  %146 = vst.msk [vmem:[#allocation2 + $0x918] sm:$0x1] %vm48_vm0, %v2812_v0 }
  0x34   :  { %147 = vst.msk [vmem:[#allocation2 + $0x930] sm:$0x1] %vm48_vm0, %v2812_v0  ;;  %148 = vst.msk [vmem:[#allocation2 + $0x948] sm:$0x1] %vm48_vm0, %v2812_v0 }
  0x35   :  { %149 = vst.msk [vmem:[#allocation2 + $0x960] sm:$0x1] %vm48_vm0, %v2812_v0  ;;  %150 = vst.msk [vmem:[#allocation2 + $0x978] sm:$0x1] %vm48_vm0, %v2812_v0 }
  0x36   :  { %151 = vst.msk [vmem:[#allocation2 + $0x990] sm:$0x1] %vm48_vm0, %v2812_v0  ;;  %152 = vst.msk [vmem:[#allocation2 + $0x9a8] sm:$0x1] %vm48_vm0, %v2812_v0 }
  0x37   :  { %153 = vst.msk [vmem:[#allocation2 + $0x9c0] sm:$0x1] %vm48_vm0, %v2812_v0  ;;  %155 = vst.msk [vmem:[#allocation2 + $0x9f0] sm:$0x1] %vm48_vm0, %v2812_v0 }
  0x38   :  { %159 = vst.msk [vmem:[#allocation2 + $0xa50] sm:$0x1] %vm48_vm0, %v2812_v0  ;;  %160 = vst.msk [vmem:[#allocation2 + $0xa68] sm:$0x1] %vm48_vm0, %v2812_v0 }
  0x39   :  { %161 = vst.msk [vmem:[#allocation2 + $0xa80] sm:$0x1] %vm48_vm0, %v2812_v0  ;;  %162 = vst.msk [vmem:[#allocation2 + $0xa98] sm:$0x1] %vm48_vm0, %v2812_v0 }
  0x3a   :  { %163 = vst.msk [vmem:[#allocation2 + $0xab0] sm:$0x1] %vm48_vm0, %v2812_v0  ;;  %164 = vst.msk [vmem:[#allocation2 + $0xac8] sm:$0x1] %vm48_vm0, %v2812_v0 }
  0x3b   :  { %165 = vst.msk [vmem:[#allocation2 + $0xae0] sm:$0x1] %vm48_vm0, %v2812_v0  ;;  %166 = vst.msk [vmem:[#allocation2 + $0xaf8] sm:$0x1] %vm48_vm0, %v2812_v0 }
  0x3c   :  { %167 = vst.msk [vmem:[#allocation2 + $0xb10] sm:$0x1] %vm48_vm0, %v2812_v0  ;;  %168 = vst.msk [vmem:[#allocation2 + $0xb28] sm:$0x1] %vm48_vm0, %v2812_v0 }
  0x3d   :  { %169 = vst.msk [vmem:[#allocation2 + $0xb40] sm:$0x1] %vm48_vm0, %v2812_v0  ;;  %170 = vst.msk [vmem:[#allocation2 + $0xb58] sm:$0x1] %vm48_vm0, %v2812_v0 }
  0x3e   :  { %171 = vst.msk [vmem:[#allocation2 + $0xb70] sm:$0x1] %vm48_vm0, %v2812_v0  ;;  %173 = vst.msk [vmem:[#allocation2 + $0xba0] sm:$0x1] %vm48_vm0, %v2812_v0 }
  0x3f   :  { %177 = vst.msk [vmem:[#allocation2 + $0xc00] sm:$0x1] %vm48_vm0, %v2812_v0  ;;  %178 = vst.msk [vmem:[#allocation2 + $0xc18] sm:$0x1] %vm48_vm0, %v2812_v0 }
  0x40   :  { %179 = vst.msk [vmem:[#allocation2 + $0xc30] sm:$0x1] %vm48_vm0, %v2812_v0  ;;  %180 = vst.msk [vmem:[#allocation2 + $0xc48] sm:$0x1] %vm48_vm0, %v2812_v0 }
  0x41   :  { %181 = vst.msk [vmem:[#allocation2 + $0xc60] sm:$0x1] %vm48_vm0, %v2812_v0  ;;  %182 = vst.msk [vmem:[#allocation2 + $0xc78] sm:$0x1] %vm48_vm0, %v2812_v0 }
  0x42   :  { %183 = vst.msk [vmem:[#allocation2 + $0xc90] sm:$0x1] %vm48_vm0, %v2812_v0  ;;  %184 = vst.msk [vmem:[#allocation2 + $0xca8] sm:$0x1] %vm48_vm0, %v2812_v0 }
  0x43   :  { %185 = vst.msk [vmem:[#allocation2 + $0xcc0] sm:$0x1] %vm48_vm0, %v2812_v0  ;;  %186 = vst.msk [vmem:[#allocation2 + $0xcd8] sm:$0x1] %vm48_vm0, %v2812_v0 }
  0x44   :  { %187 = vst.msk [vmem:[#allocation2 + $0xcf0] sm:$0x1] %vm48_vm0, %v2812_v0  ;;  %188 = vst.msk [vmem:[#allocation2 + $0xd08] sm:$0x1] %vm48_vm0, %v2812_v0 }
  0x45   :  { %189 = vst.msk [vmem:[#allocation2 + $0xd20] sm:$0x1] %vm48_vm0, %v2812_v0  ;;  %191 = vst.msk [vmem:[#allocation2 + $0xd50] sm:$0x1] %vm48_vm0, %v2812_v0 }
  0x46   :  { %23 = vst.msk [vmem:[#allocation2] sm:$0xff] %vm22_vm1, %v2812_v0  ;;  %24 = vst.msk [vmem:[#allocation2 + $0x8] sm:$0xff] %vm22_vm1, %v2812_v0 }
  0x47   :  { %27 = vst.msk [vmem:[#allocation2 + $0x1b0] sm:$0xff] %vm22_vm1, %v2812_v0  ;;  %28 = vst.msk [vmem:[#allocation2 + $0x1b8] sm:$0xff] %vm22_vm1, %v2812_v0 }
  0x48   :  { %30 = vst.msk [vmem:[#allocation2 + $0x360] sm:$0xff] %vm22_vm1, %v2812_v0  ;;  %31 = vst.msk [vmem:[#allocation2 + $0x368] sm:$0xff] %vm22_vm1, %v2812_v0 }
  0x49   :  { %33 = vst.msk [vmem:[#allocation2 + $0x510] sm:$0xff] %vm22_vm1, %v2812_v0  ;;  %34 = vst.msk [vmem:[#allocation2 + $0x518] sm:$0xff] %vm22_vm1, %v2812_v0 }
  0x4a   :  { %36 = vst.msk [vmem:[#allocation2 + $0x6c0] sm:$0xff] %vm22_vm1, %v2812_v0  ;;  %37 = vst.msk [vmem:[#allocation2 + $0x6c8] sm:$0xff] %vm22_vm1, %v2812_v0 }
  0x4b   :  { %39 = vst.msk [vmem:[#allocation2 + $0x870] sm:$0xff] %vm22_vm1, %v2812_v0  ;;  %40 = vst.msk [vmem:[#allocation2 + $0x878] sm:$0xff] %vm22_vm1, %v2812_v0 }
  0x4c   :  { %42 = vst.msk [vmem:[#allocation2 + $0xa20] sm:$0xff] %vm22_vm1, %v2812_v0  ;;  %43 = vst.msk [vmem:[#allocation2 + $0xa28] sm:$0xff] %vm22_vm1, %v2812_v0 }
  0x4d   :  { %45 = vst.msk [vmem:[#allocation2 + $0xbd0] sm:$0xff] %vm22_vm1, %v2812_v0  ;;  %46 = vst.msk [vmem:[#allocation2 + $0xbd8] sm:$0xff] %vm22_vm1, %v2812_v0  ;;  %v757_v12 = vld [vmem:[#allocation2 + $0x8] sm:$0xff] }
  0x4e   :  { %26 = vst.msk [vmem:[#allocation2 + $0x10] sm:$0x3] %vm25_vm2, %v2812_v0  ;;  %29 = vst.msk [vmem:[#allocation2 + $0x1c0] sm:$0x3] %vm25_vm2, %v2812_v0 }
  0x4f   :  { %49 = vst.msk [vmem:[#allocation2] sm:$0x1] %vm48_vm0, %v2812_v0  ;;  %67 = vst.msk [vmem:[#allocation2 + $0x1b0] sm:$0x1] %vm48_vm0, %v2812_v0 }
  0x50   :  { %32 = vst.msk [vmem:[#allocation2 + $0x370] sm:$0x3] %vm25_vm2, %v2812_v0  ;;  %35 = vst.msk [vmem:[#allocation2 + $0x520] sm:$0x3] %vm25_vm2, %v2812_v0 }
  0x51   :  { %38 = vst.msk [vmem:[#allocation2 + $0x6d0] sm:$0x3] %vm25_vm2, %v2812_v0  ;;  %41 = vst.msk [vmem:[#allocation2 + $0x880] sm:$0x3] %vm25_vm2, %v2812_v0 }
  0x52   :  { %44 = vst.msk [vmem:[#allocation2 + $0xa30] sm:$0x3] %vm25_vm2, %v2812_v0  ;;  %47 = vst.msk [vmem:[#allocation2 + $0xbe0] sm:$0x3] %vm25_vm2, %v2812_v0 }
  0x53   :  { %85 = vst.msk [vmem:[#allocation2 + $0x360] sm:$0x1] %vm48_vm0, %v2812_v0  ;;  %103 = vst.msk [vmem:[#allocation2 + $0x510] sm:$0x1] %vm48_vm0, %v2812_v0 }
  0x54   :  { %121 = vst.msk [vmem:[#allocation2 + $0x6c0] sm:$0x1] %vm48_vm0, %v2812_v0  ;;  %139 = vst.msk [vmem:[#allocation2 + $0x870] sm:$0x1] %vm48_vm0, %v2812_v0 }
  0x55   :  { %157 = vst.msk [vmem:[#allocation2 + $0xa20] sm:$0x1] %vm48_vm0, %v2812_v0  ;;  %175 = vst.msk [vmem:[#allocation2 + $0xbd0] sm:$0x1] %vm48_vm0, %v2812_v0  ;;  %v758_v13 = vld [vmem:[#allocation2 + $0x10] sm:$0x3] }
  0x56   :  { %504 = vst.msk [vmem:[#allocation2 + $0x49] sm:$0xff] %vm499_vm3, %v246_v1  ;;  %505 = vst.msk [vmem:[#allocation2 + $0x51] sm:$0xff] %vm499_vm3, %v247_v2  ;;  %v756_v8 = vld [vmem:[#allocation2] sm:$0xff] }
  0x57   :  { %510 = vst.msk [vmem:[#allocation2 + $0x91] sm:$0xff] %vm499_vm3, %v252_v3  ;;  %511 = vst.msk [vmem:[#allocation2 + $0x99] sm:$0xff] %vm499_vm3, %v253_v4 }
  0x58   :  { %506 = vst.msk [vmem:[#allocation2 + $0x61] sm:$0xff] %vm499_vm3, %v248_v5  ;;  %507 = vst.msk [vmem:[#allocation2 + $0x69] sm:$0xff] %vm499_vm3, %v249_v6 }
  0x59   :  { %512 = vst.msk [vmem:[#allocation2 + $0xa9] sm:$0xff] %vm499_vm3, %v254_v7  ;;  %513 = vst.msk [vmem:[#allocation2 + $0xb1] sm:$0xff] %vm499_vm3, %v255_v9 }
  0x5a   :  { %518 = vst.msk [vmem:[#allocation2 + $0xf1] sm:$0xff] %vm499_vm3, %v260_v10  ;;  %519 = vst.msk [vmem:[#allocation2 + $0xf9] sm:$0xff] %vm499_vm3, %v261_v11 }
  0x5b   :  { %502 = vst.msk [vmem:[#allocation2 + $0x31] sm:$0xff] %vm499_vm3, %v244_v14  ;;  %503 = vst.msk [vmem:[#allocation2 + $0x39] sm:$0xff] %vm499_vm3, %v245_v15  ;;  %v263_v14 = vld [vmem:[#allocation5 + $0xa8] sm:$0xff]  ;;  %v268_v15 = vld [vmem:[#allocation5 + $0xd0] sm:$0xff] }
  0x5c   :  { %508 = vst.msk [vmem:[#allocation2 + $0x79] sm:$0xff] %vm499_vm3, %v250_v16  ;;  %509 = vst.msk [vmem:[#allocation2 + $0x81] sm:$0xff] %vm499_vm3, %v251_v17  ;;  %v269_v16 = vld [vmem:[#allocation5 + $0xd8] sm:$0xff] }
  0x5d   :  { %514 = vst.msk [vmem:[#allocation2 + $0xc1] sm:$0xff] %vm499_vm3, %v256_v18  ;;  %515 = vst.msk [vmem:[#allocation2 + $0xc9] sm:$0xff] %vm499_vm3, %v257_v19  ;;  %v901_v23 = vld [vmem:[#allocation2 + $0x48] sm:$0xff]  ;;  %v902_v26 = vld [vmem:[#allocation2 + $0x50] sm:$0xff] }
  0x5e   :  { %516 = vst.msk [vmem:[#allocation2 + $0xd9] sm:$0xff] %vm499_vm3, %v258_v20  ;;  %517 = vst.msk [vmem:[#allocation2 + $0xe1] sm:$0xff] %vm499_vm3, %v259_v21  ;;  %v903_v27 = vld [vmem:[#allocation2 + $0x58] sm:$0x3]  ;;  %v3136_v28 = vld [vmem:[#allocation2 + $0x90] sm:$0xff]  ;;  %v1190_v29 = vmax.f32 %v756_v8, %v901_v23  ;;  %v1191_v32 = vmax.f32 %v757_v12, %v902_v26 }
  0x5f   :  { %522 = vst.msk [vmem:[#allocation2 + $0x121] sm:$0xff] %vm499_vm3, %v264_v22  ;;  %523 = vst.msk [vmem:[#allocation2 + $0x129] sm:$0xff] %vm499_vm3, %v265_v24  ;;  %v3140_v30 = vld [vmem:[#allocation2 + $0x98] sm:$0xff]  ;;  %v1048_v31 = vld [vmem:[#allocation2 + $0xa0] sm:$0x3]  ;;  %v1192_v33 = vmax.f32 %v758_v13, %v903_v27 }
  0x60   :  { %520 = vst.msk [vmem:[#allocation2 + $0x109] sm:$0xff] %vm499_vm3, %v262_v25  ;;  %v1334_v34 = vmax.f32 %v1190_v29, %v3136_v28  ;;  %v762_v35 = vld [vmem:[#allocation2 + $0x60] sm:$0xff]  ;;  %v763_v36 = vld [vmem:[#allocation2 + $0x68] sm:$0xff]  ;;  %v764_v37 = vld [vmem:[#allocation2 + $0x70] sm:$0x3]  ;;  %v1335_v38 = vmax.f32 %v1191_v32, %v3140_v30 }
  0x61   :  { %v1336_v39 = vmax.f32 %v1192_v33, %v1048_v31  ;;  %v907_v40 = vld [vmem:[#allocation2 + $0xa8] sm:$0xff]  ;;  %v908_v41 = vld [vmem:[#allocation2 + $0xb0] sm:$0xff]  ;;  %v909_v42 = vld [vmem:[#allocation2 + $0xb8] sm:$0x3]  ;;  %521 = vst.msk [vmem:[#allocation2 + $0x111] sm:$0xff] %vm499_vm3, %v263_v14 }
  0x62   :  { %1478 = vst.msk [vmem:[#allocation3] sm:$0xff] %vm22_vm1, %v1334_v34  ;;  %v3145_v43 = vld [vmem:[#allocation2 + $0xf0] sm:$0xff]  ;;  %v3147_v44 = vld [vmem:[#allocation2 + $0xf8] sm:$0xff]  ;;  %v1054_v45 = vld [vmem:[#allocation2 + $0x100] sm:$0x3]  ;;  %v1196_v46 = vmax.f32 %v762_v35, %v907_v40  ;;  %v1197_v47 = vmax.f32 %v763_v36, %v908_v41  ;;  %v1198_v48 = vmax.f32 %v764_v37, %v909_v42 }
  0x63   :  { %1479 = vst.msk [vmem:[#allocation3 + $0x8] sm:$0xff] %vm22_vm1, %v1335_v38  ;;  %v759_v49 = vld [vmem:[#allocation2 + $0x30] sm:$0xff]  ;;  %v760_v50 = vld [vmem:[#allocation2 + $0x38] sm:$0xff]  ;;  %v761_v51 = vld [vmem:[#allocation2 + $0x40] sm:$0x3] }
  0x64   :  { %1480 = vst.msk [vmem:[#allocation3 + $0x10] sm:$0x3] %vm25_vm2, %v1336_v39  ;;  %v767_v52 = vld [vmem:[#allocation2 + $0xa0] sm:$0x3]  ;;  %v1340_v53 = vmax.f32 %v1196_v46, %v3145_v43  ;;  %v1341_v54 = vmax.f32 %v1197_v47, %v3147_v44  ;;  %v1342_v55 = vmax.f32 %v1198_v48, %v1054_v45  ;;  %v904_v56 = vld [vmem:[#allocation2 + $0x78] sm:$0xff]  ;;  %v3155_v60 = vld [vmem:[#allocation2 + $0xc8] sm:$0xff] }
  0x65   :  { %v905_v57 = vld [vmem:[#allocation2 + $0x80] sm:$0xff]  ;;  %v906_v58 = vld [vmem:[#allocation2 + $0x88] sm:$0x3]  ;;  %v1051_v61 = vld [vmem:[#allocation2 + $0xd0] sm:$0x3]  ;;  %v1193_v62 = vmax.f32 %v759_v49, %v904_v56  ;;  %526 = vst.msk [vmem:[#allocation2 + $0x151] sm:$0xff] %vm499_vm3, %v268_v15 }
  0x66   :  { %v3153_v59 = vld [vmem:[#allocation2 + $0xc0] sm:$0xff]  ;;  %v1194_v63 = vmax.f32 %v760_v50, %v905_v57  ;;  %v1195_v1 = vmax.f32 %v761_v51, %v906_v58  ;;  %1484 = vst.msk [vmem:[#allocation3 + $0x30] sm:$0xff] %vm22_vm1, %v1340_v53  ;;  %1485 = vst.msk [vmem:[#allocation3 + $0x38] sm:$0xff] %vm22_vm1, %v1341_v54  ;;  %v910_v2 = vld [vmem:[#allocation2 + $0xd8] sm:$0xff] }
  0x67   :  { %1486 = vst.msk [vmem:[#allocation3 + $0x40] sm:$0x3] %vm25_vm2, %v1342_v55  ;;  %v911_v3 = vld [vmem:[#allocation2 + $0xe0] sm:$0xff]  ;;  %v912_v4 = vld [vmem:[#allocation2 + $0xe8] sm:$0x3]  ;;  %v1337_v5 = vmax.f32 %v1193_v62, %v3153_v59  ;;  %v1199_v11 = vmax.f32 %v3136_v28, %v910_v2  ;;  %v272_v26 = vld [vmem:[#allocation5 + $0xf0] sm:$0xff] }
  0x68   :  { %v1338_v6 = vmax.f32 %v1194_v63, %v3155_v60  ;;  %v1339_v7 = vmax.f32 %v1195_v1, %v1051_v61  ;;  %v1055_v8 = vld [vmem:[#allocation2 + $0x120] sm:$0xff]  ;;  %v1056_v9 = vld [vmem:[#allocation2 + $0x128] sm:$0xff]  ;;  %v1057_v10 = vld [vmem:[#allocation2 + $0x130] sm:$0x3]  ;;  %v1200_v12 = vmax.f32 %v3140_v30, %v911_v3  ;;  %v1201_v13 = vmax.f32 %v767_v52, %v912_v4  ;;  %527 = vst.msk [vmem:[#allocation2 + $0x159] sm:$0xff] %vm499_vm3, %v269_v16 }
  0x69   :  { %1481 = vst.msk [vmem:[#allocation3 + $0x18] sm:$0xff] %vm22_vm1, %v1337_v5  ;;  %v1343_v17 = vmax.f32 %v1199_v11, %v1055_v8  ;;  %v266_v18 = vld [vmem:[#allocation5 + $0xc0] sm:$0xff]  ;;  %v267_v25 = vld [vmem:[#allocation5 + $0xc8] sm:$0xff]  ;;  %v273_v28 = vld [vmem:[#allocation5 + $0xf8] sm:$0xff] }
  0x6a   :  { %1482 = vst.msk [vmem:[#allocation3 + $0x20] sm:$0xff] %vm22_vm1, %v1338_v6  ;;  %v1622_v19 = vld [vmem:[#allocation3] ss:$2 sm:$0x3f]  ;;  %v1344_v21 = vmax.f32 %v1200_v12, %v1056_v9  ;;  %v1345_v22 = vmax.f32 %v1201_v13, %v1057_v10  ;;  %v284_v36 = vld [vmem:[#allocation5 + $0x150] sm:$0xff]  ;;  %v285_v39 = vld [vmem:[#allocation5 + $0x158] sm:$0xff] }
  0x6b   :  { %1483 = vst.msk [vmem:[#allocation3 + $0x28] sm:$0x3] %vm25_vm2, %v1339_v7  ;;  %v1718_v20 = vld [vmem:[#allocation3 + $0x3] ss:$2 sm:$0x3f]  ;;  %v914_v47 = vld [vmem:[#allocation2 + $0x110] sm:$0xff] }
  0x6c   :  { %524 = vst.msk [vmem:[#allocation2 + $0x139] sm:$0xff] %vm499_vm3, %v266_v18  ;;  %v1814_v23 = vld [vmem:[#allocation3 + $0x6] ss:$2 sm:$0x3f]  ;;  %v1909_v24 = vmax.f32 %v1622_v19, %v1718_v20  ;;  %525 = vst.msk [vmem:[#allocation2 + $0x141] sm:$0xff] %vm499_vm3, %v267_v25  ;;  %v1203_v53 = vmax.f32 %v3155_v60, %v914_v47  ;;  %v775_v61 = vld [vmem:[#allocation2 + $0x1b8] sm:$0xff] }
  0x6d   :  { %1487 = vst.msk [vmem:[#allocation3 + $0x48] sm:$0xff] %vm22_vm1, %v1343_v17  ;;  %1488 = vst.msk [vmem:[#allocation3 + $0x50] sm:$0xff] %vm22_vm1, %v1344_v21  ;;  %v913_v27 = vld [vmem:[#allocation2 + $0x108] sm:$0xff]  ;;  %v278_v29 = vld [vmem:[#allocation5 + $0x120] sm:$0xff] }
  0x6e   :  { %1489 = vst.msk [vmem:[#allocation3 + $0x58] sm:$0x3] %vm25_vm2, %v1345_v22  ;;  %v1957_v30 = vmax.f32 %v1909_v24, %v1814_v23  ;;  %v1626_v31 = vld [vmem:[#allocation3 + $0x30] ss:$2 sm:$0x3f]  ;;  %v279_v35 = vld [vmem:[#allocation5 + $0x128] sm:$0xff]  ;;  %v1202_v38 = vmax.f32 %v3153_v59, %v913_v27 }
  0x6f   :  { %530 = vst.msk [vmem:[#allocation2 + $0x181] sm:$0xff] %vm499_vm3, %v272_v26  ;;  %v1722_v32 = vld [vmem:[#allocation3 + $0x33] ss:$2 sm:$0x3f]  ;;  %531 = vst.msk [vmem:[#allocation2 + $0x189] sm:$0xff] %vm499_vm3, %v273_v28  ;;  %v282_v26 = vld [vmem:[#allocation5 + $0x140] sm:$0xff] }
  0x70   :  { %536 = vst.msk [vmem:[#allocation2 + $0x1f9] sm:$0xff] %vm499_vm3, %v278_v29  ;;  %v1818_v33 = vld [vmem:[#allocation3 + $0x36] ss:$2 sm:$0x3f]  ;;  %v1911_v34 = vmax.f32 %v1626_v31, %v1722_v32  ;;  %2053 = vrot.lane.b32.xlu0 %v1957_v30, %s2813_s0  ;;  %v770_v37 = vld [vmem:[#allocation2 + $0xd0] sm:$0x3] }
  0x71   :  { %537 = vst.msk [vmem:[#allocation2 + $0x201] sm:$0xff] %vm499_vm3, %v279_v35  ;;  %542 = vst.msk [vmem:[#allocation2 + $0x241] sm:$0xff] %vm499_vm3, %v284_v36  ;;  %v1624_v41 = vld [vmem:[#allocation3 + $0x18] ss:$2 sm:$0x3f]  ;;  %v1058_v50 = vld [vmem:[#allocation2 + $0x150] sm:$0xff] }
  0x72   :  { %v1959_v40 = vmax.f32 %v1911_v34, %v1818_v33  ;;  %v1720_v42 = vld [vmem:[#allocation3 + $0x1b] ss:$2 sm:$0x3f]  ;;  %543 = vst.msk [vmem:[#allocation2 + $0x249] sm:$0xff] %vm499_vm3, %v285_v39  ;;  %v915_v48 = vld [vmem:[#allocation2 + $0x118] sm:$0x3]  ;;  %v1346_v59 = vmax.f32 %v1202_v38, %v1058_v50 }
  0x73   :  { %v1816_v45 = vld [vmem:[#allocation3 + $0x1e] ss:$2 sm:$0x3f]  ;;  %v1910_v46 = vmax.f32 %v1624_v41, %v1720_v42  ;;  %v1204_v54 = vmax.f32 %v770_v37, %v915_v48  ;;  %v774_v55 = vld [vmem:[#allocation2 + $0x1b0] sm:$0xff]  ;;  %540 = vst.msk [vmem:[#allocation2 + $0x229] sm:$0xff] %vm499_vm3, %v282_v26 }
  0x74   :  { %v773_v49 = vld [vmem:[#allocation2 + $0x100] sm:$0x3]  ;;  %2057 = vrot.lane.b32.xlu1 %v1959_v40, %s2813_s0  ;;  %v1059_v51 = vld [vmem:[#allocation2 + $0x158] sm:$0xff]  ;;  %v1628_v57 = vld [vmem:[#allocation3 + $0x48] ss:$2 sm:$0x3f] }
  0x75   :  { %v1060_v52 = vld [vmem:[#allocation2 + $0x160] sm:$0x3]  ;;  %v1958_v56 = vmax.f32 %v1910_v46, %v1816_v45  ;;  %v1724_v58 = vld [vmem:[#allocation3 + $0x4b] ss:$2 sm:$0x3f]  ;;  %v1347_v1 = vmax.f32 %v1203_v53, %v1059_v51  ;;  %v916_v3 = vld [vmem:[#allocation2 + $0x138] sm:$0xff] }
  0x76   :  { %v1820_v62 = vld [vmem:[#allocation3 + $0x4e] ss:$2 sm:$0x3f]  ;;  %v1912_v63 = vmax.f32 %v1628_v57, %v1724_v58  ;;  %v1348_v2 = vmax.f32 %v1204_v54, %v1060_v52  ;;  %v917_v4 = vld [vmem:[#allocation2 + $0x140] sm:$0xff]  ;;  %1490 = vst.msk [vmem:[#allocation3 + $0x60] sm:$0xff] %vm22_vm1, %v1346_v59  ;;  %v1205_v7 = vmax.f32 %v3145_v43, %v916_v3 }
  0x77   :  { %2055 = vrot.lane.b32.xlu0 %v1958_v56, %s2813_s0  ;;  %v918_v5 = vld [vmem:[#allocation2 + $0x148] sm:$0x3]  ;;  %v1061_v6 = vld [vmem:[#allocation2 + $0x180] sm:$0xff]  ;;  %v1206_v8 = vmax.f32 %v3147_v44, %v917_v4  ;;  %1491 = vst.msk [vmem:[#allocation3 + $0x68] sm:$0xff] %vm22_vm1, %v1347_v1  ;;  %v1063_v10 = vld [vmem:[#allocation2 + $0x190] sm:$0x3] }
  0x78   :  { %v1062_v60 = vld [vmem:[#allocation2 + $0x188] sm:$0xff]  ;;  %v1960_v9 = vmax.f32 %v1912_v63, %v1820_v62  ;;  %1492 = vst.msk [vmem:[#allocation3 + $0x70] sm:$0x3] %vm25_vm2, %v1348_v2  ;;  %v1207_v11 = vmax.f32 %v773_v49, %v918_v5  ;;  %v776_v12 = vld [vmem:[#allocation2 + $0x1c0] sm:$0x3]  ;;  %v919_v13 = vld [vmem:[#allocation2 + $0x1f8] sm:$0xff]  ;;  %v1349_v14 = vmax.f32 %v1205_v7, %v1061_v6 }
  0x79   :  { %v1350_v15 = vmax.f32 %v1206_v8, %v1062_v60  ;;  %v920_v16 = vld [vmem:[#allocation2 + $0x200] sm:$0xff]  ;;  %v921_v17 = vld [vmem:[#allocation2 + $0x208] sm:$0x3]  ;;  %v1208_v19 = vmax.f32 %v774_v55, %v919_v13  ;;  %v1066_v20 = vld [vmem:[#allocation2 + $0x250] sm:$0x3] }
  0x7a   :  { %v3191_v18 = vld [vmem:[#allocation2 + $0x240] sm:$0xff]  ;;  %2059 = vrot.lane.b32.xlu1 %v1960_v9, %s2813_s0  ;;  %v1351_v43 = vmax.f32 %v1207_v11, %v1063_v10  ;;  %v3194_v44 = vld [vmem:[#allocation2 + $0x248] sm:$0xff]  ;;  %v1209_v21 = vmax.f32 %v775_v61, %v920_v16  ;;  %v1210_v22 = vmax.f32 %v776_v12, %v921_v17  ;;  %v276_v23 = vld [vmem:[#allocation5 + $0x110] sm:$0xff]  ;;  %1493 = vst.msk [vmem:[#allocation3 + $0x78] sm:$0xff] %vm22_vm1, %v1349_v14 }
  0x7b   :  { %1494 = vst.msk [vmem:[#allocation3 + $0x80] sm:$0xff] %vm22_vm1, %v1350_v15  ;;  %v1352_v24 = vmax.f32 %v1208_v19, %v3191_v18  ;;  %v277_v25 = vld [vmem:[#allocation5 + $0x118] sm:$0xff]  ;;  %v283_v27 = vld [vmem:[#allocation5 + $0x148] sm:$0xff]  ;;  %v288_v30 = vld [vmem:[#allocation5 + $0x170] sm:$0xff] }
  0x7c   :  { %534 = vst.msk [vmem:[#allocation2 + $0x1e1] sm:$0xff] %vm499_vm3, %v276_v23  ;;  %v1353_v28 = vmax.f32 %v1209_v21, %v3194_v44  ;;  %v1354_v29 = vmax.f32 %v1210_v22, %v1066_v20  ;;  %v289_v31 = vld [vmem:[#allocation5 + $0x178] sm:$0xff]  ;;  %535 = vst.msk [vmem:[#allocation2 + $0x1e9] sm:$0xff] %vm499_vm3, %v277_v25  ;;  %v280_v32 = vld [vmem:[#allocation5 + $0x130] sm:$0xff] }
  0x7d   :  { %1495 = vst.msk [vmem:[#allocation3 + $0x88] sm:$0x3] %vm25_vm2, %v1351_v43  ;;  %v281_v33 = vld [vmem:[#allocation5 + $0x138] sm:$0xff]  ;;  %v286_v34 = vld [vmem:[#allocation5 + $0x160] sm:$0xff]  ;;  %v287_v35 = vld [vmem:[#allocation5 + $0x168] sm:$0xff] }
  0x7e   :  { %541 = vst.msk [vmem:[#allocation2 + $0x231] sm:$0xff] %vm499_vm3, %v283_v27  ;;  %546 = vst.msk [vmem:[#allocation2 + $0x271] sm:$0xff] %vm499_vm3, %v288_v30  ;;  %v292_v36 = vld [vmem:[#allocation5 + $0x190] sm:$0xff]  ;;  %v293_v37 = vld [vmem:[#allocation5 + $0x198] sm:$0xff] }
  0x7f   :  { %1496 = vst.msk [vmem:[#allocation3 + $0x90] sm:$0xff] %vm22_vm1, %v1352_v24  ;;  %1497 = vst.msk [vmem:[#allocation3 + $0x98] sm:$0xff] %vm22_vm1, %v1353_v28  ;;  %v290_v38 = vld [vmem:[#allocation5 + $0x180] sm:$0xff]  ;;  %v291_v45 = vld [vmem:[#allocation5 + $0x188] sm:$0xff] }
  0x80   :  { %547 = vst.msk [vmem:[#allocation2 + $0x279] sm:$0xff] %vm499_vm3, %v289_v31  ;;  %538 = vst.msk [vmem:[#allocation2 + $0x211] sm:$0xff] %vm499_vm3, %v280_v32  ;;  %v1630_v39 = vld [vmem:[#allocation3 + $0x60] ss:$2 sm:$0x3f]  ;;  %v296_v46 = vld [vmem:[#allocation5 + $0x1b0] sm:$0xff] }
  0x81   :  { %1498 = vst.msk [vmem:[#allocation3 + $0xa0] sm:$0x3] %vm25_vm2, %v1354_v29  ;;  %v1726_v40 = vld [vmem:[#allocation3 + $0x63] ss:$2 sm:$0x3f]  ;;  %v297_v47 = vld [vmem:[#allocation5 + $0x1b8] sm:$0xff] }
  0x82   :  { %539 = vst.msk [vmem:[#allocation2 + $0x219] sm:$0xff] %vm499_vm3, %v281_v33  ;;  %544 = vst.msk [vmem:[#allocation2 + $0x259] sm:$0xff] %vm499_vm3, %v286_v34  ;;  %v1822_v41 = vld [vmem:[#allocation3 + $0x66] ss:$2 sm:$0x3f]  ;;  %v1913_v42 = vmax.f32 %v1630_v39, %v1726_v40  ;;  %v301_v40 = vld [vmem:[#allocation5 + $0x1d8] sm:$0xff] }
  0x83   :  { %545 = vst.msk [vmem:[#allocation2 + $0x261] sm:$0xff] %vm499_vm3, %v287_v35  ;;  %550 = vst.msk [vmem:[#allocation2 + $0x2a1] sm:$0xff] %vm499_vm3, %v292_v36  ;;  %v294_v48 = vld [vmem:[#allocation5 + $0x1a0] sm:$0xff]  ;;  %v778_v55 = vld [vmem:[#allocation2 + $0x1e8] sm:$0xff] }
  0x84   :  { %551 = vst.msk [vmem:[#allocation2 + $0x2a9] sm:$0xff] %vm499_vm3, %v293_v37  ;;  %548 = vst.msk [vmem:[#allocation2 + $0x289] sm:$0xff] %vm499_vm3, %v290_v38  ;;  %v1961_v49 = vmax.f32 %v1913_v42, %v1822_v41  ;;  %v1632_v50 = vld [vmem:[#allocation3 + $0x78] ss:$2 sm:$0x3f]  ;;  %v922_v57 = vld [vmem:[#allocation2 + $0x228] sm:$0xff] }
  0x85   :  { %549 = vst.msk [vmem:[#allocation2 + $0x291] sm:$0xff] %vm499_vm3, %v291_v45  ;;  %554 = vst.msk [vmem:[#allocation2 + $0x2d1] sm:$0xff] %vm499_vm3, %v296_v46  ;;  %v1728_v51 = vld [vmem:[#allocation3 + $0x7b] ss:$2 sm:$0x3f]  ;;  %v923_v58 = vld [vmem:[#allocation2 + $0x230] sm:$0xff] }
  0x86   :  { %555 = vst.msk [vmem:[#allocation2 + $0x2d9] sm:$0xff] %vm499_vm3, %v297_v47  ;;  %552 = vst.msk [vmem:[#allocation2 + $0x2b9] sm:$0xff] %vm499_vm3, %v294_v48  ;;  %v1824_v52 = vld [vmem:[#allocation3 + $0x7e] ss:$2 sm:$0x3f]  ;;  %v1914_v53 = vmax.f32 %v1632_v50, %v1728_v51  ;;  %2061 = vrot.lane.b32.xlu0 %v1961_v49, %s2813_s0  ;;  %v1212_v1 = vmax.f32 %v778_v55, %v923_v58  ;;  %v3222_v5 = vld [vmem:[#allocation2 + $0x270] sm:$0xff] }
  0x87   :  { %v777_v54 = vld [vmem:[#allocation2 + $0x1e0] sm:$0xff]  ;;  %v779_v56 = vld [vmem:[#allocation2 + $0x1f0] sm:$0x3]  ;;  %v1730_v62 = vld [vmem:[#allocation3 + $0x93] ss:$2 sm:$0x3f] }
  0x88   :  { %v1962_v59 = vmax.f32 %v1914_v53, %v1824_v52  ;;  %v1634_v61 = vld [vmem:[#allocation3 + $0x90] ss:$2 sm:$0x3f]  ;;  %v1211_v63 = vmax.f32 %v777_v54, %v922_v57  ;;  %v1069_v60 = vld [vmem:[#allocation2 + $0x280] sm:$0x3]  ;;  %v295_v37 = vld [vmem:[#allocation5 + $0x1a8] sm:$0xff] }
  0x89   :  { %v1826_v2 = vld [vmem:[#allocation3 + $0x96] ss:$2 sm:$0x3f]  ;;  %v1915_v3 = vmax.f32 %v1634_v61, %v1730_v62  ;;  %v785_v10 = vld [vmem:[#allocation2 + $0x250] sm:$0x3]  ;;  %553 = vst.msk [vmem:[#allocation2 + $0x2c1] sm:$0xff] %vm499_vm3, %v295_v37 }
  0x8a   :  { %v924_v4 = vld [vmem:[#allocation2 + $0x238] sm:$0x3]  ;;  %2063 = vrot.lane.b32.xlu1 %v1962_v59, %s2813_s0  ;;  %v1355_v8 = vmax.f32 %v1211_v63, %v3222_v5  ;;  %v780_v9 = vld [vmem:[#allocation2 + $0x210] sm:$0xff]  ;;  %v782_v14 = vld [vmem:[#allocation2 + $0x220] sm:$0x3]  ;;  %559 = vst.msk [vmem:[#allocation2 + $0x309] sm:$0xff] %vm499_vm3, %v301_v40 }
  0x8b   :  { %v3225_v6 = vld [vmem:[#allocation2 + $0x278] sm:$0xff]  ;;  %v1213_v7 = vmax.f32 %v779_v56, %v924_v4  ;;  %v1963_v11 = vmax.f32 %v1915_v3, %v1826_v2  ;;  %v926_v17 = vld [vmem:[#allocation2 + $0x260] sm:$0xff]  ;;  %v927_v19 = vld [vmem:[#allocation2 + $0x268] sm:$0x3]  ;;  %194 = vst.msk [vmem:[#allocation4] sm:$0x3f] %vm193_vm4, %v2812_v0 }
  0x8c   :  { %v1356_v12 = vmax.f32 %v1212_v1, %v3225_v6  ;;  %v781_v13 = vld [vmem:[#allocation2 + $0x218] sm:$0xff]  ;;  %1499 = vst.msk [vmem:[#allocation3 + $0xa8] sm:$0xff] %vm22_vm1, %v1355_v8  ;;  %v3230_v43 = vld [vmem:[#allocation2 + $0x2a0] sm:$0xff]  ;;  %v3234_v21 = vld [vmem:[#allocation2 + $0x2a8] sm:$0xff]  ;;  %v1216_v24 = vmax.f32 %v782_v14, %v927_v19 }
  0x8d   :  { %v925_v15 = vld [vmem:[#allocation2 + $0x258] sm:$0xff]  ;;  %v1357_v16 = vmax.f32 %v1213_v7, %v1069_v60  ;;  %2065 = vrot.lane.b32.xlu0 %v1963_v11, %s2813_s0  ;;  %v1072_v22 = vld [vmem:[#allocation2 + $0x2b0] sm:$0x3]  ;;  %v1215_v23 = vmax.f32 %v781_v13, %v926_v17  ;;  %v928_v25 = vld [vmem:[#allocation2 + $0x288] sm:$0xff]  ;;  %195 = vst.msk [vmem:[#allocation4 + $0x8] sm:$0x3f] %vm193_vm4, %v2812_v0 }
  0x8e   :  { %v1214_v20 = vmax.f32 %v780_v9, %v925_v15  ;;  %1500 = vst.msk [vmem:[#allocation3 + $0xb0] sm:$0xff] %vm22_vm1, %v1356_v12  ;;  %v929_v27 = vld [vmem:[#allocation2 + $0x290] sm:$0xff]  ;;  %v930_v28 = vld [vmem:[#allocation2 + $0x298] sm:$0x3]  ;;  %v1217_v30 = vmax.f32 %v3191_v18, %v928_v25  ;;  %v1360_v32 = vmax.f32 %v1216_v24, %v1072_v22  ;;  %v1075_v34 = vld [vmem:[#allocation2 + $0x2e0] sm:$0x3] }
  0x8f   :  { %1501 = vst.msk [vmem:[#allocation3 + $0xb8] sm:$0x3] %vm25_vm2, %v1357_v16  ;;  %v1073_v29 = vld [vmem:[#allocation2 + $0x2d0] sm:$0xff]  ;;  %v1359_v31 = vmax.f32 %v1215_v23, %v3234_v21  ;;  %v1074_v33 = vld [vmem:[#allocation2 + $0x2d8] sm:$0xff]  ;;  %v1218_v35 = vmax.f32 %v3194_v44, %v929_v27  ;;  %v1219_v36 = vmax.f32 %v785_v10, %v930_v28  ;;  %v298_v44 = vld [vmem:[#allocation5 + $0x1c0] sm:$0xff] }
  0x90   :  { %v1358_v26 = vmax.f32 %v1214_v20, %v3230_v43  ;;  %v1361_v38 = vmax.f32 %v1217_v30, %v1073_v29  ;;  %v300_v39 = vld [vmem:[#allocation5 + $0x1d0] sm:$0xff]  ;;  %1504 = vst.msk [vmem:[#allocation3 + $0xd0] sm:$0x3] %vm25_vm2, %v1360_v32  ;;  %v299_v42 = vld [vmem:[#allocation5 + $0x1c8] sm:$0xff]  ;;  %v931_v45 = vld [vmem:[#allocation2 + $0x2b8] sm:$0xff] }
  0x91   :  { %1503 = vst.msk [vmem:[#allocation3 + $0xc8] sm:$0xff] %vm22_vm1, %v1359_v31  ;;  %v1362_v18 = vmax.f32 %v1218_v35, %v1074_v33  ;;  %v1363_v41 = vmax.f32 %v1219_v36, %v1075_v34  ;;  %v304_v46 = vld [vmem:[#allocation5 + $0x1f0] sm:$0xff]  ;;  %v305_v47 = vld [vmem:[#allocation5 + $0x1f8] sm:$0xff]  ;;  %v310_v48 = vld [vmem:[#allocation5 + $0x220] sm:$0xff]  ;;  %v1220_v57 = vmax.f32 %v3222_v5, %v931_v45 }
  0x92   :  { %1502 = vst.msk [vmem:[#allocation3 + $0xc0] sm:$0xff] %vm22_vm1, %v1358_v26  ;;  %1505 = vst.msk [vmem:[#allocation3 + $0xd8] sm:$0xff] %vm22_vm1, %v1361_v38  ;;  %v311_v49 = vld [vmem:[#allocation5 + $0x228] sm:$0xff]  ;;  %v316_v50 = vld [vmem:[#allocation5 + $0x250] sm:$0xff] }
  0x93   :  { %558 = vst.msk [vmem:[#allocation2 + $0x301] sm:$0xff] %vm499_vm3, %v300_v39  ;;  %556 = vst.msk [vmem:[#allocation2 + $0x2e9] sm:$0xff] %vm499_vm3, %v298_v44  ;;  %v788_v55 = vld [vmem:[#allocation2 + $0x280] sm:$0x3]  ;;  %v317_v56 = vld [vmem:[#allocation5 + $0x258] sm:$0xff] }
  0x94   :  { %557 = vst.msk [vmem:[#allocation2 + $0x2f1] sm:$0xff] %vm499_vm3, %v299_v42  ;;  %562 = vst.msk [vmem:[#allocation2 + $0x331] sm:$0xff] %vm499_vm3, %v304_v46  ;;  %v308_v58 = vld [vmem:[#allocation5 + $0x210] sm:$0xff]  ;;  %v932_v61 = vld [vmem:[#allocation2 + $0x2c0] sm:$0xff] }
  0x95   :  { %1506 = vst.msk [vmem:[#allocation3 + $0xe0] sm:$0xff] %vm22_vm1, %v1362_v18  ;;  %v1636_v51 = vld [vmem:[#allocation3 + $0xa8] ss:$2 sm:$0x3f]  ;;  %v309_v63 = vld [vmem:[#allocation5 + $0x218] sm:$0xff]  ;;  %v1221_v3 = vmax.f32 %v3225_v6, %v932_v61  ;;  %v792_v10 = vld [vmem:[#allocation2 + $0x360] sm:$0xff] }
  0x96   :  { %1507 = vst.msk [vmem:[#allocation3 + $0xe8] sm:$0x3] %vm25_vm2, %v1363_v41  ;;  %v1732_v52 = vld [vmem:[#allocation3 + $0xab] ss:$2 sm:$0x3f] }
  0x97   :  { %563 = vst.msk [vmem:[#allocation2 + $0x339] sm:$0xff] %vm499_vm3, %v305_v47  ;;  %568 = vst.msk [vmem:[#allocation2 + $0x3a9] sm:$0xff] %vm499_vm3, %v310_v48  ;;  %v1828_v53 = vld [vmem:[#allocation3 + $0xae] ss:$2 sm:$0x3f]  ;;  %v1916_v54 = vmax.f32 %v1636_v51, %v1732_v52  ;;  %v318_v52 = vld [vmem:[#allocation5 + $0x260] sm:$0xff] }
  0x98   :  { %569 = vst.msk [vmem:[#allocation2 + $0x3b1] sm:$0xff] %vm499_vm3, %v311_v49  ;;  %574 = vst.msk [vmem:[#allocation2 + $0x3f1] sm:$0xff] %vm499_vm3, %v316_v50  ;;  %v933_v62 = vld [vmem:[#allocation2 + $0x2c8] sm:$0x3]  ;;  %v791_v60 = vld [vmem:[#allocation2 + $0x2b0] sm:$0x3] }
  0x99   :  { %575 = vst.msk [vmem:[#allocation2 + $0x3f9] sm:$0xff] %vm499_vm3, %v317_v56  ;;  %v1964_v59 = vmax.f32 %v1916_v54, %v1828_v53  ;;  %566 = vst.msk [vmem:[#allocation2 + $0x391] sm:$0xff] %vm499_vm3, %v308_v58  ;;  %v1638_v1 = vld [vmem:[#allocation3 + $0xc0] ss:$2 sm:$0x3f]  ;;  %v1222_v4 = vmax.f32 %v788_v55, %v933_v62  ;;  %v320_v46 = vld [vmem:[#allocation5 + $0x270] sm:$0xff] }
  0x9a   :  { %v1734_v2 = vld [vmem:[#allocation3 + $0xc3] ss:$2 sm:$0x3f]  ;;  %567 = vst.msk [vmem:[#allocation2 + $0x399] sm:$0xff] %vm499_vm3, %v309_v63  ;;  %v794_v16 = vld [vmem:[#allocation2 + $0x370] sm:$0x3] }
  0x9b   :  { %2067 = vrot.lane.b32.xlu1 %v1964_v59, %s2813_s0  ;;  %v1830_v5 = vld [vmem:[#allocation3 + $0xc6] ss:$2 sm:$0x3f]  ;;  %v1917_v7 = vmax.f32 %v1638_v1, %v1734_v2  ;;  %v936_v25 = vld [vmem:[#allocation2 + $0x2f8] sm:$0x3]  ;;  %578 = vst.msk [vmem:[#allocation2 + $0x421] sm:$0xff] %vm499_vm3, %v320_v46 }
  0x9c   :  { %v1076_v8 = vld [vmem:[#allocation2 + $0x300] sm:$0xff]  ;;  %v1077_v9 = vld [vmem:[#allocation2 + $0x308] sm:$0xff]  ;;  %v1078_v20 = vld [vmem:[#allocation2 + $0x310] sm:$0x3]  ;;  %v1225_v32 = vmax.f32 %v791_v60, %v936_v25  ;;  %576 = vst.msk [vmem:[#allocation2 + $0x409] sm:$0xff] %vm499_vm3, %v318_v52 }
  0x9d   :  { %v1640_v11 = vld [vmem:[#allocation3 + $0xd8] ss:$2 sm:$0x3f]  ;;  %v1736_v12 = vld [vmem:[#allocation3 + $0xdb] ss:$2 sm:$0x3f]  ;;  %v1364_v13 = vmax.f32 %v1220_v57, %v1076_v8  ;;  %v1365_v14 = vmax.f32 %v1221_v3, %v1077_v9  ;;  %v1965_v17 = vmax.f32 %v1917_v7, %v1830_v5  ;;  %v1366_v23 = vmax.f32 %v1222_v4, %v1078_v20 }
  0x9e   :  { %v793_v15 = vld [vmem:[#allocation2 + $0x368] sm:$0xff]  ;;  %v1918_v6 = vmax.f32 %v1640_v11, %v1736_v12  ;;  %v935_v24 = vld [vmem:[#allocation2 + $0x2f0] sm:$0xff]  ;;  %v1080_v29 = vld [vmem:[#allocation2 + $0x338] sm:$0xff]  ;;  %196 = vst.msk [vmem:[#allocation4 + $0x10] sm:$0x3f] %vm193_vm4, %v2812_v0 }
  0x9f   :  { %v1832_v19 = vld [vmem:[#allocation3 + $0xde] ss:$2 sm:$0x3f]  ;;  %1508 = vst.msk [vmem:[#allocation3 + $0xf0] sm:$0xff] %vm22_vm1, %v1364_v13  ;;  %1509 = vst.msk [vmem:[#allocation3 + $0xf8] sm:$0xff] %vm22_vm1, %v1365_v14  ;;  %v1079_v26 = vld [vmem:[#allocation2 + $0x330] sm:$0xff]  ;;  %2069 = vrot.lane.b32.xlu0 %v1965_v17, %s2813_s0  ;;  %v1224_v31 = vmax.f32 %v3234_v21, %v935_v24 }
  0xa0   :  { %v934_v22 = vld [vmem:[#allocation2 + $0x2e8] sm:$0xff]  ;;  %v1966_v28 = vmax.f32 %v1918_v6, %v1832_v19  ;;  %v1081_v30 = vld [vmem:[#allocation2 + $0x340] sm:$0x3]  ;;  %1510 = vst.msk [vmem:[#allocation3 + $0x100] sm:$0x3] %vm25_vm2, %v1366_v23  ;;  %v938_v35 = vld [vmem:[#allocation2 + $0x3b0] sm:$0xff] }
  0xa1   :  { %v1223_v27 = vmax.f32 %v3230_v43, %v934_v22  ;;  %v937_v33 = vld [vmem:[#allocation2 + $0x3a8] sm:$0xff]  ;;  %v939_v36 = vld [vmem:[#allocation2 + $0x3b8] sm:$0x3]  ;;  %v3269_v37 = vld [vmem:[#allocation2 + $0x3f0] sm:$0xff]  ;;  %v1368_v43 = vmax.f32 %v1224_v31, %v1080_v29  ;;  %v1369_v39 = vmax.f32 %v1225_v32, %v1081_v30  ;;  %v1227_v41 = vmax.f32 %v793_v15, %v938_v35  ;;  %197 = vst.msk [vmem:[#allocation4 + $0x18] sm:$0x3f] %vm193_vm4, %v2812_v0 }
  0xa2   :  { %v1226_v38 = vmax.f32 %v792_v10, %v937_v33  ;;  %2071 = vrot.lane.b32.xlu1 %v1966_v28, %s2813_s0  ;;  %v3272_v40 = vld [vmem:[#allocation2 + $0x3f8] sm:$0xff]  ;;  %v1084_v18 = vld [vmem:[#allocation2 + $0x400] sm:$0x3]  ;;  %v1228_v44 = vmax.f32 %v794_v16, %v939_v36  ;;  %v315_v45 = vld [vmem:[#allocation5 + $0x248] sm:$0xff]  ;;  %198 = vst.msk [vmem:[#allocation4 + $0x20] sm:$0x3f] %vm193_vm4, %v2812_v0 }
  0xa3   :  { %v1367_v34 = vmax.f32 %v1223_v27, %v1079_v26  ;;  %v314_v21 = vld [vmem:[#allocation5 + $0x240] sm:$0xff]  ;;  %v321_v47 = vld [vmem:[#allocation5 + $0x278] sm:$0xff]  ;;  %1512 = vst.msk [vmem:[#allocation3 + $0x110] sm:$0xff] %vm22_vm1, %v1368_v43  ;;  %v1371_v48 = vmax.f32 %v1227_v41, %v3272_v40  ;;  %v312_v50 = vld [vmem:[#allocation5 + $0x230] sm:$0xff] }
  0xa4   :  { %v1370_v42 = vmax.f32 %v1226_v38, %v3269_v37  ;;  %572 = vst.msk [vmem:[#allocation2 + $0x3d9] sm:$0xff] %vm499_vm3, %v314_v21  ;;  %v1372_v49 = vmax.f32 %v1228_v44, %v1084_v18  ;;  %573 = vst.msk [vmem:[#allocation2 + $0x3e1] sm:$0xff] %vm499_vm3, %v315_v45  ;;  %v313_v51 = vld [vmem:[#allocation5 + $0x238] sm:$0xff]  ;;  %v795_v55 = vld [vmem:[#allocation2 + $0x390] sm:$0xff] }
  0xa5   :  { %1511 = vst.msk [vmem:[#allocation3 + $0x108] sm:$0xff] %vm22_vm1, %v1367_v34  ;;  %1515 = vst.msk [vmem:[#allocation3 + $0x128] sm:$0xff] %vm22_vm1, %v1371_v48  ;;  %v319_v57 = vld [vmem:[#allocation5 + $0x268] sm:$0xff]  ;;  %v324_v58 = vld [vmem:[#allocation5 + $0x290] sm:$0xff] }
  0xa6   :  { %1513 = vst.msk [vmem:[#allocation3 + $0x118] sm:$0x3] %vm25_vm2, %v1369_v39  ;;  %v1642_v53 = vld [vmem:[#allocation3 + $0xf0] ss:$2 sm:$0x3f]  ;;  %v322_v63 = vld [vmem:[#allocation5 + $0x280] sm:$0xff] }
  0xa7   :  { %579 = vst.msk [vmem:[#allocation2 + $0x429] sm:$0xff] %vm499_vm3, %v321_v47  ;;  %v1738_v54 = vld [vmem:[#allocation3 + $0xf3] ss:$2 sm:$0x3f]  ;;  %570 = vst.msk [vmem:[#allocation2 + $0x3c1] sm:$0xff] %vm499_vm3, %v312_v50  ;;  %v323_v1 = vld [vmem:[#allocation5 + $0x288] sm:$0xff] }
  0xa8   :  { %1514 = vst.msk [vmem:[#allocation3 + $0x120] sm:$0xff] %vm22_vm1, %v1370_v42  ;;  %v1919_v56 = vmax.f32 %v1642_v53, %v1738_v54  ;;  %v325_v59 = vld [vmem:[#allocation5 + $0x298] sm:$0xff]  ;;  %v797_v3 = vld [vmem:[#allocation2 + $0x3a0] sm:$0x3]  ;;  %v328_v4 = vld [vmem:[#allocation5 + $0x2b0] sm:$0xff] }
  0xa9   :  { %1516 = vst.msk [vmem:[#allocation3 + $0x130] sm:$0x3] %vm25_vm2, %v1372_v49  ;;  %v1834_v61 = vld [vmem:[#allocation3 + $0xf6] ss:$2 sm:$0x3f]  ;;  %v327_v8 = vld [vmem:[#allocation5 + $0x2a8] sm:$0xff] }
  0xaa   :  { %571 = vst.msk [vmem:[#allocation2 + $0x3c9] sm:$0xff] %vm499_vm3, %v313_v51  ;;  %v796_v62 = vld [vmem:[#allocation2 + $0x398] sm:$0xff]  ;;  %577 = vst.msk [vmem:[#allocation2 + $0x411] sm:$0xff] %vm499_vm3, %v319_v57  ;;  %v1967_v2 = vmax.f32 %v1919_v56, %v1834_v61  ;;  %v326_v7 = vld [vmem:[#allocation5 + $0x2a0] sm:$0xff] }
  0xab   :  { %582 = vst.msk [vmem:[#allocation2 + $0x451] sm:$0xff] %vm499_vm3, %v324_v58  ;;  %583 = vst.msk [vmem:[#allocation2 + $0x459] sm:$0xff] %vm499_vm3, %v325_v59  ;;  %v329_v60 = vld [vmem:[#allocation5 + $0x2b8] sm:$0xff]  ;;  %v941_v14 = vld [vmem:[#allocation2 + $0x3e0] sm:$0xff] }
  0xac   :  { %580 = vst.msk [vmem:[#allocation2 + $0x439] sm:$0xff] %vm499_vm3, %v322_v63  ;;  %581 = vst.msk [vmem:[#allocation2 + $0x441] sm:$0xff] %vm499_vm3, %v323_v1  ;;  %v940_v5 = vld [vmem:[#allocation2 + $0x3d8] sm:$0xff]  ;;  %2073 = vrot.lane.b32.xlu0 %v1967_v2, %s2813_s0  ;;  %v1644_v9 = vld [vmem:[#allocation3 + $0x108] ss:$2 sm:$0x3f]  ;;  %v1230_v19 = vmax.f32 %v796_v62, %v941_v14 }
  0xad   :  { %586 = vst.msk [vmem:[#allocation2 + $0x481] sm:$0xff] %vm499_vm3, %v328_v4  ;;  %587 = vst.msk [vmem:[#allocation2 + $0x489] sm:$0xff] %vm499_vm3, %v329_v60  ;;  %v1740_v10 = vld [vmem:[#allocation3 + $0x10b] ss:$2 sm:$0x3f]  ;;  %v1229_v11 = vmax.f32 %v795_v55, %v940_v5  ;;  %v3299_v24 = vld [vmem:[#allocation2 + $0x420] sm:$0xff] }
  0xae   :  { %584 = vst.msk [vmem:[#allocation2 + $0x469] sm:$0xff] %vm499_vm3, %v326_v7  ;;  %585 = vst.msk [vmem:[#allocation2 + $0x471] sm:$0xff] %vm499_vm3, %v327_v8  ;;  %v1836_v12 = vld [vmem:[#allocation3 + $0x10e] ss:$2 sm:$0x3f]  ;;  %v1920_v13 = vmax.f32 %v1644_v9, %v1740_v10  ;;  %v798_v29 = vld [vmem:[#allocation2 + $0x3c0] sm:$0xff] }
  0xaf   :  { %v942_v15 = vld [vmem:[#allocation2 + $0x3e8] sm:$0x3]  ;;  %v1087_v26 = vld [vmem:[#allocation2 + $0x430] sm:$0x3]  ;;  %v1373_v27 = vmax.f32 %v1229_v11, %v3299_v24  ;;  %v803_v31 = vld [vmem:[#allocation2 + $0x400] sm:$0x3] }
  0xb0   :  { %v1646_v16 = vld [vmem:[#allocation3 + $0x120] ss:$2 sm:$0x3f]  ;;  %v1742_v17 = vld [vmem:[#allocation3 + $0x123] ss:$2 sm:$0x3f]  ;;  %v1231_v6 = vmax.f32 %v797_v3, %v942_v15  ;;  %v1968_v20 = vmax.f32 %v1920_v13, %v1836_v12 }
  0xb1   :  { %v1838_v22 = vld [vmem:[#allocation3 + $0x126] ss:$2 sm:$0x3f]  ;;  %v1921_v23 = vmax.f32 %v1646_v16, %v1742_v17  ;;  %1517 = vst.msk [vmem:[#allocation3 + $0x138] sm:$0xff] %vm22_vm1, %v1373_v27  ;;  %v945_v38 = vld [vmem:[#allocation2 + $0x418] sm:$0x3] }
  0xb2   :  { %v3301_v25 = vld [vmem:[#allocation2 + $0x428] sm:$0xff]  ;;  %2075 = vrot.lane.b32.xlu1 %v1968_v20, %s2813_s0  ;;  %v1375_v33 = vmax.f32 %v1231_v6, %v1087_v26  ;;  %v800_v34 = vld [vmem:[#allocation2 + $0x3d0] sm:$0x3]  ;;  %v3310_v39 = vld [vmem:[#allocation2 + $0x458] sm:$0xff]  ;;  %199 = vst.msk [vmem:[#allocation4 + $0x28] sm:$0x3f] %vm193_vm4, %v2812_v0 }
  0xb3   :  { %v1374_v28 = vmax.f32 %v1230_v19, %v3301_v25  ;;  %v799_v30 = vld [vmem:[#allocation2 + $0x3c8] sm:$0xff]  ;;  %v1969_v32 = vmax.f32 %v1921_v23, %v1838_v22  ;;  %v944_v36 = vld [vmem:[#allocation2 + $0x410] sm:$0xff]  ;;  %v1090_v44 = vld [vmem:[#allocation2 + $0x460] sm:$0x3]  ;;  %v1234_v21 = vmax.f32 %v800_v34, %v945_v38  ;;  %200 = vst.msk [vmem:[#allocation4 + $0x30] sm:$0x3f] %vm193_vm4, %v2812_v0 }
  0xb4   :  { %v943_v35 = vld [vmem:[#allocation2 + $0x408] sm:$0xff]  ;;  %v3308_v43 = vld [vmem:[#allocation2 + $0x450] sm:$0xff]  ;;  %v1233_v41 = vmax.f32 %v799_v30, %v944_v36  ;;  %1519 = vst.msk [vmem:[#allocation3 + $0x148] sm:$0x3] %vm25_vm2, %v1375_v33  ;;  %v946_v42 = vld [vmem:[#allocation2 + $0x438] sm:$0xff] }
  0xb5   :  { %1518 = vst.msk [vmem:[#allocation3 + $0x140] sm:$0xff] %vm22_vm1, %v1374_v28  ;;  %v1232_v18 = vmax.f32 %v798_v29, %v943_v35  ;;  %2077 = vrot.lane.b32.xlu0 %v1969_v32, %s2813_s0  ;;  %v947_v45 = vld [vmem:[#allocation2 + $0x440] sm:$0xff]  ;;  %v948_v48 = vld [vmem:[#allocation2 + $0x448] sm:$0x3]  ;;  %v1235_v51 = vmax.f32 %v3269_v37, %v946_v42  ;;  %v1378_v53 = vmax.f32 %v1234_v21, %v1090_v44  ;;  %v1093_v54 = vld [vmem:[#allocation2 + $0x490] sm:$0x3] }
  0xb6   :  { %v1377_v47 = vmax.f32 %v1233_v41, %v3310_v39  ;;  %v1091_v49 = vld [vmem:[#allocation2 + $0x480] sm:$0xff]  ;;  %v1092_v50 = vld [vmem:[#allocation2 + $0x488] sm:$0xff]  ;;  %v1236_v52 = vmax.f32 %v3272_v40, %v947_v45  ;;  %v1237_v55 = vmax.f32 %v803_v31, %v948_v48  ;;  %v332_v56 = vld [vmem:[#allocation5 + $0x2d0] sm:$0xff]  ;;  %201 = vst.msk [vmem:[#allocation4 + $0x38] sm:$0x3f] %vm193_vm4, %v2812_v0 }
  0xb7   :  { %v1376_v46 = vmax.f32 %v1232_v18, %v3308_v43  ;;  %v333_v57 = vld [vmem:[#allocation5 + $0x2d8] sm:$0xff]  ;;  %v1379_v58 = vmax.f32 %v1235_v51, %v1091_v49  ;;  %590 = vst.msk [vmem:[#allocation2 + $0x4b1] sm:$0xff] %vm499_vm3, %v332_v56  ;;  %v949_v61 = vld [vmem:[#allocation2 + $0x468] sm:$0xff]  ;;  %v950_v40 = vld [vmem:[#allocation2 + $0x470] sm:$0xff] }
  0xb8   :  { %1521 = vst.msk [vmem:[#allocation3 + $0x158] sm:$0xff] %vm22_vm1, %v1377_v47  ;;  %v1380_v59 = vmax.f32 %v1236_v52, %v1092_v50  ;;  %v1381_v37 = vmax.f32 %v1237_v55, %v1093_v54  ;;  %v330_v62 = vld [vmem:[#allocation5 + $0x2c0] sm:$0xff]  ;;  %v331_v63 = vld [vmem:[#allocation5 + $0x2c8] sm:$0xff]  ;;  %v806_v1 = vld [vmem:[#allocation2 + $0x430] sm:$0x3]  ;;  %v1238_v11 = vmax.f32 %v3299_v24, %v949_v61  ;;  %v1239_v12 = vmax.f32 %v3301_v25, %v950_v40 }
  0xb9   :  { %1520 = vst.msk [vmem:[#allocation3 + $0x150] sm:$0xff] %vm22_vm1, %v1376_v46  ;;  %1523 = vst.msk [vmem:[#allocation3 + $0x168] sm:$0xff] %vm22_vm1, %v1379_v58  ;;  %v951_v2 = vld [vmem:[#allocation2 + $0x478] sm:$0x3]  ;;  %v336_v3 = vld [vmem:[#allocation5 + $0x2f0] sm:$0xff] }
  0xba   :  { %591 = vst.msk [vmem:[#allocation2 + $0x4b9] sm:$0xff] %vm499_vm3, %v333_v57  ;;  %v337_v4 = vld [vmem:[#allocation5 + $0x2f8] sm:$0xff]  ;;  %588 = vst.msk [vmem:[#allocation2 + $0x499] sm:$0xff] %vm499_vm3, %v330_v62  ;;  %v342_v9 = vld [vmem:[#allocation5 + $0x320] sm:$0xff]  ;;  %v1240_v6 = vmax.f32 %v806_v1, %v951_v2 }
  0xbb   :  { %1522 = vst.msk [vmem:[#allocation3 + $0x160] sm:$0x3] %vm25_vm2, %v1378_v53  ;;  %1525 = vst.msk [vmem:[#allocation3 + $0x178] sm:$0x3] %vm25_vm2, %v1381_v37  ;;  %v343_v10 = vld [vmem:[#allocation5 + $0x328] sm:$0xff]  ;;  %v348_v13 = vld [vmem:[#allocation5 + $0x350] sm:$0xff] }
  0xbc   :  { %1524 = vst.msk [vmem:[#allocation3 + $0x170] sm:$0xff] %vm22_vm1, %v1380_v59  ;;  %v1648_v60 = vld [vmem:[#allocation3 + $0x138] ss:$2 sm:$0x3f]  ;;  %v340_v16 = vld [vmem:[#allocation5 + $0x310] sm:$0xff]  ;;  %v347_v62 = vld [vmem:[#allocation5 + $0x348] sm:$0xff] }
  0xbd   :  { %589 = vst.msk [vmem:[#allocation2 + $0x4a1] sm:$0xff] %vm499_vm3, %v331_v63  ;;  %v1744_v5 = vld [vmem:[#allocation3 + $0x13b] ss:$2 sm:$0x3f]  ;;  %594 = vst.msk [vmem:[#allocation2 + $0x4e1] sm:$0xff] %vm499_vm3, %v336_v3  ;;  %v810_v26 = vld [vmem:[#allocation2 + $0x510] sm:$0xff] }
  0xbe   :  { %595 = vst.msk [vmem:[#allocation2 + $0x4e9] sm:$0xff] %vm499_vm3, %v337_v4  ;;  %v1840_v7 = vld [vmem:[#allocation3 + $0x13e] ss:$2 sm:$0x3f]  ;;  %v1922_v8 = vmax.f32 %v1648_v60, %v1744_v5  ;;  %600 = vst.msk [vmem:[#allocation2 + $0x559] sm:$0xff] %vm499_vm3, %v342_v9  ;;  %v1094_v24 = vld [vmem:[#allocation2 + $0x4b0] sm:$0xff] }
  0xbf   :  { %v349_v14 = vld [vmem:[#allocation5 + $0x358] sm:$0xff]  ;;  %601 = vst.msk [vmem:[#allocation2 + $0x561] sm:$0xff] %vm499_vm3, %v343_v10  ;;  %606 = vst.msk [vmem:[#allocation2 + $0x5a1] sm:$0xff] %vm499_vm3, %v348_v13  ;;  %v809_v20 = vld [vmem:[#allocation2 + $0x460] sm:$0x3]  ;;  %v1382_v29 = vmax.f32 %v1238_v11, %v1094_v24 }
  0xc0   :  { %v1970_v15 = vmax.f32 %v1922_v8, %v1840_v7  ;;  %607 = vst.msk [vmem:[#allocation2 + $0x5a9] sm:$0xff] %vm499_vm3, %v349_v14  ;;  %v1650_v17 = vld [vmem:[#allocation3 + $0x150] ss:$2 sm:$0x3f]  ;;  %598 = vst.msk [vmem:[#allocation2 + $0x541] sm:$0xff] %vm499_vm3, %v340_v16  ;;  %v346_v40 = vld [vmem:[#allocation5 + $0x340] sm:$0xff] }
  0xc1   :  { %v1746_v19 = vld [vmem:[#allocation3 + $0x153] ss:$2 sm:$0x3f]  ;;  %v812_v32 = vld [vmem:[#allocation2 + $0x520] sm:$0x3]  ;;  %1526 = vst.msk [vmem:[#allocation3 + $0x180] sm:$0xff] %vm22_vm1, %v1382_v29 }
  0xc2   :  { %2079 = vrot.lane.b32.xlu1 %v1970_v15, %s2813_s0  ;;  %v1842_v22 = vld [vmem:[#allocation3 + $0x156] ss:$2 sm:$0x3f]  ;;  %v1923_v23 = vmax.f32 %v1650_v17, %v1746_v19  ;;  %604 = vst.msk [vmem:[#allocation2 + $0x589] sm:$0xff] %vm499_vm3, %v346_v40  ;;  %605 = vst.msk [vmem:[#allocation2 + $0x591] sm:$0xff] %vm499_vm3, %v347_v62  ;;  %v351_v7 = vld [vmem:[#allocation5 + $0x368] sm:$0xff] }
  0xc3   :  { %v1095_v25 = vld [vmem:[#allocation2 + $0x4b8] sm:$0xff]  ;;  %v1652_v27 = vld [vmem:[#allocation3 + $0x168] ss:$2 sm:$0x3f]  ;;  %v1096_v36 = vld [vmem:[#allocation2 + $0x4c0] sm:$0x3] }
  0xc4   :  { %v1748_v28 = vld [vmem:[#allocation3 + $0x16b] ss:$2 sm:$0x3f]  ;;  %v1383_v30 = vmax.f32 %v1239_v12, %v1095_v25  ;;  %v811_v31 = vld [vmem:[#allocation2 + $0x518] sm:$0xff]  ;;  %v1971_v33 = vmax.f32 %v1923_v23, %v1842_v22  ;;  %v1384_v18 = vmax.f32 %v1240_v6, %v1096_v36  ;;  %v953_v41 = vld [vmem:[#allocation2 + $0x4a0] sm:$0xff]  ;;  %609 = vst.msk [vmem:[#allocation2 + $0x5c1] sm:$0xff] %vm499_vm3, %v351_v7 }
  0xc5   :  { %v1844_v34 = vld [vmem:[#allocation3 + $0x16e] ss:$2 sm:$0x3f]  ;;  %v1924_v35 = vmax.f32 %v1652_v27, %v1748_v28  ;;  %v954_v44 = vld [vmem:[#allocation2 + $0x4a8] sm:$0x3]  ;;  %v1097_v21 = vld [vmem:[#allocation2 + $0x4e0] sm:$0xff]  ;;  %v1242_v48 = vmax.f32 %v3310_v39, %v953_v41 }
  0xc6   :  { %v952_v38 = vld [vmem:[#allocation2 + $0x498] sm:$0xff]  ;;  %1527 = vst.msk [vmem:[#allocation3 + $0x188] sm:$0xff] %vm22_vm1, %v1383_v30  ;;  %2081 = vrot.lane.b32.xlu0 %v1971_v33, %s2813_s0  ;;  %v1098_v46 = vld [vmem:[#allocation2 + $0x4e8] sm:$0xff]  ;;  %v1099_v47 = vld [vmem:[#allocation2 + $0x4f0] sm:$0x3]  ;;  %v1243_v49 = vmax.f32 %v809_v20, %v954_v44 }
  0xc7   :  { %v1241_v42 = vmax.f32 %v3308_v43, %v952_v38  ;;  %v1972_v45 = vmax.f32 %v1924_v35, %v1844_v34  ;;  %v955_v50 = vld [vmem:[#allocation2 + $0x558] sm:$0xff]  ;;  %1528 = vst.msk [vmem:[#allocation3 + $0x190] sm:$0x3] %vm25_vm2, %v1384_v18  ;;  %v956_v52 = vld [vmem:[#allocation2 + $0x560] sm:$0xff]  ;;  %v957_v53 = vld [vmem:[#allocation2 + $0x568] sm:$0x3]  ;;  %v1386_v43 = vmax.f32 %v1242_v48, %v1098_v46 }
  0xc8   :  { %v3344_v54 = vld [vmem:[#allocation2 + $0x5a0] sm:$0xff]  ;;  %v1244_v55 = vmax.f32 %v810_v26, %v955_v50  ;;  %v1387_v56 = vmax.f32 %v1243_v49, %v1099_v47  ;;  %v3347_v57 = vld [vmem:[#allocation2 + $0x5a8] sm:$0xff]  ;;  %v1102_v58 = vld [vmem:[#allocation2 + $0x5b0] sm:$0x3]  ;;  %v1245_v59 = vmax.f32 %v811_v31, %v956_v52  ;;  %v1246_v61 = vmax.f32 %v812_v32, %v957_v53  ;;  %202 = vst.msk [vmem:[#allocation4 + $0x40] sm:$0x3f] %vm193_vm4, %v2812_v0 }
  0xc9   :  { %v1385_v51 = vmax.f32 %v1241_v42, %v1097_v21  ;;  %2083 = vrot.lane.b32.xlu1 %v1972_v45, %s2813_s0  ;;  %v341_v39 = vld [vmem:[#allocation5 + $0x318] sm:$0xff]  ;;  %v352_v63 = vld [vmem:[#allocation5 + $0x370] sm:$0xff]  ;;  %1530 = vst.msk [vmem:[#allocation3 + $0x1a0] sm:$0xff] %vm22_vm1, %v1386_v43  ;;  %v350_v5 = vld [vmem:[#allocation5 + $0x360] sm:$0xff] }
  0xca   :  { %v1388_v37 = vmax.f32 %v1244_v55, %v3344_v54  ;;  %599 = vst.msk [vmem:[#allocation2 + $0x549] sm:$0xff] %vm499_vm3, %v341_v39  ;;  %v1389_v1 = vmax.f32 %v1245_v59, %v3347_v57  ;;  %v1390_v2 = vmax.f32 %v1246_v61, %v1102_v58  ;;  %v353_v3 = vld [vmem:[#allocation5 + $0x378] sm:$0xff]  ;;  %610 = vst.msk [vmem:[#allocation2 + $0x5d1] sm:$0xff] %vm499_vm3, %v352_v63  ;;  %v344_v4 = vld [vmem:[#allocation5 + $0x330] sm:$0xff] }
  0xcb   :  { %1529 = vst.msk [vmem:[#allocation3 + $0x198] sm:$0xff] %vm22_vm1, %v1385_v51  ;;  %v345_v60 = vld [vmem:[#allocation5 + $0x338] sm:$0xff]  ;;  %v356_v11 = vld [vmem:[#allocation5 + $0x390] sm:$0xff]  ;;  %v354_v13 = vld [vmem:[#allocation5 + $0x380] sm:$0xff] }
  0xcc   :  { %1531 = vst.msk [vmem:[#allocation3 + $0x1a8] sm:$0x3] %vm25_vm2, %v1387_v56  ;;  %1534 = vst.msk [vmem:[#allocation3 + $0x1c0] sm:$0x3] %vm25_vm2, %v1390_v2  ;;  %v357_v12 = vld [vmem:[#allocation5 + $0x398] sm:$0xff]  ;;  %v355_v15 = vld [vmem:[#allocation5 + $0x388] sm:$0xff] }
  0xcd   :  { %1532 = vst.msk [vmem:[#allocation3 + $0x1b0] sm:$0xff] %vm22_vm1, %v1388_v37  ;;  %v1654_v8 = vld [vmem:[#allocation3 + $0x180] ss:$2 sm:$0x3f]  ;;  %1533 = vst.msk [vmem:[#allocation3 + $0x1b8] sm:$0xff] %vm22_vm1, %v1389_v1  ;;  %v360_v16 = vld [vmem:[#allocation5 + $0x3b0] sm:$0xff] }
  0xce   :  { %611 = vst.msk [vmem:[#allocation2 + $0x5d9] sm:$0xff] %vm499_vm3, %v353_v3  ;;  %602 = vst.msk [vmem:[#allocation2 + $0x571] sm:$0xff] %vm499_vm3, %v344_v4  ;;  %v1750_v9 = vld [vmem:[#allocation3 + $0x183] ss:$2 sm:$0x3f]  ;;  %v361_v6 = vld [vmem:[#allocation5 + $0x3b8] sm:$0xff] }
  0xcf   :  { %603 = vst.msk [vmem:[#allocation2 + $0x579] sm:$0xff] %vm499_vm3, %v345_v60  ;;  %608 = vst.msk [vmem:[#allocation2 + $0x5b9] sm:$0xff] %vm499_vm3, %v350_v5  ;;  %v1925_v10 = vmax.f32 %v1654_v8, %v1750_v9  ;;  %v1846_v14 = vld [vmem:[#allocation3 + $0x186] ss:$2 sm:$0x3f] }
  0xd0   :  { %614 = vst.msk [vmem:[#allocation2 + $0x601] sm:$0xff] %vm499_vm3, %v356_v11  ;;  %615 = vst.msk [vmem:[#allocation2 + $0x609] sm:$0xff] %vm499_vm3, %v357_v12  ;;  %v813_v19 = vld [vmem:[#allocation2 + $0x540] sm:$0xff]  ;;  %v359_v24 = vld [vmem:[#allocation5 + $0x3a8] sm:$0xff] }
  0xd1   :  { %612 = vst.msk [vmem:[#allocation2 + $0x5e9] sm:$0xff] %vm499_vm3, %v354_v13  ;;  %v1973_v17 = vmax.f32 %v1925_v10, %v1846_v14  ;;  %613 = vst.msk [vmem:[#allocation2 + $0x5f1] sm:$0xff] %vm499_vm3, %v355_v15  ;;  %v358_v20 = vld [vmem:[#allocation5 + $0x3a0] sm:$0xff]  ;;  %v814_v22 = vld [vmem:[#allocation2 + $0x548] sm:$0xff] }
  0xd2   :  { %618 = vst.msk [vmem:[#allocation2 + $0x631] sm:$0xff] %vm499_vm3, %v360_v16  ;;  %v815_v23 = vld [vmem:[#allocation2 + $0x550] sm:$0x3]  ;;  %619 = vst.msk [vmem:[#allocation2 + $0x639] sm:$0xff] %vm499_vm3, %v361_v6  ;;  %v958_v29 = vld [vmem:[#allocation2 + $0x588] sm:$0xff] }
  0xd3   :  { %616 = vst.msk [vmem:[#allocation2 + $0x619] sm:$0xff] %vm499_vm3, %v358_v20  ;;  %2085 = vrot.lane.b32.xlu0 %v1973_v17, %s2813_s0  ;;  %v1656_v25 = vld [vmem:[#allocation3 + $0x198] ss:$2 sm:$0x3f]  ;;  %617 = vst.msk [vmem:[#allocation2 + $0x621] sm:$0xff] %vm499_vm3, %v359_v24  ;;  %v959_v30 = vld [vmem:[#allocation2 + $0x590] sm:$0xff]  ;;  %v1247_v33 = vmax.f32 %v813_v19, %v958_v29 }
  0xd4   :  { %v1752_v26 = vld [vmem:[#allocation3 + $0x19b] ss:$2 sm:$0x3f]  ;;  %v1848_v27 = vld [vmem:[#allocation3 + $0x19e] ss:$2 sm:$0x3f]  ;;  %v1248_v34 = vmax.f32 %v814_v22, %v959_v30 }
  0xd5   :  { %v1926_v28 = vmax.f32 %v1656_v25, %v1752_v26  ;;  %v1658_v31 = vld [vmem:[#allocation3 + $0x1b0] ss:$2 sm:$0x3f]  ;;  %v1754_v32 = vld [vmem:[#allocation3 + $0x1b3] ss:$2 sm:$0x3f] }
  0xd6   :  { %v1850_v36 = vld [vmem:[#allocation3 + $0x1b6] ss:$2 sm:$0x3f]  ;;  %v1927_v38 = vmax.f32 %v1658_v31, %v1754_v32  ;;  %v821_v47 = vld [vmem:[#allocation2 + $0x5b0] sm:$0x3]  ;;  %v363_v17 = vld [vmem:[#allocation5 + $0x3c8] sm:$0xff] }
  0xd7   :  { %v1974_v35 = vmax.f32 %v1926_v28, %v1848_v27  ;;  %v960_v18 = vld [vmem:[#allocation2 + $0x598] sm:$0x3]  ;;  %v3375_v41 = vld [vmem:[#allocation2 + $0x5d0] sm:$0xff]  ;;  %v1105_v21 = vld [vmem:[#allocation2 + $0x5e0] sm:$0x3]  ;;  %621 = vst.msk [vmem:[#allocation2 + $0x651] sm:$0xff] %vm499_vm3, %v363_v17 }
  0xd8   :  { %v3377_v44 = vld [vmem:[#allocation2 + $0x5d8] sm:$0xff]  ;;  %v1249_v42 = vmax.f32 %v815_v23, %v960_v18  ;;  %v1391_v45 = vmax.f32 %v1247_v33, %v3375_v41  ;;  %v816_v46 = vld [vmem:[#allocation2 + $0x570] sm:$0xff]  ;;  %v1975_v48 = vmax.f32 %v1927_v38, %v1850_v36  ;;  %v818_v51 = vld [vmem:[#allocation2 + $0x580] sm:$0x3]  ;;  %203 = vst.msk [vmem:[#allocation4 + $0x48] sm:$0x3f] %vm193_vm4, %v2812_v0 }
  0xd9   :  { %2087 = vrot.lane.b32.xlu1 %v1974_v35, %s2813_s0  ;;  %v1392_v49 = vmax.f32 %v1248_v34, %v3377_v44  ;;  %v817_v50 = vld [vmem:[#allocation2 + $0x578] sm:$0xff]  ;;  %v962_v55 = vld [vmem:[#allocation2 + $0x5c0] sm:$0xff]  ;;  %v963_v43 = vld [vmem:[#allocation2 + $0x5c8] sm:$0x3]  ;;  %204 = vst.msk [vmem:[#allocation4 + $0x50] sm:$0x3f] %vm193_vm4, %v2812_v0 }
  0xda   :  { %v961_v52 = vld [vmem:[#allocation2 + $0x5b8] sm:$0xff]  ;;  %v1393_v53 = vmax.f32 %v1249_v42, %v1105_v21  ;;  %1535 = vst.msk [vmem:[#allocation3 + $0x1c8] sm:$0xff] %vm22_vm1, %v1391_v45  ;;  %v3383_v56 = vld [vmem:[#allocation2 + $0x600] sm:$0xff]  ;;  %2089 = vrot.lane.b32.xlu0 %v1975_v48, %s2813_s0  ;;  %v3387_v59 = vld [vmem:[#allocation2 + $0x608] sm:$0xff]  ;;  %v1251_v39 = vmax.f32 %v817_v50, %v962_v55  ;;  %v1252_v37 = vmax.f32 %v818_v51, %v963_v43 }
  0xdb   :  { %v1250_v58 = vmax.f32 %v816_v46, %v961_v52  ;;  %1536 = vst.msk [vmem:[#allocation3 + $0x1d0] sm:$0xff] %vm22_vm1, %v1392_v49  ;;  %v1108_v61 = vld [vmem:[#allocation2 + $0x610] sm:$0x3]  ;;  %v964_v40 = vld [vmem:[#allocation2 + $0x5e8] sm:$0xff]  ;;  %v966_v1 = vld [vmem:[#allocation2 + $0x5f8] sm:$0x3] }
  0xdc   :  { %1537 = vst.msk [vmem:[#allocation3 + $0x1d8] sm:$0x3] %vm25_vm2, %v1393_v53  ;;  %v965_v63 = vld [vmem:[#allocation2 + $0x5f0] sm:$0xff]  ;;  %v1253_v3 = vmax.f32 %v3344_v54, %v964_v40  ;;  %v1395_v4 = vmax.f32 %v1251_v39, %v3387_v59  ;;  %v1396_v60 = vmax.f32 %v1252_v37, %v1108_v61  ;;  %v1110_v5 = vld [vmem:[#allocation2 + $0x638] sm:$0xff]  ;;  %v1111_v7 = vld [vmem:[#allocation2 + $0x640] sm:$0x3]  ;;  %v1255_v9 = vmax.f32 %v821_v47, %v966_v1 }
  0xdd   :  { %v1394_v62 = vmax.f32 %v1250_v58, %v3383_v56  ;;  %v1109_v2 = vld [vmem:[#allocation2 + $0x630] sm:$0xff]  ;;  %v1254_v8 = vmax.f32 %v3347_v57, %v965_v63  ;;  %v365_v12 = vld [vmem:[#allocation5 + $0x3d8] sm:$0xff]  ;;  %v824_v14 = vld [vmem:[#allocation2 + $0x5e0] sm:$0x3]  ;;  %205 = vst.msk [vmem:[#allocation4 + $0x58] sm:$0x3f] %vm193_vm4, %v2812_v0 }
  0xde   :  { %v364_v10 = vld [vmem:[#allocation5 + $0x3d0] sm:$0xff]  ;;  %v1397_v11 = vmax.f32 %v1253_v3, %v1109_v2  ;;  %1539 = vst.msk [vmem:[#allocation3 + $0x1e8] sm:$0xff] %vm22_vm1, %v1395_v4  ;;  %v1399_v13 = vmax.f32 %v1255_v9, %v1111_v7  ;;  %v967_v15 = vld [vmem:[#allocation2 + $0x618] sm:$0xff]  ;;  %v968_v16 = vld [vmem:[#allocation2 + $0x620] sm:$0xff] }
  0xdf   :  { %1538 = vst.msk [vmem:[#allocation3 + $0x1e0] sm:$0xff] %vm22_vm1, %v1394_v62  ;;  %v1398_v54 = vmax.f32 %v1254_v8, %v1110_v5  ;;  %v362_v57 = vld [vmem:[#allocation5 + $0x3c0] sm:$0xff]  ;;  %v368_v19 = vld [vmem:[#allocation5 + $0x3f0] sm:$0xff]  ;;  %v369_v6 = vld [vmem:[#allocation5 + $0x3f8] sm:$0xff]  ;;  %v1256_v26 = vmax.f32 %v3375_v41, %v967_v15  ;;  %v1257_v31 = vmax.f32 %v3377_v44, %v968_v16 }
  0xe0   :  { %622 = vst.msk [vmem:[#allocation2 + $0x661] sm:$0xff] %vm499_vm3, %v364_v10  ;;  %623 = vst.msk [vmem:[#allocation2 + $0x669] sm:$0xff] %vm499_vm3, %v365_v12  ;;  %v969_v20 = vld [vmem:[#allocation2 + $0x628] sm:$0x3]  ;;  %v374_v22 = vld [vmem:[#allocation5 + $0x420] sm:$0xff] }
  0xe1   :  { %1540 = vst.msk [vmem:[#allocation3 + $0x1f0] sm:$0x3] %vm25_vm2, %v1396_v60  ;;  %1543 = vst.msk [vmem:[#allocation3 + $0x208] sm:$0x3] %vm25_vm2, %v1399_v13  ;;  %v375_v23 = vld [vmem:[#allocation5 + $0x428] sm:$0xff]  ;;  %v380_v29 = vld [vmem:[#allocation5 + $0x450] sm:$0xff]  ;;  %v1258_v32 = vmax.f32 %v824_v14, %v969_v20 }
  0xe2   :  { %1541 = vst.msk [vmem:[#allocation3 + $0x1f8] sm:$0xff] %vm22_vm1, %v1397_v11  ;;  %1542 = vst.msk [vmem:[#allocation3 + $0x200] sm:$0xff] %vm22_vm1, %v1398_v54  ;;  %v1660_v24 = vld [vmem:[#allocation3 + $0x1c8] ss:$2 sm:$0x3f]  ;;  %v381_v30 = vld [vmem:[#allocation5 + $0x458] sm:$0xff] }
  0xe3   :  { %620 = vst.msk [vmem:[#allocation2 + $0x649] sm:$0xff] %vm499_vm3, %v362_v57  ;;  %626 = vst.msk [vmem:[#allocation2 + $0x691] sm:$0xff] %vm499_vm3, %v368_v19  ;;  %v1756_v25 = vld [vmem:[#allocation3 + $0x1cb] ss:$2 sm:$0x3f]  ;;  %v373_v36 = vld [vmem:[#allocation5 + $0x418] sm:$0xff] }
  0xe4   :  { %627 = vst.msk [vmem:[#allocation2 + $0x699] sm:$0xff] %vm499_vm3, %v369_v6  ;;  %632 = vst.msk [vmem:[#allocation2 + $0x709] sm:$0xff] %vm499_vm3, %v374_v22  ;;  %v1852_v27 = vld [vmem:[#allocation3 + $0x1ce] ss:$2 sm:$0x3f]  ;;  %v1928_v28 = vmax.f32 %v1660_v24, %v1756_v25  ;;  %v828_v47 = vld [vmem:[#allocation2 + $0x6c0] sm:$0xff] }
  0xe5   :  { %633 = vst.msk [vmem:[#allocation2 + $0x711] sm:$0xff] %vm499_vm3, %v375_v23  ;;  %638 = vst.msk [vmem:[#allocation2 + $0x751] sm:$0xff] %vm499_vm3, %v380_v29  ;;  %v372_v35 = vld [vmem:[#allocation5 + $0x410] sm:$0xff]  ;;  %v829_v48 = vld [vmem:[#allocation2 + $0x6c8] sm:$0xff] }
  0xe6   :  { %639 = vst.msk [vmem:[#allocation2 + $0x759] sm:$0xff] %vm499_vm3, %v381_v30  ;;  %v1976_v33 = vmax.f32 %v1928_v28, %v1852_v27  ;;  %v1662_v38 = vld [vmem:[#allocation3 + $0x1e0] ss:$2 sm:$0x3f]  ;;  %v827_v21 = vld [vmem:[#allocation2 + $0x610] sm:$0x3] }
  0xe7   :  { %v1112_v34 = vld [vmem:[#allocation2 + $0x660] sm:$0xff]  ;;  %630 = vst.msk [vmem:[#allocation2 + $0x6f1] sm:$0xff] %vm499_vm3, %v372_v35  ;;  %631 = vst.msk [vmem:[#allocation2 + $0x6f9] sm:$0xff] %vm499_vm3, %v373_v36  ;;  %v1113_v45 = vld [vmem:[#allocation2 + $0x668] sm:$0xff] }
  0xe8   :  { %v1758_v18 = vld [vmem:[#allocation3 + $0x1e3] ss:$2 sm:$0x3f]  ;;  %v1400_v41 = vmax.f32 %v1256_v26, %v1112_v34  ;;  %2091 = vrot.lane.b32.xlu1 %v1976_v33, %s2813_s0  ;;  %v1854_v44 = vld [vmem:[#allocation3 + $0x1e6] ss:$2 sm:$0x3f]  ;;  %v1401_v51 = vmax.f32 %v1257_v31, %v1113_v45 }
  0xe9   :  { %v1929_v42 = vmax.f32 %v1662_v38, %v1758_v18  ;;  %v1114_v46 = vld [vmem:[#allocation2 + $0x670] sm:$0x3]  ;;  %v1664_v49 = vld [vmem:[#allocation3 + $0x1f8] ss:$2 sm:$0x3f]  ;;  %v379_v15 = vld [vmem:[#allocation5 + $0x448] sm:$0xff] }
  0xea   :  { %v1760_v50 = vld [vmem:[#allocation3 + $0x1fb] ss:$2 sm:$0x3f]  ;;  %v1402_v52 = vmax.f32 %v1258_v32, %v1114_v46  ;;  %1544 = vst.msk [vmem:[#allocation3 + $0x210] sm:$0xff] %vm22_vm1, %v1400_v41  ;;  %v830_v53 = vld [vmem:[#allocation2 + $0x6d0] sm:$0x3] }
  0xeb   :  { %v1977_v55 = vmax.f32 %v1929_v42, %v1854_v44  ;;  %v1856_v43 = vld [vmem:[#allocation3 + $0x1fe] ss:$2 sm:$0x3f]  ;;  %v1930_v58 = vmax.f32 %v1664_v49, %v1760_v50  ;;  %v971_v39 = vld [vmem:[#allocation2 + $0x650] sm:$0xff]  ;;  %1545 = vst.msk [vmem:[#allocation3 + $0x218] sm:$0xff] %vm22_vm1, %v1401_v51 }
  0xec   :  { %v970_v61 = vld [vmem:[#allocation2 + $0x648] sm:$0xff]  ;;  %1546 = vst.msk [vmem:[#allocation3 + $0x220] sm:$0x3] %vm25_vm2, %v1402_v52  ;;  %v972_v37 = vld [vmem:[#allocation2 + $0x658] sm:$0x3]  ;;  %v1115_v40 = vld [vmem:[#allocation2 + $0x690] sm:$0xff]  ;;  %v1260_v1 = vmax.f32 %v3387_v59, %v971_v39 }
  0xed   :  { %v1116_v62 = vld [vmem:[#allocation2 + $0x698] sm:$0xff]  ;;  %v1259_v63 = vmax.f32 %v3383_v56, %v970_v61  ;;  %2093 = vrot.lane.b32.xlu0 %v1977_v55, %s2813_s0  ;;  %v1978_v2 = vmax.f32 %v1930_v58, %v1856_v43  ;;  %v1117_v3 = vld [vmem:[#allocation2 + $0x6a0] sm:$0x3]  ;;  %v1261_v4 = vmax.f32 %v827_v21, %v972_v37  ;;  %v973_v60 = vld [vmem:[#allocation2 + $0x708] sm:$0xff]  ;;  %637 = vst.msk [vmem:[#allocation2 + $0x741] sm:$0xff] %vm499_vm3, %v379_v15 }
  0xee   :  { %v974_v5 = vld [vmem:[#allocation2 + $0x710] sm:$0xff]  ;;  %v1404_v8 = vmax.f32 %v1260_v1, %v1116_v62  ;;  %v975_v9 = vld [vmem:[#allocation2 + $0x718] sm:$0x3]  ;;  %v1262_v12 = vmax.f32 %v828_v47, %v973_v60  ;;  %v1120_v59 = vld [vmem:[#allocation2 + $0x760] sm:$0x3] }
  0xef   :  { %v1403_v7 = vmax.f32 %v1259_v63, %v1115_v40  ;;  %v3421_v10 = vld [vmem:[#allocation2 + $0x750] sm:$0xff]  ;;  %v3423_v11 = vld [vmem:[#allocation2 + $0x758] sm:$0xff]  ;;  %v1263_v54 = vmax.f32 %v829_v48, %v974_v5  ;;  %2095 = vrot.lane.b32.xlu1 %v1978_v2, %s2813_s0  ;;  %v1405_v56 = vmax.f32 %v1261_v4, %v1117_v3  ;;  %v1264_v13 = vmax.f32 %v830_v53, %v975_v9  ;;  %v378_v14 = vld [vmem:[#allocation5 + $0x440] sm:$0xff] }
  0xf0   :  { %1548 = vst.msk [vmem:[#allocation3 + $0x230] sm:$0xff] %vm22_vm1, %v1404_v8  ;;  %v1406_v16 = vmax.f32 %v1262_v12, %v3421_v10  ;;  %v384_v17 = vld [vmem:[#allocation5 + $0x470] sm:$0xff]  ;;  %v385_v19 = vld [vmem:[#allocation5 + $0x478] sm:$0xff]  ;;  %v382_v23 = vld [vmem:[#allocation5 + $0x460] sm:$0xff] }
  0xf1   :  { %1547 = vst.msk [vmem:[#allocation3 + $0x228] sm:$0xff] %vm22_vm1, %v1403_v7  ;;  %v1407_v57 = vmax.f32 %v1263_v54, %v3423_v11  ;;  %v1408_v6 = vmax.f32 %v1264_v13, %v1120_v59  ;;  %v376_v20 = vld [vmem:[#allocation5 + $0x430] sm:$0xff]  ;;  %v377_v22 = vld [vmem:[#allocation5 + $0x438] sm:$0xff]  ;;  %v383_v24 = vld [vmem:[#allocation5 + $0x468] sm:$0xff] }
  0xf2   :  { %636 = vst.msk [vmem:[#allocation2 + $0x739] sm:$0xff] %vm499_vm3, %v378_v14  ;;  %642 = vst.msk [vmem:[#allocation2 + $0x781] sm:$0xff] %vm499_vm3, %v384_v17  ;;  %v1666_v25 = vld [vmem:[#allocation3 + $0x210] ss:$2 sm:$0x3f]  ;;  %v386_v33 = vld [vmem:[#allocation5 + $0x480] sm:$0xff] }
  0xf3   :  { %1549 = vst.msk [vmem:[#allocation3 + $0x238] sm:$0x3] %vm25_vm2, %v1405_v56  ;;  %v1762_v26 = vld [vmem:[#allocation3 + $0x213] ss:$2 sm:$0x3f]  ;;  %v387_v34 = vld [vmem:[#allocation5 + $0x488] sm:$0xff] }
  0xf4   :  { %643 = vst.msk [vmem:[#allocation2 + $0x789] sm:$0xff] %vm499_vm3, %v385_v19  ;;  %634 = vst.msk [vmem:[#allocation2 + $0x721] sm:$0xff] %vm499_vm3, %v376_v20  ;;  %v1858_v27 = vld [vmem:[#allocation3 + $0x216] ss:$2 sm:$0x3f]  ;;  %v1931_v28 = vmax.f32 %v1666_v25, %v1762_v26  ;;  %v391_v26 = vld [vmem:[#allocation5 + $0x4a8] sm:$0xff] }
  0xf5   :  { %1550 = vst.msk [vmem:[#allocation3 + $0x240] sm:$0xff] %vm22_vm1, %v1406_v16  ;;  %1551 = vst.msk [vmem:[#allocation3 + $0x248] sm:$0xff] %vm22_vm1, %v1407_v57  ;;  %v831_v29 = vld [vmem:[#allocation2 + $0x6f0] sm:$0xff]  ;;  %v832_v30 = vld [vmem:[#allocation2 + $0x6f8] sm:$0xff] }
  0xf6   :  { %1552 = vst.msk [vmem:[#allocation3 + $0x250] sm:$0x3] %vm25_vm2, %v1408_v6  ;;  %v388_v31 = vld [vmem:[#allocation5 + $0x490] sm:$0xff]  ;;  %v389_v32 = vld [vmem:[#allocation5 + $0x498] sm:$0xff]  ;;  %v1979_v36 = vmax.f32 %v1931_v28, %v1858_v27  ;;  %v833_v38 = vld [vmem:[#allocation2 + $0x700] sm:$0x3] }
  0xf7   :  { %635 = vst.msk [vmem:[#allocation2 + $0x729] sm:$0xff] %vm499_vm3, %v377_v22  ;;  %640 = vst.msk [vmem:[#allocation2 + $0x769] sm:$0xff] %vm499_vm3, %v382_v23  ;;  %v392_v35 = vld [vmem:[#allocation5 + $0x4b0] sm:$0xff]  ;;  %v393_v18 = vld [vmem:[#allocation5 + $0x4b8] sm:$0xff] }
  0xf8   :  { %641 = vst.msk [vmem:[#allocation2 + $0x771] sm:$0xff] %vm499_vm3, %v383_v24  ;;  %646 = vst.msk [vmem:[#allocation2 + $0x7b1] sm:$0xff] %vm499_vm3, %v388_v31  ;;  %v390_v41 = vld [vmem:[#allocation5 + $0x4a0] sm:$0xff]  ;;  %v1668_v21 = vld [vmem:[#allocation3 + $0x228] ss:$2 sm:$0x3f]  ;;  %2097 = vrot.lane.b32.xlu0 %v1979_v36, %s2813_s0 }
  0xf9   :  { %647 = vst.msk [vmem:[#allocation2 + $0x7b9] sm:$0xff] %vm499_vm3, %v389_v32  ;;  %644 = vst.msk [vmem:[#allocation2 + $0x799] sm:$0xff] %vm499_vm3, %v386_v33  ;;  %v1764_v44 = vld [vmem:[#allocation3 + $0x22b] ss:$2 sm:$0x3f]  ;;  %v976_v46 = vld [vmem:[#allocation2 + $0x738] sm:$0xff]  ;;  %v3479_v32 = vpop.permute.xlu0 %2053  ;;  %v3481_v33 = vpop.permute.xlu1 %2057 }
  0xfa   :  { %645 = vst.msk [vmem:[#allocation2 + $0x7a1] sm:$0xff] %vm499_vm3, %v387_v34  ;;  %650 = vst.msk [vmem:[#allocation2 + $0x7e1] sm:$0xff] %vm499_vm3, %v392_v35  ;;  %v1860_v42 = vld [vmem:[#allocation3 + $0x22e] ss:$2 sm:$0x3f]  ;;  %v1932_v45 = vmax.f32 %v1668_v21, %v1764_v44  ;;  %v977_v47 = vld [vmem:[#allocation2 + $0x740] sm:$0xff]  ;;  %v1265_v50 = vmax.f32 %v831_v29, %v976_v46 }
  0xfb   :  { %651 = vst.msk [vmem:[#allocation2 + $0x7e9] sm:$0xff] %vm499_vm3, %v393_v18  ;;  %648 = vst.msk [vmem:[#allocation2 + $0x7c9] sm:$0xff] %vm499_vm3, %v390_v41  ;;  %v1266_v51 = vmax.f32 %v832_v30, %v977_v47  ;;  %v978_v43 = vld [vmem:[#allocation2 + $0x748] sm:$0x3]  ;;  %v3450_v58 = vld [vmem:[#allocation2 + $0x780] sm:$0xff] }
  0xfc   :  { %v1670_v48 = vld [vmem:[#allocation3 + $0x240] ss:$2 sm:$0x3f]  ;;  %v1766_v49 = vld [vmem:[#allocation3 + $0x243] ss:$2 sm:$0x3f]  ;;  %v1980_v52 = vmax.f32 %v1932_v45, %v1860_v42  ;;  %v1267_v37 = vmax.f32 %v833_v38, %v978_v43  ;;  %v1409_v40 = vmax.f32 %v1265_v50, %v3450_v58 }
  0xfd   :  { %v1862_v53 = vld [vmem:[#allocation3 + $0x246] ss:$2 sm:$0x3f]  ;;  %v1933_v55 = vmax.f32 %v1670_v48, %v1766_v49  ;;  %v839_v63 = vld [vmem:[#allocation2 + $0x760] sm:$0x3]  ;;  %v397_v29 = vld [vmem:[#allocation5 + $0x4d8] sm:$0xff]  ;;  %v2056_v47 = vpop.permute.xlu0 %2055  ;;  %v2060_v48 = vpop.permute.xlu1 %2059 }
  0xfe   :  { %v3452_v61 = vld [vmem:[#allocation2 + $0x788] sm:$0xff]  ;;  %v1123_v39 = vld [vmem:[#allocation2 + $0x790] sm:$0x3]  ;;  %v834_v62 = vld [vmem:[#allocation2 + $0x720] sm:$0xff]  ;;  %2099 = vrot.lane.b32.xlu1 %v1980_v52, %s2813_s0  ;;  %1553 = vst.msk [vmem:[#allocation3 + $0x258] sm:$0xff] %vm22_vm1, %v1409_v40 }
  0xff   :  { %v1981_v1 = vmax.f32 %v1933_v55, %v1862_v53  ;;  %v1410_v2 = vmax.f32 %v1266_v51, %v3452_v61  ;;  %v835_v3 = vld [vmem:[#allocation2 + $0x728] sm:$0xff]  ;;  %v836_v4 = vld [vmem:[#allocation2 + $0x730] sm:$0x3]  ;;  %v1411_v5 = vmax.f32 %v1267_v37, %v1123_v39  ;;  %v981_v8 = vld [vmem:[#allocation2 + $0x778] sm:$0x3]  ;;  %649 = vst.msk [vmem:[#allocation2 + $0x7d1] sm:$0xff] %vm499_vm3, %v391_v26 }
 0x100   :  { %v979_v60 = vld [vmem:[#allocation2 + $0x768] sm:$0xff]  ;;  %v980_v7 = vld [vmem:[#allocation2 + $0x770] sm:$0xff]  ;;  %v3462_v54 = vld [vmem:[#allocation2 + $0x7b8] sm:$0xff]  ;;  %v1270_v13 = vmax.f32 %v836_v4, %v981_v8  ;;  %655 = vst.msk [vmem:[#allocation2 + $0x819] sm:$0xff] %vm499_vm3, %v397_v29 }
 0x101   :  { %v3458_v9 = vld [vmem:[#allocation2 + $0x7b0] sm:$0xff]  ;;  %v1268_v12 = vmax.f32 %v834_v62, %v979_v60  ;;  %2101 = vrot.lane.b32.xlu0 %v1981_v1, %s2813_s0  ;;  %1554 = vst.msk [vmem:[#allocation3 + $0x260] sm:$0xff] %vm22_vm1, %v1410_v2  ;;  %v1126_v56 = vld [vmem:[#allocation2 + $0x7c0] sm:$0x3]  ;;  %v1269_v59 = vmax.f32 %v835_v3, %v980_v7  ;;  %v982_v14 = vld [vmem:[#allocation2 + $0x798] sm:$0xff]  ;;  %v2062_v4 = vpop.permute.xlu0 %2061  ;;  %v2064_v60 = vpop.permute.xlu1 %2063 }
 0x102   :  { %1555 = vst.msk [vmem:[#allocation3 + $0x268] sm:$0x3] %vm25_vm2, %v1411_v5  ;;  %v983_v16 = vld [vmem:[#allocation2 + $0x7a0] sm:$0xff]  ;;  %v984_v57 = vld [vmem:[#allocation2 + $0x7a8] sm:$0x3]  ;;  %v1271_v19 = vmax.f32 %v3421_v10, %v982_v14  ;;  %v1414_v20 = vmax.f32 %v1270_v13, %v1126_v56  ;;  %v396_v28 = vld [vmem:[#allocation5 + $0x4d0] sm:$0xff] }
 0x103   :  { %v1412_v15 = vmax.f32 %v1268_v12, %v3458_v9  ;;  %v1127_v17 = vld [vmem:[#allocation2 + $0x7e0] sm:$0xff]  ;;  %v1413_v6 = vmax.f32 %v1269_v59, %v3462_v54  ;;  %v1128_v22 = vld [vmem:[#allocation2 + $0x7e8] sm:$0xff]  ;;  %v1129_v23 = vld [vmem:[#allocation2 + $0x7f0] sm:$0x3]  ;;  %v1272_v24 = vmax.f32 %v3423_v11, %v983_v16  ;;  %v1273_v25 = vmax.f32 %v839_v63, %v984_v57  ;;  %654 = vst.msk [vmem:[#allocation2 + $0x811] sm:$0xff] %vm499_vm3, %v396_v28 }
 0x104   :  { %v1415_v27 = vmax.f32 %v1271_v19, %v1127_v17  ;;  %1558 = vst.msk [vmem:[#allocation3 + $0x280] sm:$0x3] %vm25_vm2, %v1414_v20  ;;  %v394_v11 = vld [vmem:[#allocation5 + $0x4c0] sm:$0xff]  ;;  %v395_v31 = vld [vmem:[#allocation5 + $0x4c8] sm:$0xff]  ;;  %v400_v35 = vld [vmem:[#allocation5 + $0x4f0] sm:$0xff] }
 0x105   :  { %1556 = vst.msk [vmem:[#allocation3 + $0x270] sm:$0xff] %vm22_vm1, %v1412_v15  ;;  %1557 = vst.msk [vmem:[#allocation3 + $0x278] sm:$0xff] %vm22_vm1, %v1413_v6  ;;  %v3473_v10 = vmax.f32 %v1272_v24, %v1128_v22  ;;  %v3475_v30 = vmax.f32 %v1273_v25, %v1129_v23  ;;  %v3484_v34 = vld [vmem:[#allocation2 + $0x7c8] sm:$0xff]  ;;  %v401_v36 = vld [vmem:[#allocation5 + $0x4f8] sm:$0xff]  ;;  %v2066_v28 = vpop.permute.xlu0 %2065 }
 0x106   :  { %1559 = vst.msk [vmem:[#allocation3 + $0x288] sm:$0xff] %vm22_vm1, %v1415_v27  ;;  %v406_v38 = vld [vmem:[#allocation5 + $0x520] sm:$0xff]  ;;  %v407_v18 = vld [vmem:[#allocation5 + $0x528] sm:$0xff]  ;;  %v412_v41 = vld [vmem:[#allocation5 + $0x550] sm:$0xff]  ;;  %v1274_v49 = vmax.f32 %v3450_v58, %v3484_v34 }
 0x107   :  { %652 = vst.msk [vmem:[#allocation2 + $0x7f9] sm:$0xff] %vm499_vm3, %v394_v11  ;;  %653 = vst.msk [vmem:[#allocation2 + $0x801] sm:$0xff] %vm499_vm3, %v395_v31  ;;  %v842_v45 = vld [vmem:[#allocation2 + $0x790] sm:$0x3]  ;;  %v413_v46 = vld [vmem:[#allocation5 + $0x558] sm:$0xff] }
 0x108   :  { %206 = vst.msk [vmem:[#allocation4 + $0x60] sm:$0x3f] %vm193_vm4, %v2812_v0  ;;  %207 = vst.msk [vmem:[#allocation4 + $0x68] sm:$0x3f] %vm193_vm4, %v2812_v0  ;;  %v404_v50 = vld [vmem:[#allocation5 + $0x510] sm:$0xff]  ;;  %v405_v55 = vld [vmem:[#allocation5 + $0x518] sm:$0xff] }
 0x109   :  { %208 = vst.msk [vmem:[#allocation4 + $0x70] sm:$0x3f] %vm193_vm4, %v2812_v0  ;;  %209 = vst.msk [vmem:[#allocation4 + $0x78] sm:$0x3f] %vm193_vm4, %v2812_v0  ;;  %v986_v52 = vld [vmem:[#allocation2 + $0x7d0] sm:$0xff]  ;;  %v847_v56 = vld [vmem:[#allocation2 + $0x878] sm:$0xff] }
 0x10a   :  { %210 = vst.msk [vmem:[#allocation4 + $0x80] sm:$0x3f] %vm193_vm4, %v2812_v0  ;;  %211 = vst.msk [vmem:[#allocation4 + $0x88] sm:$0x3f] %vm193_vm4, %v2812_v0  ;;  %v987_v53 = vld [vmem:[#allocation2 + $0x7d8] sm:$0x3]  ;;  %v1275_v37 = vmax.f32 %v3452_v61, %v986_v52 }
 0x10b   :  { %212 = vst.msk [vmem:[#allocation4 + $0x90] sm:$0x3f] %vm193_vm4, %v2812_v0  ;;  %213 = vst.msk [vmem:[#allocation4 + $0x98] sm:$0x3f] %vm193_vm4, %v2812_v0  ;;  %v1276_v40 = vmax.f32 %v842_v45, %v987_v53  ;;  %v845_v62 = vld [vmem:[#allocation2 + $0x7c0] sm:$0x3] }
 0x10c   :  { %214 = vst.msk [vmem:[#allocation4 + $0xa0] sm:$0x3f] %vm193_vm4, %v2812_v0  ;;  %215 = vst.msk [vmem:[#allocation4 + $0xa8] sm:$0x3f] %vm193_vm4, %v2812_v0  ;;  %v1130_v1 = vld [vmem:[#allocation2 + $0x810] sm:$0xff]  ;;  %v1131_v2 = vld [vmem:[#allocation2 + $0x818] sm:$0xff] }
 0x10d   :  { %216 = vst.msk [vmem:[#allocation4 + $0xb0] sm:$0x3f] %vm193_vm4, %v2812_v0  ;;  %217 = vst.msk [vmem:[#allocation4 + $0xb8] sm:$0x3f] %vm193_vm4, %v2812_v0  ;;  %v846_v3 = vld [vmem:[#allocation2 + $0x870] sm:$0xff]  ;;  %v1418_v8 = vmax.f32 %v1274_v49, %v1130_v1  ;;  %v1419_v12 = vmax.f32 %v1275_v37, %v1131_v2  ;;  %v409_v45 = vld [vmem:[#allocation5 + $0x538] sm:$0xff] }
 0x10e   :  { %218 = vst.msk [vmem:[#allocation4 + $0xc0] sm:$0x3f] %vm193_vm4, %v2812_v0  ;;  %219 = vst.msk [vmem:[#allocation4 + $0xc8] sm:$0x3f] %vm193_vm4, %v2812_v0  ;;  %v848_v59 = vld [vmem:[#allocation2 + $0x880] sm:$0x3] }
 0x10f   :  { %220 = vst.msk [vmem:[#allocation4 + $0xd0] sm:$0x3f] %vm193_vm4, %v2812_v0  ;;  %221 = vst.msk [vmem:[#allocation4 + $0xd8] sm:$0x3f] %vm193_vm4, %v2812_v0  ;;  %v1132_v15 = vld [vmem:[#allocation2 + $0x820] sm:$0x3] }
 0x110   :  { %222 = vst.msk [vmem:[#allocation4 + $0xe0] sm:$0x3f] %vm193_vm4, %v2812_v0  ;;  %223 = vst.msk [vmem:[#allocation4 + $0xe8] sm:$0x3f] %vm193_vm4, %v2812_v0  ;;  %v988_v16 = vld [vmem:[#allocation2 + $0x7f8] sm:$0xff]  ;;  %v1420_v57 = vmax.f32 %v1276_v40, %v1132_v15  ;;  %v989_v17 = vld [vmem:[#allocation2 + $0x800] sm:$0xff] }
 0x111   :  { %224 = vst.msk [vmem:[#allocation4 + $0xf0] sm:$0x3f] %vm193_vm4, %v2812_v0  ;;  %225 = vst.msk [vmem:[#allocation4 + $0xf8] sm:$0x3f] %vm193_vm4, %v2812_v0  ;;  %v990_v19 = vld [vmem:[#allocation2 + $0x808] sm:$0x3]  ;;  %v1277_v20 = vmax.f32 %v3458_v9, %v988_v16  ;;  %v1278_v25 = vmax.f32 %v3462_v54, %v989_v17 }
 0x112   :  { %226 = vst.msk [vmem:[#allocation4 + $0x100] sm:$0x3f] %vm193_vm4, %v2812_v0  ;;  %227 = vst.msk [vmem:[#allocation4 + $0x108] sm:$0x3f] %vm193_vm4, %v2812_v0  ;;  %v1279_v26 = vmax.f32 %v845_v62, %v990_v19  ;;  %v420_v52 = vld [vmem:[#allocation5 + $0x590] sm:$0xff]  ;;  %v421_v53 = vld [vmem:[#allocation5 + $0x598] sm:$0xff] }
 0x113   :  { %228 = vst.msk [vmem:[#allocation4 + $0x110] sm:$0x3f] %vm193_vm4, %v2812_v0  ;;  %229 = vst.msk [vmem:[#allocation4 + $0x118] sm:$0x3f] %vm193_vm4, %v2812_v0  ;;  %v419_v37 = vld [vmem:[#allocation5 + $0x588] sm:$0xff]  ;;  %v422_v2 = vld [vmem:[#allocation5 + $0x5a0] sm:$0xff] }
 0x114   :  { %230 = vst.msk [vmem:[#allocation4 + $0x120] sm:$0x3f] %vm193_vm4, %v2812_v0  ;;  %231 = vst.msk [vmem:[#allocation4 + $0x128] sm:$0x3f] %vm193_vm4, %v2812_v0 }
 0x115   :  { %232 = vst.msk [vmem:[#allocation4 + $0x130] sm:$0x3f] %vm193_vm4, %v2812_v0  ;;  %233 = vst.msk [vmem:[#allocation4 + $0x138] sm:$0x3f] %vm193_vm4, %v2812_v0 }
 0x116   :  { %234 = vst.msk [vmem:[#allocation4 + $0x140] sm:$0x3f] %vm193_vm4, %v2812_v0  ;;  %235 = vst.msk [vmem:[#allocation4 + $0x148] sm:$0x3f] %vm193_vm4, %v2812_v0 }
 0x117   :  { %236 = vst.msk [vmem:[#allocation4 + $0x150] sm:$0x3f] %vm193_vm4, %v2812_v0  ;;  %237 = vst.msk [vmem:[#allocation4 + $0x158] sm:$0x3f] %vm193_vm4, %v2812_v0 }
 0x118   :  { %238 = vst.msk [vmem:[#allocation4 + $0x160] sm:$0x3f] %vm193_vm4, %v2812_v0  ;;  %239 = vst.msk [vmem:[#allocation4 + $0x168] sm:$0x3f] %vm193_vm4, %v2812_v0 }
 0x119   :  { %240 = vst.msk [vmem:[#allocation4 + $0x170] sm:$0x3f] %vm193_vm4, %v2812_v0  ;;  %241 = vst.msk [vmem:[#allocation4 + $0x178] sm:$0x3f] %vm193_vm4, %v2812_v0 }
 0x11a   :  { %1560 = vst.msk [vmem:[#allocation3 + $0x290] sm:$0xff] %vm22_vm1, %v3473_v10  ;;  %v1672_v0 = vld [vmem:[#allocation3 + $0x258] ss:$2 sm:$0x3f]  ;;  %1562 = vst.msk [vmem:[#allocation3 + $0x2a0] sm:$0xff] %vm22_vm1, %v1418_v8 }
 0x11b   :  { %1561 = vst.msk [vmem:[#allocation3 + $0x298] sm:$0x3] %vm25_vm2, %v3475_v30  ;;  %v1768_v21 = vld [vmem:[#allocation3 + $0x25b] ss:$2 sm:$0x3f] }
 0x11c   :  { %658 = vst.msk [vmem:[#allocation2 + $0x841] sm:$0xff] %vm499_vm3, %v400_v35  ;;  %659 = vst.msk [vmem:[#allocation2 + $0x849] sm:$0xff] %vm499_vm3, %v401_v36  ;;  %v1864_v44 = vld [vmem:[#allocation3 + $0x25e] ss:$2 sm:$0x3f]  ;;  %v1934_v42 = vmax.f32 %v1672_v0, %v1768_v21 }
 0x11d   :  { %2198 = vst.msk [vmem:[#allocation4] sm:$0x3f] %vm2197_vm5, %v3479_v32  ;;  %2200 = vst.msk [vmem:[#allocation4 + $0x10] sm:$0x3f] %vm2197_vm5, %v3481_v33  ;;  %v410_v36 = vld [vmem:[#allocation5 + $0x540] sm:$0xff]  ;;  %v417_v0 = vld [vmem:[#allocation5 + $0x578] sm:$0xff] }
 0x11e   :  { %664 = vst.msk [vmem:[#allocation2 + $0x8b9] sm:$0xff] %vm499_vm3, %v406_v38  ;;  %665 = vst.msk [vmem:[#allocation2 + $0x8c1] sm:$0xff] %vm499_vm3, %v407_v18  ;;  %v1982_v51 = vmax.f32 %v1934_v42, %v1864_v44  ;;  %v1674_v43 = vld [vmem:[#allocation3 + $0x270] ss:$2 sm:$0x3f]  ;;  %v411_v18 = vld [vmem:[#allocation5 + $0x548] sm:$0xff] }
 0x11f   :  { %670 = vst.msk [vmem:[#allocation2 + $0x901] sm:$0xff] %vm499_vm3, %v412_v41  ;;  %671 = vst.msk [vmem:[#allocation2 + $0x909] sm:$0xff] %vm499_vm3, %v413_v46  ;;  %v1770_v39 = vld [vmem:[#allocation3 + $0x273] ss:$2 sm:$0x3f]  ;;  %v414_v46 = vld [vmem:[#allocation5 + $0x560] sm:$0xff] }
 0x120   :  { %2199 = vst.msk [vmem:[#allocation4 + $0x8] sm:$0x3f] %vm2197_vm5, %v2056_v47  ;;  %2201 = vst.msk [vmem:[#allocation4 + $0x18] sm:$0x3f] %vm2197_vm5, %v2060_v48  ;;  %2103 = vrot.lane.b32.xlu1 %v1982_v51, %s2813_s0  ;;  %v1935_v63 = vmax.f32 %v1674_v43, %v1770_v39  ;;  %v416_v41 = vld [vmem:[#allocation5 + $0x570] sm:$0xff]  ;;  %v415_v51 = vld [vmem:[#allocation5 + $0x568] sm:$0xff] }
 0x121   :  { %662 = vst.msk [vmem:[#allocation2 + $0x8a1] sm:$0xff] %vm499_vm3, %v404_v50  ;;  %663 = vst.msk [vmem:[#allocation2 + $0x8a9] sm:$0xff] %vm499_vm3, %v405_v55  ;;  %v1866_v58 = vld [vmem:[#allocation3 + $0x276] ss:$2 sm:$0x3f] }
 0x122   :  { %v1676_v5 = vld [vmem:[#allocation3 + $0x288] ss:$2 sm:$0x3f]  ;;  %v1772_v7 = vld [vmem:[#allocation3 + $0x28b] ss:$2 sm:$0x3f]  ;;  %v1983_v61 = vmax.f32 %v1935_v63, %v1866_v58 }
 0x123   :  { %2202 = vst.msk [vmem:[#allocation4 + $0x20] sm:$0x3f] %vm2197_vm5, %v2062_v4  ;;  %2203 = vst.msk [vmem:[#allocation4 + $0x28] sm:$0x3f] %vm2197_vm5, %v2064_v60  ;;  %v1936_v14 = vmax.f32 %v1676_v5, %v1772_v7  ;;  %v1133_v6 = vld [vmem:[#allocation2 + $0x840] sm:$0xff]  ;;  %v1134_v23 = vld [vmem:[#allocation2 + $0x848] sm:$0xff]  ;;  %v2068_v4 = vpop.permute.xlu1 %2067 }
 0x124   :  { %v1868_v13 = vld [vmem:[#allocation3 + $0x28e] ss:$2 sm:$0x3f]  ;;  %1563 = vst.msk [vmem:[#allocation3 + $0x2a8] sm:$0xff] %vm22_vm1, %v1419_v12  ;;  %2105 = vrot.lane.b32.xlu0 %v1983_v61, %s2813_s0  ;;  %v1421_v29 = vmax.f32 %v1277_v20, %v1133_v6  ;;  %v1422_v9 = vmax.f32 %v1278_v25, %v1134_v23  ;;  %v418_v39 = vld [vmem:[#allocation5 + $0x580] sm:$0xff]  ;;  %v2070_v20 = vpop.permute.xlu0 %2069 }
 0x125   :  { %v1984_v22 = vmax.f32 %v1936_v14, %v1868_v13  ;;  %v1135_v24 = vld [vmem:[#allocation2 + $0x850] sm:$0x3]  ;;  %v991_v27 = vld [vmem:[#allocation2 + $0x8b8] sm:$0xff]  ;;  %1564 = vst.msk [vmem:[#allocation3 + $0x2b0] sm:$0x3] %vm25_vm2, %v1420_v57  ;;  %v992_v10 = vld [vmem:[#allocation2 + $0x8c0] sm:$0xff] }
 0x126   :  { %v993_v30 = vld [vmem:[#allocation2 + $0x8c8] sm:$0x3]  ;;  %v3614_v11 = vld [vmem:[#allocation2 + $0x900] sm:$0xff]  ;;  %v1280_v31 = vmax.f32 %v846_v3, %v991_v27  ;;  %2204 = vst.msk [vmem:[#allocation4 + $0x30] sm:$0x3f] %vm2197_vm5, %v2066_v28  ;;  %v1423_v32 = vmax.f32 %v1279_v26, %v1135_v24  ;;  %v1281_v34 = vmax.f32 %v847_v56, %v992_v10  ;;  %v408_v42 = vld [vmem:[#allocation5 + $0x530] sm:$0xff] }
 0x127   :  { %2107 = vrot.lane.b32.xlu1 %v1984_v22, %s2813_s0  ;;  %v3618_v33 = vld [vmem:[#allocation2 + $0x908] sm:$0xff]  ;;  %v1138_v54 = vld [vmem:[#allocation2 + $0x910] sm:$0x3]  ;;  %v1282_v35 = vmax.f32 %v848_v59, %v993_v30  ;;  %1565 = vst.msk [vmem:[#allocation3 + $0x2b8] sm:$0xff] %vm22_vm1, %v1421_v29  ;;  %1566 = vst.msk [vmem:[#allocation3 + $0x2c0] sm:$0xff] %vm22_vm1, %v1422_v9  ;;  %v2072_v9 = vpop.permute.xlu1 %2071 }
 0x128   :  { %v1424_v38 = vmax.f32 %v1280_v31, %v3614_v11  ;;  %668 = vst.msk [vmem:[#allocation2 + $0x8e9] sm:$0xff] %vm499_vm3, %v410_v36  ;;  %v1425_v21 = vmax.f32 %v1281_v34, %v3618_v33  ;;  %669 = vst.msk [vmem:[#allocation2 + $0x8f1] sm:$0xff] %vm499_vm3, %v411_v18  ;;  %v849_v49 = vld [vmem:[#allocation2 + $0x8a0] sm:$0xff]  ;;  %v850_v43 = vld [vmem:[#allocation2 + $0x8a8] sm:$0xff] }
 0x129   :  { %1567 = vst.msk [vmem:[#allocation3 + $0x2c8] sm:$0x3] %vm25_vm2, %v1423_v32  ;;  %v1426_v44 = vmax.f32 %v1282_v35, %v1138_v54  ;;  %v851_v62 = vld [vmem:[#allocation2 + $0x8b0] sm:$0x3]  ;;  %v425_v63 = vld [vmem:[#allocation5 + $0x5b8] sm:$0xff]  ;;  %v423_v3 = vld [vmem:[#allocation5 + $0x5a8] sm:$0xff] }
 0x12a   :  { %674 = vst.msk [vmem:[#allocation2 + $0x931] sm:$0xff] %vm499_vm3, %v416_v41  ;;  %675 = vst.msk [vmem:[#allocation2 + $0x939] sm:$0xff] %vm499_vm3, %v417_v0  ;;  %v424_v58 = vld [vmem:[#allocation5 + $0x5b0] sm:$0xff] }
 0x12b   :  { %1568 = vst.msk [vmem:[#allocation3 + $0x2d0] sm:$0xff] %vm22_vm1, %v1424_v38  ;;  %v1678_v47 = vld [vmem:[#allocation3 + $0x2a0] ss:$2 sm:$0x3f]  ;;  %1569 = vst.msk [vmem:[#allocation3 + $0x2d8] sm:$0xff] %vm22_vm1, %v1425_v21 }
 0x12c   :  { %v1774_v48 = vld [vmem:[#allocation3 + $0x2a3] ss:$2 sm:$0x3f]  ;;  %1570 = vst.msk [vmem:[#allocation3 + $0x2e0] sm:$0x3] %vm25_vm2, %v1426_v44 }
 0x12d   :  { %666 = vst.msk [vmem:[#allocation2 + $0x8d1] sm:$0xff] %vm499_vm3, %v408_v42  ;;  %667 = vst.msk [vmem:[#allocation2 + $0x8d9] sm:$0xff] %vm499_vm3, %v409_v45  ;;  %v1937_v50 = vmax.f32 %v1678_v47, %v1774_v48  ;;  %v1870_v55 = vld [vmem:[#allocation3 + $0x2a6] ss:$2 sm:$0x3f] }
 0x12e   :  { %672 = vst.msk [vmem:[#allocation2 + $0x919] sm:$0xff] %vm499_vm3, %v414_v46  ;;  %673 = vst.msk [vmem:[#allocation2 + $0x921] sm:$0xff] %vm499_vm3, %v415_v51  ;;  %v1680_v60 = vld [vmem:[#allocation3 + $0x2b8] ss:$2 sm:$0x3f] }
 0x12f   :  { %678 = vst.msk [vmem:[#allocation2 + $0x961] sm:$0xff] %vm499_vm3, %v420_v52  ;;  %679 = vst.msk [vmem:[#allocation2 + $0x969] sm:$0xff] %vm499_vm3, %v421_v53  ;;  %v1985_v40 = vmax.f32 %v1937_v50, %v1870_v55  ;;  %v994_v1 = vld [vmem:[#allocation2 + $0x8e8] sm:$0xff]  ;;  %v1776_v5 = vld [vmem:[#allocation3 + $0x2bb] ss:$2 sm:$0x3f] }
 0x130   :  { %676 = vst.msk [vmem:[#allocation2 + $0x949] sm:$0xff] %vm499_vm3, %v418_v39  ;;  %677 = vst.msk [vmem:[#allocation2 + $0x951] sm:$0xff] %vm499_vm3, %v419_v37  ;;  %v1283_v7 = vmax.f32 %v849_v49, %v994_v1  ;;  %v1872_v8 = vld [vmem:[#allocation3 + $0x2be] ss:$2 sm:$0x3f]  ;;  %v1938_v12 = vmax.f32 %v1680_v60, %v1776_v5  ;;  %v995_v56 = vld [vmem:[#allocation2 + $0x8f0] sm:$0xff] }
 0x131   :  { %682 = vst.msk [vmem:[#allocation2 + $0x991] sm:$0xff] %vm499_vm3, %v424_v58  ;;  %683 = vst.msk [vmem:[#allocation2 + $0x999] sm:$0xff] %vm499_vm3, %v425_v63  ;;  %2109 = vrot.lane.b32.xlu0 %v1985_v40, %s2813_s0  ;;  %v996_v59 = vld [vmem:[#allocation2 + $0x8f8] sm:$0x3]  ;;  %v1284_v14 = vmax.f32 %v850_v43, %v995_v56  ;;  %v3646_v19 = vld [vmem:[#allocation2 + $0x930] sm:$0xff] }
 0x132   :  { %680 = vst.msk [vmem:[#allocation2 + $0x979] sm:$0xff] %vm499_vm3, %v422_v2  ;;  %681 = vst.msk [vmem:[#allocation2 + $0x981] sm:$0xff] %vm499_vm3, %v423_v3  ;;  %v1682_v61 = vld [vmem:[#allocation3 + $0x2d0] ss:$2 sm:$0x3f]  ;;  %v1285_v15 = vmax.f32 %v851_v62, %v996_v59  ;;  %v1986_v16 = vmax.f32 %v1938_v12, %v1872_v8  ;;  %v1427_v23 = vmax.f32 %v1283_v7, %v3646_v19  ;;  %v426_v37 = vld [vmem:[#allocation5 + $0x5c0] sm:$0xff]  ;;  %v2074_v8 = vpop.permute.xlu0 %2073 }
 0x133   :  { %2205 = vst.msk [vmem:[#allocation4 + $0x38] sm:$0x3f] %vm2197_vm5, %v2068_v4  ;;  %v1778_v13 = vld [vmem:[#allocation3 + $0x2d3] ss:$2 sm:$0x3f]  ;;  %v427_v40 = vld [vmem:[#allocation5 + $0x5c8] sm:$0xff] }
 0x134   :  { %v1874_v57 = vld [vmem:[#allocation3 + $0x2d6] ss:$2 sm:$0x3f]  ;;  %v1939_v17 = vmax.f32 %v1682_v61, %v1778_v13  ;;  %v857_v27 = vld [vmem:[#allocation2 + $0x910] sm:$0x3]  ;;  %2111 = vrot.lane.b32.xlu1 %v1986_v16, %s2813_s0  ;;  %1571 = vst.msk [vmem:[#allocation3 + $0x2e8] sm:$0xff] %vm22_vm1, %v1427_v23 }
 0x135   :  { %v3648_v6 = vld [vmem:[#allocation2 + $0x938] sm:$0xff]  ;;  %v1141_v22 = vld [vmem:[#allocation2 + $0x940] sm:$0x3]  ;;  %v852_v25 = vld [vmem:[#allocation2 + $0x8d0] sm:$0xff]  ;;  %2206 = vst.msk [vmem:[#allocation4 + $0x40] sm:$0x3f] %vm2197_vm5, %v2070_v20 }
 0x136   :  { %v1428_v24 = vmax.f32 %v1284_v14, %v3648_v6  ;;  %v853_v26 = vld [vmem:[#allocation2 + $0x8d8] sm:$0xff]  ;;  %v1987_v28 = vmax.f32 %v1939_v17, %v1874_v57  ;;  %v1429_v29 = vmax.f32 %v1285_v15, %v1141_v22  ;;  %v854_v10 = vld [vmem:[#allocation2 + $0x8e0] sm:$0x3]  ;;  %v999_v32 = vld [vmem:[#allocation2 + $0x928] sm:$0x3]  ;;  %684 = vst.msk [vmem:[#allocation2 + $0x9a9] sm:$0xff] %vm499_vm3, %v426_v37 }
 0x137   :  { %v997_v30 = vld [vmem:[#allocation2 + $0x918] sm:$0xff]  ;;  %v998_v31 = vld [vmem:[#allocation2 + $0x920] sm:$0xff]  ;;  %v3658_v34 = vld [vmem:[#allocation2 + $0x968] sm:$0xff]  ;;  %2207 = vst.msk [vmem:[#allocation4 + $0x48] sm:$0x3f] %vm2197_vm5, %v2072_v9  ;;  %v1288_v18 = vmax.f32 %v854_v10, %v999_v32  ;;  %v2076_v10 = vpop.permute.xlu1 %2075 }
 0x138   :  { %1572 = vst.msk [vmem:[#allocation3 + $0x2f0] sm:$0xff] %vm22_vm1, %v1428_v24  ;;  %v3656_v54 = vld [vmem:[#allocation2 + $0x960] sm:$0xff]  ;;  %v1286_v35 = vmax.f32 %v852_v25, %v997_v30  ;;  %v1287_v36 = vmax.f32 %v853_v26, %v998_v31  ;;  %2113 = vrot.lane.b32.xlu0 %v1987_v28, %s2813_s0  ;;  %v1144_v38 = vld [vmem:[#allocation2 + $0x970] sm:$0x3]  ;;  %v1000_v41 = vld [vmem:[#allocation2 + $0x948] sm:$0xff] }
 0x139   :  { %1573 = vst.msk [vmem:[#allocation3 + $0x2f8] sm:$0x3] %vm25_vm2, %v1429_v29  ;;  %v1001_v0 = vld [vmem:[#allocation2 + $0x950] sm:$0xff]  ;;  %v1002_v42 = vld [vmem:[#allocation2 + $0x958] sm:$0x3]  ;;  %v1289_v47 = vmax.f32 %v3614_v11, %v1000_v41  ;;  %v1432_v49 = vmax.f32 %v1288_v18, %v1144_v38  ;;  %v438_v5 = vld [vmem:[#allocation5 + $0x620] sm:$0xff] }
 0x13a   :  { %v1430_v21 = vmax.f32 %v1286_v35, %v3656_v54  ;;  %v1431_v44 = vmax.f32 %v1287_v36, %v3658_v34  ;;  %v1145_v45 = vld [vmem:[#allocation2 + $0x990] sm:$0xff]  ;;  %v1146_v46 = vld [vmem:[#allocation2 + $0x998] sm:$0xff]  ;;  %v1290_v48 = vmax.f32 %v3618_v33, %v1001_v0  ;;  %v1147_v50 = vld [vmem:[#allocation2 + $0x9a0] sm:$0x3]  ;;  %v1291_v51 = vmax.f32 %v857_v27, %v1002_v42  ;;  %685 = vst.msk [vmem:[#allocation2 + $0x9b1] sm:$0xff] %vm499_vm3, %v427_v40 }
 0x13b   :  { %v428_v52 = vld [vmem:[#allocation5 + $0x5d0] sm:$0xff]  ;;  %v429_v53 = vld [vmem:[#allocation5 + $0x5d8] sm:$0xff]  ;;  %v1433_v55 = vmax.f32 %v1289_v47, %v1145_v45  ;;  %1576 = vst.msk [vmem:[#allocation3 + $0x310] sm:$0x3] %vm25_vm2, %v1432_v49  ;;  %v1004_v33 = vld [vmem:[#allocation2 + $0x980] sm:$0xff] }
 0x13c   :  { %1574 = vst.msk [vmem:[#allocation3 + $0x300] sm:$0xff] %vm22_vm1, %v1430_v21  ;;  %1575 = vst.msk [vmem:[#allocation3 + $0x308] sm:$0xff] %vm22_vm1, %v1431_v44  ;;  %v1434_v43 = vmax.f32 %v1290_v48, %v1146_v46  ;;  %v1003_v39 = vld [vmem:[#allocation2 + $0x978] sm:$0xff]  ;;  %v1435_v11 = vmax.f32 %v1291_v51, %v1147_v50  ;;  %v860_v62 = vld [vmem:[#allocation2 + $0x940] sm:$0x3]  ;;  %v1293_v56 = vmax.f32 %v3648_v6, %v1004_v33  ;;  %v2078_v21 = vpop.permute.xlu0 %2077 }
 0x13d   :  { %686 = vst.msk [vmem:[#allocation2 + $0x9c1] sm:$0xff] %vm499_vm3, %v428_v52  ;;  %687 = vst.msk [vmem:[#allocation2 + $0x9c9] sm:$0xff] %vm499_vm3, %v429_v53  ;;  %v1005_v58 = vld [vmem:[#allocation2 + $0x988] sm:$0x3]  ;;  %v432_v63 = vld [vmem:[#allocation5 + $0x5f0] sm:$0xff]  ;;  %v1292_v12 = vmax.f32 %v3646_v19, %v1003_v39 }
 0x13e   :  { %1577 = vst.msk [vmem:[#allocation3 + $0x318] sm:$0xff] %vm22_vm1, %v1433_v55  ;;  %1578 = vst.msk [vmem:[#allocation3 + $0x320] sm:$0xff] %vm22_vm1, %v1434_v43  ;;  %v433_v1 = vld [vmem:[#allocation5 + $0x5f8] sm:$0xff]  ;;  %v439_v7 = vld [vmem:[#allocation5 + $0x628] sm:$0xff]  ;;  %v1294_v57 = vmax.f32 %v860_v62, %v1005_v58 }
 0x13f   :  { %v1684_v2 = vld [vmem:[#allocation3 + $0x2e8] ss:$2 sm:$0x3f]  ;;  %v1780_v3 = vld [vmem:[#allocation3 + $0x2eb] ss:$2 sm:$0x3f] }
 0x140   :  { %1579 = vst.msk [vmem:[#allocation3 + $0x328] sm:$0x3] %vm25_vm2, %v1435_v11  ;;  %v1876_v4 = vld [vmem:[#allocation3 + $0x2ee] ss:$2 sm:$0x3f]  ;;  %v1940_v60 = vmax.f32 %v1684_v2, %v1780_v3  ;;  %v864_v23 = vld [vmem:[#allocation2 + $0xa20] sm:$0xff] }
 0x141   :  { %690 = vst.msk [vmem:[#allocation2 + $0x9f1] sm:$0xff] %vm499_vm3, %v432_v63  ;;  %691 = vst.msk [vmem:[#allocation2 + $0x9f9] sm:$0xff] %vm499_vm3, %v433_v1  ;;  %v444_v59 = vld [vmem:[#allocation5 + $0x650] sm:$0xff]  ;;  %v445_v61 = vld [vmem:[#allocation5 + $0x658] sm:$0xff] }
 0x142   :  { %696 = vst.msk [vmem:[#allocation2 + $0xa69] sm:$0xff] %vm499_vm3, %v438_v5  ;;  %697 = vst.msk [vmem:[#allocation2 + $0xa71] sm:$0xff] %vm499_vm3, %v439_v7  ;;  %v1988_v13 = vmax.f32 %v1940_v60, %v1876_v4  ;;  %v436_v14 = vld [vmem:[#allocation5 + $0x610] sm:$0xff]  ;;  %v865_v28 = vld [vmem:[#allocation2 + $0xa28] sm:$0xff] }
 0x143   :  { %2208 = vst.msk [vmem:[#allocation4 + $0x50] sm:$0x3f] %vm2197_vm5, %v2074_v8  ;;  %v1686_v15 = vld [vmem:[#allocation3 + $0x300] ss:$2 sm:$0x3f]  ;;  %v1007_v38 = vld [vmem:[#allocation2 + $0x9b0] sm:$0xff] }
 0x144   :  { %702 = vst.msk [vmem:[#allocation2 + $0xab1] sm:$0xff] %vm499_vm3, %v444_v59  ;;  %703 = vst.msk [vmem:[#allocation2 + $0xab9] sm:$0xff] %vm499_vm3, %v445_v61  ;;  %v1782_v16 = vld [vmem:[#allocation3 + $0x303] ss:$2 sm:$0x3f]  ;;  %2115 = vrot.lane.b32.xlu1 %v1988_v13, %s2813_s0  ;;  %v1296_v46 = vmax.f32 %v3658_v34, %v1007_v38  ;;  %v437_v33 = vld [vmem:[#allocation5 + $0x618] sm:$0xff] }
 0x145   :  { %v863_v17 = vld [vmem:[#allocation2 + $0x970] sm:$0x3]  ;;  %694 = vst.msk [vmem:[#allocation2 + $0xa51] sm:$0xff] %vm499_vm3, %v436_v14  ;;  %v1941_v6 = vmax.f32 %v1686_v15, %v1782_v16  ;;  %v1148_v20 = vld [vmem:[#allocation2 + $0x9c0] sm:$0xff]  ;;  %v1149_v22 = vld [vmem:[#allocation2 + $0x9c8] sm:$0xff] }
 0x146   :  { %v1878_v19 = vld [vmem:[#allocation3 + $0x306] ss:$2 sm:$0x3f]  ;;  %v1688_v24 = vld [vmem:[#allocation3 + $0x318] ss:$2 sm:$0x3f]  ;;  %v1436_v26 = vmax.f32 %v1292_v12, %v1148_v20  ;;  %v1437_v27 = vmax.f32 %v1293_v56, %v1149_v22 }
 0x147   :  { %v1784_v25 = vld [vmem:[#allocation3 + $0x31b] ss:$2 sm:$0x3f]  ;;  %v866_v29 = vld [vmem:[#allocation2 + $0xa30] sm:$0x3]  ;;  %v1989_v30 = vmax.f32 %v1941_v6, %v1878_v19  ;;  %v1006_v35 = vld [vmem:[#allocation2 + $0x9a8] sm:$0xff] }
 0x148   :  { %v1880_v31 = vld [vmem:[#allocation3 + $0x31e] ss:$2 sm:$0x3f]  ;;  %v1942_v9 = vmax.f32 %v1688_v24, %v1784_v25  ;;  %v1150_v32 = vld [vmem:[#allocation2 + $0x9d0] sm:$0x3]  ;;  %1580 = vst.msk [vmem:[#allocation3 + $0x330] sm:$0xff] %vm22_vm1, %v1436_v26  ;;  %v1295_v0 = vmax.f32 %v3656_v54, %v1006_v35 }
 0x149   :  { %2209 = vst.msk [vmem:[#allocation4 + $0x58] sm:$0x3f] %vm2197_vm5, %v2076_v10  ;;  %v1438_v36 = vmax.f32 %v1294_v57, %v1150_v32  ;;  %v1008_v18 = vld [vmem:[#allocation2 + $0x9b8] sm:$0x3]  ;;  %v1151_v41 = vld [vmem:[#allocation2 + $0x9f0] sm:$0xff]  ;;  %2117 = vrot.lane.b32.xlu0 %v1989_v30, %s2813_s0  ;;  %v1009_v48 = vld [vmem:[#allocation2 + $0xa68] sm:$0xff] }
 0x14a   :  { %1581 = vst.msk [vmem:[#allocation3 + $0x338] sm:$0xff] %vm22_vm1, %v1437_v27  ;;  %v1990_v44 = vmax.f32 %v1942_v9, %v1880_v31  ;;  %v1152_v42 = vld [vmem:[#allocation2 + $0x9f8] sm:$0xff]  ;;  %v1153_v45 = vld [vmem:[#allocation2 + $0xa00] sm:$0x3]  ;;  %v1297_v47 = vmax.f32 %v863_v17, %v1008_v18  ;;  %v1439_v49 = vmax.f32 %v1295_v0, %v1151_v41  ;;  %v1010_v50 = vld [vmem:[#allocation2 + $0xa70] sm:$0xff]  ;;  %v1298_v54 = vmax.f32 %v864_v23, %v1009_v48  ;;  %v2080_v23 = vpop.permute.xlu1 %2079  ;;  %v2082_v41 = vpop.permute.xlu0 %2081 }
 0x14b   :  { %2210 = vst.msk [vmem:[#allocation4 + $0x60] sm:$0x3f] %vm2197_vm5, %v2078_v21  ;;  %v1011_v51 = vld [vmem:[#allocation2 + $0xa78] sm:$0x3]  ;;  %v3696_v52 = vld [vmem:[#allocation2 + $0xab0] sm:$0xff]  ;;  %v1440_v53 = vmax.f32 %v1296_v46, %v1152_v42  ;;  %v1299_v34 = vmax.f32 %v865_v28, %v1010_v50  ;;  %v442_v40 = vld [vmem:[#allocation5 + $0x640] sm:$0xff] }
 0x14c   :  { %1582 = vst.msk [vmem:[#allocation3 + $0x340] sm:$0x3] %vm25_vm2, %v1438_v36  ;;  %2119 = vrot.lane.b32.xlu1 %v1990_v44, %s2813_s0  ;;  %v1441_v55 = vmax.f32 %v1297_v47, %v1153_v45  ;;  %v3699_v43 = vld [vmem:[#allocation2 + $0xab8] sm:$0xff]  ;;  %v1156_v39 = vld [vmem:[#allocation2 + $0xac0] sm:$0x3]  ;;  %v1300_v11 = vmax.f32 %v866_v29, %v1011_v51  ;;  %v1442_v37 = vmax.f32 %v1298_v54, %v3696_v52  ;;  %v443_v62 = vld [vmem:[#allocation5 + $0x648] sm:$0xff] }
 0x14d   :  { %1583 = vst.msk [vmem:[#allocation3 + $0x348] sm:$0xff] %vm22_vm1, %v1439_v49  ;;  %v448_v58 = vld [vmem:[#allocation5 + $0x670] sm:$0xff]  ;;  %1584 = vst.msk [vmem:[#allocation3 + $0x350] sm:$0xff] %vm22_vm1, %v1440_v53  ;;  %v1443_v63 = vmax.f32 %v1299_v34, %v3699_v43  ;;  %v449_v2 = vld [vmem:[#allocation5 + $0x678] sm:$0xff] }
 0x14e   :  { %695 = vst.msk [vmem:[#allocation2 + $0xa59] sm:$0xff] %vm499_vm3, %v437_v33  ;;  %v1444_v1 = vmax.f32 %v1300_v11, %v1156_v39  ;;  %700 = vst.msk [vmem:[#allocation2 + $0xa99] sm:$0xff] %vm499_vm3, %v442_v40  ;;  %v440_v3 = vld [vmem:[#allocation5 + $0x630] sm:$0xff]  ;;  %v441_v4 = vld [vmem:[#allocation5 + $0x638] sm:$0xff]  ;;  %v2084_v54 = vpop.permute.xlu1 %2083 }
 0x14f   :  { %1585 = vst.msk [vmem:[#allocation3 + $0x358] sm:$0x3] %vm25_vm2, %v1441_v55  ;;  %v446_v60 = vld [vmem:[#allocation5 + $0x660] sm:$0xff]  ;;  %v447_v5 = vld [vmem:[#allocation5 + $0x668] sm:$0xff]  ;;  %v452_v56 = vld [vmem:[#allocation5 + $0x690] sm:$0xff] }
 0x150   :  { %701 = vst.msk [vmem:[#allocation2 + $0xaa1] sm:$0xff] %vm499_vm3, %v443_v62  ;;  %706 = vst.msk [vmem:[#allocation2 + $0xae1] sm:$0xff] %vm499_vm3, %v448_v58  ;;  %v453_v59 = vld [vmem:[#allocation5 + $0x698] sm:$0xff]  ;;  %v450_v61 = vld [vmem:[#allocation5 + $0x680] sm:$0xff] }
 0x151   :  { %1586 = vst.msk [vmem:[#allocation3 + $0x360] sm:$0xff] %vm22_vm1, %v1442_v37  ;;  %v1690_v7 = vld [vmem:[#allocation3 + $0x330] ss:$2 sm:$0x3f]  ;;  %1587 = vst.msk [vmem:[#allocation3 + $0x368] sm:$0xff] %vm22_vm1, %v1443_v63  ;;  %v451_v14 = vld [vmem:[#allocation5 + $0x688] sm:$0xff] }
 0x152   :  { %707 = vst.msk [vmem:[#allocation2 + $0xae9] sm:$0xff] %vm499_vm3, %v449_v2  ;;  %698 = vst.msk [vmem:[#allocation2 + $0xa81] sm:$0xff] %vm499_vm3, %v440_v3  ;;  %v1786_v8 = vld [vmem:[#allocation3 + $0x333] ss:$2 sm:$0x3f]  ;;  %v454_v19 = vld [vmem:[#allocation5 + $0x6a0] sm:$0xff] }
 0x153   :  { %1588 = vst.msk [vmem:[#allocation3 + $0x370] sm:$0x3] %vm25_vm2, %v1444_v1  ;;  %v1943_v12 = vmax.f32 %v1690_v7, %v1786_v8  ;;  %v1882_v13 = vld [vmem:[#allocation3 + $0x336] ss:$2 sm:$0x3f]  ;;  %v455_v22 = vld [vmem:[#allocation5 + $0x6a8] sm:$0xff] }
 0x154   :  { %699 = vst.msk [vmem:[#allocation2 + $0xa89] sm:$0xff] %vm499_vm3, %v441_v4  ;;  %704 = vst.msk [vmem:[#allocation2 + $0xac9] sm:$0xff] %vm499_vm3, %v446_v60  ;;  %v456_v15 = vld [vmem:[#allocation5 + $0x6b0] sm:$0xff]  ;;  %v457_v17 = vld [vmem:[#allocation5 + $0x6b8] sm:$0xff] }
 0x155   :  { %705 = vst.msk [vmem:[#allocation2 + $0xad1] sm:$0xff] %vm499_vm3, %v447_v5  ;;  %710 = vst.msk [vmem:[#allocation2 + $0xb11] sm:$0xff] %vm499_vm3, %v452_v56  ;;  %v1991_v16 = vmax.f32 %v1943_v12, %v1882_v13  ;;  %v867_v57 = vld [vmem:[#allocation2 + $0xa50] sm:$0xff]  ;;  %v868_v6 = vld [vmem:[#allocation2 + $0xa58] sm:$0xff] }
 0x156   :  { %711 = vst.msk [vmem:[#allocation2 + $0xb19] sm:$0xff] %vm499_vm3, %v453_v59  ;;  %708 = vst.msk [vmem:[#allocation2 + $0xaf9] sm:$0xff] %vm499_vm3, %v450_v61  ;;  %v869_v20 = vld [vmem:[#allocation2 + $0xa60] sm:$0x3]  ;;  %v1012_v28 = vld [vmem:[#allocation2 + $0xa98] sm:$0xff] }
 0x157   :  { %709 = vst.msk [vmem:[#allocation2 + $0xb01] sm:$0xff] %vm499_vm3, %v451_v14  ;;  %714 = vst.msk [vmem:[#allocation2 + $0xb41] sm:$0xff] %vm499_vm3, %v456_v15  ;;  %2121 = vrot.lane.b32.xlu0 %v1991_v16, %s2813_s0  ;;  %v1692_v24 = vld [vmem:[#allocation3 + $0x348] ss:$2 sm:$0x3f]  ;;  %v1013_v29 = vld [vmem:[#allocation2 + $0xaa0] sm:$0xff]  ;;  %v1301_v31 = vmax.f32 %v867_v57, %v1012_v28 }
 0x158   :  { %715 = vst.msk [vmem:[#allocation2 + $0xb49] sm:$0xff] %vm499_vm3, %v457_v17  ;;  %712 = vst.msk [vmem:[#allocation2 + $0xb29] sm:$0xff] %vm499_vm3, %v454_v19  ;;  %v1788_v25 = vld [vmem:[#allocation3 + $0x34b] ss:$2 sm:$0x3f]  ;;  %v1302_v9 = vmax.f32 %v868_v6, %v1013_v29  ;;  %v3728_v18 = vld [vmem:[#allocation2 + $0xae0] sm:$0xff] }
 0x159   :  { %713 = vst.msk [vmem:[#allocation2 + $0xb31] sm:$0xff] %vm499_vm3, %v455_v22  ;;  %v1884_v26 = vld [vmem:[#allocation3 + $0x34e] ss:$2 sm:$0x3f]  ;;  %v1944_v27 = vmax.f32 %v1692_v24, %v1788_v25  ;;  %v1014_v38 = vld [vmem:[#allocation2 + $0xaa8] sm:$0x3]  ;;  %v1445_v42 = vmax.f32 %v1301_v31, %v3728_v18 }
 0x15a   :  { %2211 = vst.msk [vmem:[#allocation4 + $0x68] sm:$0x3f] %vm2197_vm5, %v2080_v23  ;;  %v1694_v10 = vld [vmem:[#allocation3 + $0x360] ss:$2 sm:$0x3f]  ;;  %v1303_v44 = vmax.f32 %v869_v20, %v1014_v38  ;;  %v460_v59 = vld [vmem:[#allocation5 + $0x6d0] sm:$0xff] }
 0x15b   :  { %v1790_v30 = vld [vmem:[#allocation3 + $0x363] ss:$2 sm:$0x3f]  ;;  %v1992_v32 = vmax.f32 %v1944_v27, %v1884_v26  ;;  %v1886_v35 = vld [vmem:[#allocation3 + $0x366] ss:$2 sm:$0x3f]  ;;  %v2086_v27 = vpop.permute.xlu0 %2085 }
 0x15c   :  { %v1945_v36 = vmax.f32 %v1694_v10, %v1790_v30  ;;  %v3730_v0 = vld [vmem:[#allocation2 + $0xae8] sm:$0xff]  ;;  %v1159_v21 = vld [vmem:[#allocation2 + $0xaf0] sm:$0x3]  ;;  %v870_v45 = vld [vmem:[#allocation2 + $0xa80] sm:$0xff]  ;;  %2212 = vst.msk [vmem:[#allocation4 + $0x70] sm:$0x3f] %vm2197_vm5, %v2082_v41 }
 0x15d   :  { %v875_v46 = vld [vmem:[#allocation2 + $0xac0] sm:$0x3]  ;;  %2123 = vrot.lane.b32.xlu1 %v1992_v32, %s2813_s0  ;;  %v1446_v48 = vmax.f32 %v1302_v9, %v3730_v0  ;;  %v871_v49 = vld [vmem:[#allocation2 + $0xa88] sm:$0xff]  ;;  %v872_v50 = vld [vmem:[#allocation2 + $0xa90] sm:$0x3]  ;;  %v1447_v53 = vmax.f32 %v1303_v44, %v1159_v21  ;;  %1589 = vst.msk [vmem:[#allocation3 + $0x378] sm:$0xff] %vm22_vm1, %v1445_v42 }
 0x15e   :  { %v1993_v47 = vmax.f32 %v1945_v36, %v1886_v35  ;;  %v1015_v51 = vld [vmem:[#allocation2 + $0xac8] sm:$0xff]  ;;  %v1016_v55 = vld [vmem:[#allocation2 + $0xad0] sm:$0xff]  ;;  %v1017_v39 = vld [vmem:[#allocation2 + $0xad8] sm:$0x3]  ;;  %2213 = vst.msk [vmem:[#allocation4 + $0x78] sm:$0x3f] %vm2197_vm5, %v2084_v54 }
 0x15f   :  { %v3737_v34 = vld [vmem:[#allocation2 + $0xb10] sm:$0xff]  ;;  %v1304_v11 = vmax.f32 %v870_v45, %v1015_v51  ;;  %1590 = vst.msk [vmem:[#allocation3 + $0x380] sm:$0xff] %vm22_vm1, %v1446_v48  ;;  %v3742_v33 = vld [vmem:[#allocation2 + $0xb18] sm:$0xff]  ;;  %v1162_v37 = vld [vmem:[#allocation2 + $0xb20] sm:$0x3]  ;;  %v1305_v40 = vmax.f32 %v871_v49, %v1016_v55  ;;  %v1306_v62 = vmax.f32 %v872_v50, %v1017_v39  ;;  %v2088_v49 = vpop.permute.xlu1 %2087 }
 0x160   :  { %2125 = vrot.lane.b32.xlu0 %v1993_v47, %s2813_s0  ;;  %v1018_v58 = vld [vmem:[#allocation2 + $0xaf8] sm:$0xff]  ;;  %1591 = vst.msk [vmem:[#allocation3 + $0x388] sm:$0x3] %vm25_vm2, %v1447_v53  ;;  %v1019_v1 = vld [vmem:[#allocation2 + $0xb00] sm:$0xff]  ;;  %v1020_v2 = vld [vmem:[#allocation2 + $0xb08] sm:$0x3] }
 0x161   :  { %v1448_v63 = vmax.f32 %v1304_v11, %v3737_v34  ;;  %v1163_v3 = vld [vmem:[#allocation2 + $0xb40] sm:$0xff]  ;;  %v1307_v4 = vmax.f32 %v3696_v52, %v1018_v58  ;;  %v1449_v60 = vmax.f32 %v1305_v40, %v3742_v33  ;;  %v1450_v5 = vmax.f32 %v1306_v62, %v1162_v37  ;;  %v1164_v7 = vld [vmem:[#allocation2 + $0xb48] sm:$0xff]  ;;  %v1165_v8 = vld [vmem:[#allocation2 + $0xb50] sm:$0x3]  ;;  %718 = vst.msk [vmem:[#allocation2 + $0xb71] sm:$0xff] %vm499_vm3, %v460_v59  ;;  %v2090_v58 = vpop.permute.xlu0 %2089 }
 0x162   :  { %v1308_v12 = vmax.f32 %v3699_v43, %v1019_v1  ;;  %v1309_v56 = vmax.f32 %v875_v46, %v1020_v2  ;;  %v461_v13 = vld [vmem:[#allocation5 + $0x6d8] sm:$0xff]  ;;  %v878_v15 = vld [vmem:[#allocation2 + $0xaf0] sm:$0x3]  ;;  %v1021_v16 = vld [vmem:[#allocation2 + $0xb28] sm:$0xff]  ;;  %2214 = vst.msk [vmem:[#allocation4 + $0x80] sm:$0x3f] %vm2197_vm5, %v2086_v27 }
 0x163   :  { %1592 = vst.msk [vmem:[#allocation3 + $0x390] sm:$0xff] %vm22_vm1, %v1448_v63  ;;  %v1451_v61 = vmax.f32 %v1307_v4, %v1163_v3  ;;  %1593 = vst.msk [vmem:[#allocation3 + $0x398] sm:$0xff] %vm22_vm1, %v1449_v60  ;;  %v1022_v57 = vld [vmem:[#allocation2 + $0xb30] sm:$0xff]  ;;  %v458_v43 = vld [vmem:[#allocation5 + $0x6c0] sm:$0xff]  ;;  %v1310_v26 = vmax.f32 %v3728_v18, %v1021_v16 }
 0x164   :  { %1594 = vst.msk [vmem:[#allocation3 + $0x3a0] sm:$0x3] %vm25_vm2, %v1450_v5  ;;  %v1452_v52 = vmax.f32 %v1308_v12, %v1164_v7  ;;  %v1453_v14 = vmax.f32 %v1309_v56, %v1165_v8  ;;  %v459_v17 = vld [vmem:[#allocation5 + $0x6c8] sm:$0xff]  ;;  %v464_v19 = vld [vmem:[#allocation5 + $0x6f0] sm:$0xff]  ;;  %v465_v6 = vld [vmem:[#allocation5 + $0x6f8] sm:$0xff]  ;;  %v1311_v31 = vmax.f32 %v3730_v0, %v1022_v57 }
 0x165   :  { %719 = vst.msk [vmem:[#allocation2 + $0xb79] sm:$0xff] %vm499_vm3, %v461_v13  ;;  %716 = vst.msk [vmem:[#allocation2 + $0xb59] sm:$0xff] %vm499_vm3, %v458_v43  ;;  %v1023_v20 = vld [vmem:[#allocation2 + $0xb38] sm:$0x3]  ;;  %v470_v22 = vld [vmem:[#allocation5 + $0x720] sm:$0xff] }
 0x166   :  { %1595 = vst.msk [vmem:[#allocation3 + $0x3a8] sm:$0xff] %vm22_vm1, %v1451_v61  ;;  %1596 = vst.msk [vmem:[#allocation3 + $0x3b0] sm:$0xff] %vm22_vm1, %v1452_v52  ;;  %v471_v23 = vld [vmem:[#allocation5 + $0x728] sm:$0xff]  ;;  %v1696_v24 = vld [vmem:[#allocation3 + $0x378] ss:$2 sm:$0x3f]  ;;  %v1312_v9 = vmax.f32 %v878_v15, %v1023_v20 }
 0x167   :  { %1597 = vst.msk [vmem:[#allocation3 + $0x3b8] sm:$0x3] %vm25_vm2, %v1453_v14  ;;  %v1792_v25 = vld [vmem:[#allocation3 + $0x37b] ss:$2 sm:$0x3f]  ;;  %v476_v10 = vld [vmem:[#allocation5 + $0x750] sm:$0xff] }
 0x168   :  { %717 = vst.msk [vmem:[#allocation2 + $0xb61] sm:$0xff] %vm499_vm3, %v459_v17  ;;  %722 = vst.msk [vmem:[#allocation2 + $0xba1] sm:$0xff] %vm499_vm3, %v464_v19  ;;  %v1888_v28 = vld [vmem:[#allocation3 + $0x37e] ss:$2 sm:$0x3f]  ;;  %v1946_v29 = vmax.f32 %v1696_v24, %v1792_v25  ;;  %v1166_v35 = vld [vmem:[#allocation2 + $0xb70] sm:$0xff] }
 0x169   :  { %723 = vst.msk [vmem:[#allocation2 + $0xba9] sm:$0xff] %vm499_vm3, %v465_v6  ;;  %728 = vst.msk [vmem:[#allocation2 + $0xc19] sm:$0xff] %vm499_vm3, %v470_v22  ;;  %v477_v30 = vld [vmem:[#allocation5 + $0x758] sm:$0xff]  ;;  %v468_v36 = vld [vmem:[#allocation5 + $0x710] sm:$0xff]  ;;  %v1454_v21 = vmax.f32 %v1310_v26, %v1166_v35 }
 0x16a   :  { %729 = vst.msk [vmem:[#allocation2 + $0xc21] sm:$0xff] %vm499_vm3, %v471_v23  ;;  %734 = vst.msk [vmem:[#allocation2 + $0xc61] sm:$0xff] %vm499_vm3, %v476_v10  ;;  %v1994_v32 = vmax.f32 %v1946_v29, %v1888_v28  ;;  %v469_v38 = vld [vmem:[#allocation5 + $0x718] sm:$0xff]  ;;  %v881_v44 = vld [vmem:[#allocation2 + $0xb20] sm:$0x3] }
 0x16b   :  { %735 = vst.msk [vmem:[#allocation2 + $0xc69] sm:$0xff] %vm499_vm3, %v477_v30  ;;  %v1698_v18 = vld [vmem:[#allocation3 + $0x390] ss:$2 sm:$0x3f]  ;;  %726 = vst.msk [vmem:[#allocation2 + $0xc01] sm:$0xff] %vm499_vm3, %v468_v36  ;;  %v474_v57 = vld [vmem:[#allocation5 + $0x740] sm:$0xff] }
 0x16c   :  { %v1794_v41 = vld [vmem:[#allocation3 + $0x393] ss:$2 sm:$0x3f]  ;;  %727 = vst.msk [vmem:[#allocation2 + $0xc09] sm:$0xff] %vm499_vm3, %v469_v38  ;;  %2127 = vrot.lane.b32.xlu1 %v1994_v32, %s2813_s0  ;;  %v1168_v46 = vld [vmem:[#allocation2 + $0xb80] sm:$0x3] }
 0x16d   :  { %v1890_v0 = vld [vmem:[#allocation3 + $0x396] ss:$2 sm:$0x3f]  ;;  %v1947_v42 = vmax.f32 %v1698_v18, %v1794_v41  ;;  %v1700_v50 = vld [vmem:[#allocation3 + $0x3a8] ss:$2 sm:$0x3f]  ;;  %v1456_v53 = vmax.f32 %v1312_v9, %v1168_v46 }
 0x16e   :  { %v1167_v45 = vld [vmem:[#allocation2 + $0xb78] sm:$0xff]  ;;  %v882_v47 = vld [vmem:[#allocation2 + $0xbd0] sm:$0xff]  ;;  %1598 = vst.msk [vmem:[#allocation3 + $0x3c0] sm:$0xff] %vm22_vm1, %v1454_v21  ;;  %v884_v55 = vld [vmem:[#allocation2 + $0xbe0] sm:$0x3] }
 0x16f   :  { %v883_v48 = vld [vmem:[#allocation2 + $0xbd8] sm:$0xff]  ;;  %v1796_v51 = vld [vmem:[#allocation3 + $0x3ab] ss:$2 sm:$0x3f]  ;;  %v1455_v54 = vmax.f32 %v1311_v31, %v1167_v45  ;;  %2215 = vst.msk [vmem:[#allocation4 + $0x88] sm:$0x3f] %vm2197_vm5, %v2088_v49  ;;  %v1995_v39 = vmax.f32 %v1947_v42, %v1890_v0  ;;  %v2092_v45 = vpop.permute.xlu1 %2091 }
 0x170   :  { %v1892_v11 = vld [vmem:[#allocation3 + $0x3ae] ss:$2 sm:$0x3f]  ;;  %v1948_v37 = vmax.f32 %v1700_v50, %v1796_v51  ;;  %v1025_v62 = vld [vmem:[#allocation2 + $0xb60] sm:$0xff]  ;;  %1600 = vst.msk [vmem:[#allocation3 + $0x3d0] sm:$0x3] %vm25_vm2, %v1456_v53 }
 0x171   :  { %v1024_v40 = vld [vmem:[#allocation2 + $0xb58] sm:$0xff]  ;;  %1599 = vst.msk [vmem:[#allocation3 + $0x3c8] sm:$0xff] %vm22_vm1, %v1455_v54  ;;  %v1026_v63 = vld [vmem:[#allocation2 + $0xb68] sm:$0x3]  ;;  %v1169_v1 = vld [vmem:[#allocation2 + $0xba0] sm:$0xff]  ;;  %v1314_v4 = vmax.f32 %v3742_v33, %v1025_v62  ;;  %2129 = vrot.lane.b32.xlu0 %v1995_v39, %s2813_s0 }
 0x172   :  { %v1170_v2 = vld [vmem:[#allocation2 + $0xba8] sm:$0xff]  ;;  %v1313_v3 = vmax.f32 %v3737_v34, %v1024_v40  ;;  %2216 = vst.msk [vmem:[#allocation4 + $0x90] sm:$0x3f] %vm2197_vm5, %v2090_v58  ;;  %v1996_v60 = vmax.f32 %v1948_v37, %v1892_v11  ;;  %v1171_v5 = vld [vmem:[#allocation2 + $0xbb0] sm:$0x3]  ;;  %v1315_v7 = vmax.f32 %v881_v44, %v1026_v63  ;;  %v1027_v8 = vld [vmem:[#allocation2 + $0xc18] sm:$0xff] }
 0x173   :  { %v1028_v12 = vld [vmem:[#allocation2 + $0xc20] sm:$0xff]  ;;  %v1458_v59 = vmax.f32 %v1314_v4, %v1170_v2  ;;  %v1029_v61 = vld [vmem:[#allocation2 + $0xc28] sm:$0x3]  ;;  %v1316_v14 = vmax.f32 %v882_v47, %v1027_v8  ;;  %v1174_v15 = vld [vmem:[#allocation2 + $0xc70] sm:$0x3]  ;;  %732 = vst.msk [vmem:[#allocation2 + $0xc49] sm:$0xff] %vm499_vm3, %v474_v57  ;;  %v2094_v4 = vpop.permute.xlu0 %2093 }
 0x174   :  { %v1457_v56 = vmax.f32 %v1313_v3, %v1169_v1  ;;  %v3779_v13 = vld [vmem:[#allocation2 + $0xc60] sm:$0xff]  ;;  %v3781_v52 = vld [vmem:[#allocation2 + $0xc68] sm:$0xff]  ;;  %v1317_v34 = vmax.f32 %v883_v48, %v1028_v12  ;;  %2131 = vrot.lane.b32.xlu1 %v1996_v60, %s2813_s0  ;;  %v1459_v33 = vmax.f32 %v1315_v7, %v1171_v5  ;;  %v1318_v16 = vmax.f32 %v884_v55, %v1029_v61  ;;  %v480_v6 = vld [vmem:[#allocation5 + $0x770] sm:$0xff] }
 0x175   :  { %v475_v43 = vld [vmem:[#allocation5 + $0x748] sm:$0xff]  ;;  %1602 = vst.msk [vmem:[#allocation3 + $0x3e0] sm:$0xff] %vm22_vm1, %v1458_v59  ;;  %v1460_v17 = vmax.f32 %v1316_v14, %v3779_v13  ;;  %v481_v20 = vld [vmem:[#allocation5 + $0x778] sm:$0xff]  ;;  %v472_v23 = vld [vmem:[#allocation5 + $0x730] sm:$0xff] }
 0x176   :  { %1601 = vst.msk [vmem:[#allocation3 + $0x3d8] sm:$0xff] %vm22_vm1, %v1457_v56  ;;  %v1461_v19 = vmax.f32 %v1317_v34, %v3781_v52  ;;  %v1462_v22 = vmax.f32 %v1318_v16, %v1174_v15  ;;  %v473_v24 = vld [vmem:[#allocation5 + $0x738] sm:$0xff]  ;;  %v478_v25 = vld [vmem:[#allocation5 + $0x760] sm:$0xff]  ;;  %v479_v26 = vld [vmem:[#allocation5 + $0x768] sm:$0xff] }
 0x177   :  { %733 = vst.msk [vmem:[#allocation2 + $0xc51] sm:$0xff] %vm499_vm3, %v475_v43  ;;  %738 = vst.msk [vmem:[#allocation2 + $0xc91] sm:$0xff] %vm499_vm3, %v480_v6  ;;  %v885_v30 = vld [vmem:[#allocation2 + $0xc00] sm:$0xff]  ;;  %v886_v31 = vld [vmem:[#allocation2 + $0xc08] sm:$0xff] }
 0x178   :  { %1603 = vst.msk [vmem:[#allocation3 + $0x3e8] sm:$0x3] %vm25_vm2, %v1459_v33  ;;  %v1702_v27 = vld [vmem:[#allocation3 + $0x3c0] ss:$2 sm:$0x3f]  ;;  %v484_v9 = vld [vmem:[#allocation5 + $0x790] sm:$0xff]  ;;  %v2096_v33 = vpop.permute.xlu1 %2095 }
 0x179   :  { %739 = vst.msk [vmem:[#allocation2 + $0xc99] sm:$0xff] %vm499_vm3, %v481_v20  ;;  %730 = vst.msk [vmem:[#allocation2 + $0xc31] sm:$0xff] %vm499_vm3, %v472_v23  ;;  %v1798_v28 = vld [vmem:[#allocation3 + $0x3c3] ss:$2 sm:$0x3f]  ;;  %v485_v32 = vld [vmem:[#allocation5 + $0x798] sm:$0xff] }
 0x17a   :  { %1604 = vst.msk [vmem:[#allocation3 + $0x3f0] sm:$0xff] %vm22_vm1, %v1460_v17  ;;  %1605 = vst.msk [vmem:[#allocation3 + $0x3f8] sm:$0xff] %vm22_vm1, %v1461_v19  ;;  %v1894_v29 = vld [vmem:[#allocation3 + $0x3c6] ss:$2 sm:$0x3f]  ;;  %v1949_v10 = vmax.f32 %v1702_v27, %v1798_v28  ;;  %v489_v21 = vld [vmem:[#allocation5 + $0x7b8] sm:$0xff] }
 0x17b   :  { %1606 = vst.msk [vmem:[#allocation3 + $0x400] sm:$0x3] %vm25_vm2, %v1462_v22  ;;  %v482_v35 = vld [vmem:[#allocation5 + $0x780] sm:$0xff]  ;;  %v483_v36 = vld [vmem:[#allocation5 + $0x788] sm:$0xff]  ;;  %v488_v38 = vld [vmem:[#allocation5 + $0x7b0] sm:$0xff] }
 0x17c   :  { %731 = vst.msk [vmem:[#allocation2 + $0xc39] sm:$0xff] %vm499_vm3, %v473_v24  ;;  %736 = vst.msk [vmem:[#allocation2 + $0xc79] sm:$0xff] %vm499_vm3, %v478_v25  ;;  %v1997_v18 = vmax.f32 %v1949_v10, %v1894_v29  ;;  %v887_v41 = vld [vmem:[#allocation2 + $0xc10] sm:$0x3]  ;;  %v486_v44 = vld [vmem:[#allocation5 + $0x7a0] sm:$0xff] }
 0x17d   :  { %737 = vst.msk [vmem:[#allocation2 + $0xc81] sm:$0xff] %vm499_vm3, %v479_v26  ;;  %742 = vst.msk [vmem:[#allocation2 + $0xcc1] sm:$0xff] %vm499_vm3, %v484_v9  ;;  %v1704_v0 = vld [vmem:[#allocation3 + $0x3d8] ss:$2 sm:$0x3f]  ;;  %v1030_v48 = vld [vmem:[#allocation2 + $0xc48] sm:$0xff] }
 0x17e   :  { %743 = vst.msk [vmem:[#allocation2 + $0xcc9] sm:$0xff] %vm499_vm3, %v485_v32  ;;  %740 = vst.msk [vmem:[#allocation2 + $0xca9] sm:$0xff] %vm499_vm3, %v482_v35  ;;  %v1800_v42 = vld [vmem:[#allocation3 + $0x3db] ss:$2 sm:$0x3f]  ;;  %2133 = vrot.lane.b32.xlu0 %v1997_v18, %s2813_s0  ;;  %v1031_v49 = vld [vmem:[#allocation2 + $0xc50] sm:$0xff]  ;;  %v1319_v54 = vmax.f32 %v885_v30, %v1030_v48 }
 0x17f   :  { %741 = vst.msk [vmem:[#allocation2 + $0xcb1] sm:$0xff] %vm499_vm3, %v483_v36  ;;  %746 = vst.msk [vmem:[#allocation2 + $0xcf1] sm:$0xff] %vm499_vm3, %v488_v38  ;;  %v1896_v46 = vld [vmem:[#allocation3 + $0x3de] ss:$2 sm:$0x3f]  ;;  %v1950_v47 = vmax.f32 %v1704_v0, %v1800_v42  ;;  %v1320_v53 = vmax.f32 %v886_v31, %v1031_v49  ;;  %v3809_v40 = vld [vmem:[#allocation2 + $0xc90] sm:$0xff] }
 0x180   :  { %747 = vst.msk [vmem:[#allocation2 + $0xcf9] sm:$0xff] %vm499_vm3, %v489_v21  ;;  %744 = vst.msk [vmem:[#allocation2 + $0xcd9] sm:$0xff] %vm499_vm3, %v486_v44  ;;  %v1032_v37 = vld [vmem:[#allocation2 + $0xc58] sm:$0x3]  ;;  %v1177_v58 = vld [vmem:[#allocation2 + $0xca0] sm:$0x3]  ;;  %v1463_v1 = vmax.f32 %v1319_v54, %v3809_v40 }
 0x181   :  { %2217 = vst.msk [vmem:[#allocation4 + $0x98] sm:$0x3f] %vm2197_vm5, %v2092_v45  ;;  %v1706_v50 = vld [vmem:[#allocation3 + $0x3f0] ss:$2 sm:$0x3f]  ;;  %v1998_v55 = vmax.f32 %v1950_v47, %v1896_v46  ;;  %v1321_v63 = vmax.f32 %v887_v41, %v1032_v37  ;;  %v487_v10 = vld [vmem:[#allocation5 + $0x7a8] sm:$0xff]  ;;  %v2098_v45 = vpop.permute.xlu0 %2097 }
 0x182   :  { %v1802_v51 = vld [vmem:[#allocation3 + $0x3f3] ss:$2 sm:$0x3f]  ;;  %v1898_v39 = vld [vmem:[#allocation3 + $0x3f6] ss:$2 sm:$0x3f] }
 0x183   :  { %v1951_v11 = vmax.f32 %v1706_v50, %v1802_v51  ;;  %v3811_v62 = vld [vmem:[#allocation2 + $0xc98] sm:$0xff]  ;;  %v888_v2 = vld [vmem:[#allocation2 + $0xc30] sm:$0xff]  ;;  %2135 = vrot.lane.b32.xlu1 %v1998_v55, %s2813_s0  ;;  %v890_v8 = vld [vmem:[#allocation2 + $0xc40] sm:$0x3]  ;;  %2218 = vst.msk [vmem:[#allocation4 + $0xa0] sm:$0x3f] %vm2197_vm5, %v2094_v4  ;;  %v1465_v56 = vmax.f32 %v1321_v63, %v1177_v58  ;;  %v2100_v63 = vpop.permute.xlu1 %2099 }
 0x184   :  { %v893_v3 = vld [vmem:[#allocation2 + $0xc70] sm:$0x3]  ;;  %v1464_v5 = vmax.f32 %v1320_v53, %v3811_v62  ;;  %v889_v7 = vld [vmem:[#allocation2 + $0xc38] sm:$0xff]  ;;  %1607 = vst.msk [vmem:[#allocation3 + $0x408] sm:$0xff] %vm22_vm1, %v1463_v1  ;;  %v1034_v59 = vld [vmem:[#allocation2 + $0xc80] sm:$0xff] }
 0x185   :  { %v1999_v60 = vmax.f32 %v1951_v11, %v1898_v39  ;;  %v1033_v12 = vld [vmem:[#allocation2 + $0xc78] sm:$0xff]  ;;  %v1035_v61 = vld [vmem:[#allocation2 + $0xc88] sm:$0x3]  ;;  %v3818_v14 = vld [vmem:[#allocation2 + $0xcc0] sm:$0xff]  ;;  %v1323_v57 = vmax.f32 %v889_v7, %v1034_v59  ;;  %2219 = vst.msk [vmem:[#allocation4 + $0xa8] sm:$0x3f] %vm2197_vm5, %v2096_v33 }
 0x186   :  { %v1322_v34 = vmax.f32 %v888_v2, %v1033_v12  ;;  %1608 = vst.msk [vmem:[#allocation3 + $0x410] sm:$0xff] %vm22_vm1, %v1464_v5  ;;  %v3822_v15 = vld [vmem:[#allocation2 + $0xcc8] sm:$0xff]  ;;  %v1180_v16 = vld [vmem:[#allocation2 + $0xcd0] sm:$0x3]  ;;  %v1324_v43 = vmax.f32 %v890_v8, %v1035_v61  ;;  %v1038_v20 = vld [vmem:[#allocation2 + $0xcb8] sm:$0x3]  ;;  %v2102_v8 = vpop.permute.xlu0 %2101 }
 0x187   :  { %2137 = vrot.lane.b32.xlu0 %v1999_v60, %s2813_s0  ;;  %v1036_v17 = vld [vmem:[#allocation2 + $0xca8] sm:$0xff]  ;;  %1609 = vst.msk [vmem:[#allocation3 + $0x418] sm:$0x3] %vm25_vm2, %v1465_v56  ;;  %v1037_v6 = vld [vmem:[#allocation2 + $0xcb0] sm:$0xff]  ;;  %v1467_v24 = vmax.f32 %v1323_v57, %v3822_v15  ;;  %v1182_v26 = vld [vmem:[#allocation2 + $0xcf8] sm:$0xff]  ;;  %v1327_v29 = vmax.f32 %v893_v3, %v1038_v20 }
 0x188   :  { %v1466_v19 = vmax.f32 %v1322_v34, %v3818_v14  ;;  %v1181_v22 = vld [vmem:[#allocation2 + $0xcf0] sm:$0xff]  ;;  %v1325_v23 = vmax.f32 %v3779_v13, %v1036_v17  ;;  %v1468_v25 = vmax.f32 %v1324_v43, %v1180_v16  ;;  %v1183_v27 = vld [vmem:[#allocation2 + $0xd00] sm:$0x3]  ;;  %v1326_v28 = vmax.f32 %v3781_v52, %v1037_v6  ;;  %v493_v9 = vld [vmem:[#allocation5 + $0x7d8] sm:$0xff]  ;;  %745 = vst.msk [vmem:[#allocation2 + $0xce1] sm:$0xff] %vm499_vm3, %v487_v10 }
 0x189   :  { %v492_v31 = vld [vmem:[#allocation5 + $0x7d0] sm:$0xff]  ;;  %1611 = vst.msk [vmem:[#allocation3 + $0x428] sm:$0xff] %vm22_vm1, %v1467_v24  ;;  %v1471_v32 = vmax.f32 %v1327_v29, %v1183_v27  ;;  %v490_v52 = vld [vmem:[#allocation5 + $0x7c0] sm:$0xff]  ;;  %v491_v35 = vld [vmem:[#allocation5 + $0x7c8] sm:$0xff] }
 0x18a   :  { %1610 = vst.msk [vmem:[#allocation3 + $0x420] sm:$0xff] %vm22_vm1, %v1466_v19  ;;  %v1469_v30 = vmax.f32 %v1325_v23, %v1181_v22  ;;  %v1470_v13 = vmax.f32 %v1326_v28, %v1182_v26  ;;  %v496_v36 = vld [vmem:[#allocation5 + $0x7f0] sm:$0xff]  ;;  %v497_v38 = vld [vmem:[#allocation5 + $0x7f8] sm:$0xff]  ;;  %v896_v42 = vld [vmem:[#allocation2 + $0xca0] sm:$0x3] }
 0x18b   :  { %1612 = vst.msk [vmem:[#allocation3 + $0x430] sm:$0x3] %vm25_vm2, %v1468_v25  ;;  %1615 = vst.msk [vmem:[#allocation3 + $0x448] sm:$0x3] %vm25_vm2, %v1471_v32  ;;  %v1039_v18 = vld [vmem:[#allocation2 + $0xcd8] sm:$0xff] }
 0x18c   :  { %750 = vst.msk [vmem:[#allocation2 + $0xd21] sm:$0xff] %vm499_vm3, %v492_v31  ;;  %751 = vst.msk [vmem:[#allocation2 + $0xd29] sm:$0xff] %vm499_vm3, %v493_v9  ;;  %v1328_v46 = vmax.f32 %v3809_v40, %v1039_v18  ;;  %v899_v55 = vld [vmem:[#allocation2 + $0xcd0] sm:$0x3]  ;;  %v3861_v10 = vld [vmem:[#allocation4] sm:$0x3f] }
 0x18d   :  { %1613 = vst.msk [vmem:[#allocation3 + $0x438] sm:$0xff] %vm22_vm1, %v1469_v30  ;;  %1614 = vst.msk [vmem:[#allocation3 + $0x440] sm:$0xff] %vm22_vm1, %v1470_v13  ;;  %v1708_v41 = vld [vmem:[#allocation3 + $0x408] ss:$2 sm:$0x3f] }
 0x18e   :  { %748 = vst.msk [vmem:[#allocation2 + $0xd09] sm:$0xff] %vm499_vm3, %v490_v52  ;;  %749 = vst.msk [vmem:[#allocation2 + $0xd11] sm:$0xff] %vm499_vm3, %v491_v35  ;;  %v1804_v21 = vld [vmem:[#allocation3 + $0x40b] ss:$2 sm:$0x3f] }
 0x18f   :  { %754 = vst.msk [vmem:[#allocation2 + $0xd51] sm:$0xff] %vm499_vm3, %v496_v36  ;;  %755 = vst.msk [vmem:[#allocation2 + $0xd59] sm:$0xff] %vm499_vm3, %v497_v38  ;;  %v1900_v44 = vld [vmem:[#allocation3 + $0x40e] ss:$2 sm:$0x3f]  ;;  %v1952_v0 = vmax.f32 %v1708_v41, %v1804_v21  ;;  %v1040_v48 = vld [vmem:[#allocation2 + $0xce0] sm:$0xff] }
 0x190   :  { %2220 = vst.msk [vmem:[#allocation4 + $0xb0] sm:$0x3f] %vm2197_vm5, %v2098_v45  ;;  %v1041_v49 = vld [vmem:[#allocation2 + $0xce8] sm:$0x3]  ;;  %v1329_v54 = vmax.f32 %v3811_v62, %v1040_v48  ;;  %2221 = vst.msk [vmem:[#allocation4 + $0xb8] sm:$0x3f] %vm2197_vm5, %v2100_v63 }
 0x191   :  { %v2000_v47 = vmax.f32 %v1952_v0, %v1900_v44  ;;  %v1710_v50 = vld [vmem:[#allocation3 + $0x420] ss:$2 sm:$0x3f]  ;;  %v1806_v51 = vld [vmem:[#allocation3 + $0x423] ss:$2 sm:$0x3f]  ;;  %v1330_v53 = vmax.f32 %v896_v42, %v1041_v49 }
 0x192   :  { %v1902_v39 = vld [vmem:[#allocation3 + $0x426] ss:$2 sm:$0x3f]  ;;  %v1953_v11 = vmax.f32 %v1710_v50, %v1806_v51  ;;  %2222 = vst.msk [vmem:[#allocation4 + $0xc0] sm:$0x3f] %vm2197_vm5, %v2102_v8 }
 0x193   :  { %2139 = vrot.lane.b32.xlu1 %v2000_v47, %s2813_s0  ;;  %v1184_v37 = vld [vmem:[#allocation2 + $0xd20] sm:$0xff]  ;;  %v1185_v58 = vld [vmem:[#allocation2 + $0xd28] sm:$0xff]  ;;  %v1186_v7 = vld [vmem:[#allocation2 + $0xd30] sm:$0x3] }
 0x194   :  { %v1712_v1 = vld [vmem:[#allocation3 + $0x438] ss:$2 sm:$0x3f]  ;;  %v1808_v40 = vld [vmem:[#allocation3 + $0x43b] ss:$2 sm:$0x3f]  ;;  %v1472_v2 = vmax.f32 %v1328_v46, %v1184_v37  ;;  %v1473_v3 = vmax.f32 %v1329_v54, %v1185_v58  ;;  %v2001_v4 = vmax.f32 %v1953_v11, %v1902_v39  ;;  %v1474_v12 = vmax.f32 %v1330_v53, %v1186_v7 }
 0x195   :  { %v1904_v60 = vld [vmem:[#allocation3 + $0x43e] ss:$2 sm:$0x3f]  ;;  %v1954_v5 = vmax.f32 %v1712_v1, %v1808_v40  ;;  %v1043_v56 = vld [vmem:[#allocation2 + $0xd10] sm:$0xff]  ;;  %v1044_v59 = vld [vmem:[#allocation2 + $0xd18] sm:$0x3] }
 0x196   :  { %v1042_v62 = vld [vmem:[#allocation2 + $0xd08] sm:$0xff]  ;;  %1616 = vst.msk [vmem:[#allocation3 + $0x450] sm:$0xff] %vm22_vm1, %v1472_v2  ;;  %1617 = vst.msk [vmem:[#allocation3 + $0x458] sm:$0xff] %vm22_vm1, %v1473_v3  ;;  %v1187_v61 = vld [vmem:[#allocation2 + $0xd50] sm:$0xff]  ;;  %2141 = vrot.lane.b32.xlu0 %v2001_v4, %s2813_s0  ;;  %v1332_v43 = vmax.f32 %v3822_v15, %v1043_v56  ;;  %v1333_v17 = vmax.f32 %v899_v55, %v1044_v59  ;;  %v2104_v15 = vpop.permute.xlu1 %2103  ;;  %v2106_v31 = vpop.permute.xlu0 %2105 }
 0x197   :  { %v1331_v34 = vmax.f32 %v3818_v14, %v1042_v62  ;;  %v2002_v33 = vmax.f32 %v1954_v5, %v1904_v60  ;;  %v1188_v16 = vld [vmem:[#allocation2 + $0xd58] sm:$0xff]  ;;  %v1189_v57 = vld [vmem:[#allocation2 + $0xd60] sm:$0x3]  ;;  %1618 = vst.msk [vmem:[#allocation3 + $0x460] sm:$0x3] %vm25_vm2, %v1474_v12 }
 0x198   :  { %v1476_v6 = vmax.f32 %v1332_v43, %v1188_v16  ;;  %v1477_v20 = vmax.f32 %v1333_v17, %v1189_v57  ;;  %2223 = vst.msk [vmem:[#allocation4 + $0xc8] sm:$0x3f] %vm2197_vm5, %v2104_v15  ;;  %2224 = vst.msk [vmem:[#allocation4 + $0xd0] sm:$0x3f] %vm2197_vm5, %v2106_v31  ;;  %v3867_v9 = vld [vmem:[#allocation4 + $0x10] sm:$0x3f] }
 0x199   :  { %v1475_v19 = vmax.f32 %v1331_v34, %v1187_v61  ;;  %2143 = vrot.lane.b32.xlu1 %v2002_v33, %s2813_s0  ;;  %v3869_v32 = vld [vmem:[#allocation4 + $0x8] sm:$0x3f]  ;;  %v3876_v52 = vld [vmem:[#allocation4 + $0x20] sm:$0x3f]  ;;  %v3878_v35 = vld [vmem:[#allocation4 + $0x18] sm:$0x3f] }
 0x19a   :  { %1620 = vst.msk [vmem:[#allocation3 + $0x470] sm:$0xff] %vm22_vm1, %v1476_v6  ;;  %v2108_v13 = vpop.permute.xlu1 %2107  ;;  %v3884_v36 = vld [vmem:[#allocation4 + $0x30] sm:$0x3f]  ;;  %v3886_v38 = vld [vmem:[#allocation4 + $0x28] sm:$0x3f] }
 0x19b   :  { %1619 = vst.msk [vmem:[#allocation3 + $0x468] sm:$0xff] %vm22_vm1, %v1475_v19  ;;  %v3893_v41 = vld [vmem:[#allocation4 + $0x40] sm:$0x3f]  ;;  %v3895_v21 = vld [vmem:[#allocation4 + $0x38] sm:$0x3f] }
 0x19c   :  { %1621 = vst.msk [vmem:[#allocation3 + $0x478] sm:$0x3] %vm25_vm2, %v1477_v20  ;;  %v3902_v0 = vld [vmem:[#allocation4 + $0x50] sm:$0x3f]  ;;  %v3904_v45 = vld [vmem:[#allocation4 + $0x48] sm:$0x3f] }
 0x19d   :  { %v1714_v14 = vld [vmem:[#allocation3 + $0x450] ss:$2 sm:$0x3f]  ;;  %v1810_v22 = vld [vmem:[#allocation3 + $0x453] ss:$2 sm:$0x3f] }
 0x19e   :  { %v1955_v23 = vmax.f32 %v1714_v14, %v1810_v22  ;;  %v1906_v24 = vld [vmem:[#allocation3 + $0x456] ss:$2 sm:$0x3f]  ;;  %2225 = vst.msk [vmem:[#allocation4 + $0xd8] sm:$0x3f] %vm2197_vm5, %v2108_v13 }
 0x19f   :  { %v3911_v46 = vld [vmem:[#allocation4 + $0x60] sm:$0x3f]  ;;  %v3913_v47 = vld [vmem:[#allocation4 + $0x58] sm:$0x3f]  ;;  %v3919_v48 = vld [vmem:[#allocation4 + $0x70] sm:$0x3f] }
 0x1a0   :  { %v2003_v25 = vmax.f32 %v1955_v23, %v1906_v24  ;;  %v3921_v49 = vld [vmem:[#allocation4 + $0x68] sm:$0x3f]  ;;  %v3927_v51 = vld [vmem:[#allocation4 + $0x80] sm:$0x3f]  ;;  %v3930_v54 = vld [vmem:[#allocation4 + $0x78] sm:$0x3f] }
 0x1a1   :  { %v3936_v55 = vld [vmem:[#allocation4 + $0x90] sm:$0x3f]  ;;  %v3939_v39 = vld [vmem:[#allocation4 + $0x88] sm:$0x3f]  ;;  %v3946_v37 = vld [vmem:[#allocation4 + $0xa0] sm:$0x3f] }
 0x1a2   :  { %2145 = vrot.lane.b32.xlu0 %v2003_v25, %s2813_s0  ;;  %v1716_v26 = vld [vmem:[#allocation3 + $0x468] ss:$2 sm:$0x3f]  ;;  %v1812_v27 = vld [vmem:[#allocation3 + $0x46b] ss:$2 sm:$0x3f] }
 0x1a3   :  { %v1908_v28 = vld [vmem:[#allocation3 + $0x46e] ss:$2 sm:$0x3f]  ;;  %v1956_v29 = vmax.f32 %v1716_v26, %v1812_v27  ;;  %v2110_v18 = vpop.permute.xlu0 %2109  ;;  %v3956_v1 = vld [vmem:[#allocation4 + $0xa8] sm:$0x3f] }
 0x1a4   :  { %2226 = vst.msk [vmem:[#allocation4 + $0xe0] sm:$0x3f] %vm2197_vm5, %v2110_v18  ;;  %v3948_v58 = vld [vmem:[#allocation4 + $0x98] sm:$0x3f]  ;;  %v3954_v63 = vld [vmem:[#allocation4 + $0xb0] sm:$0x3f] }
 0x1a5   :  { %v2004_v30 = vmax.f32 %v1956_v29, %v1908_v28  ;;  %v3963_v2 = vld [vmem:[#allocation4 + $0xc0] sm:$0x3f]  ;;  %v3965_v3 = vld [vmem:[#allocation4 + $0xb8] sm:$0x3f]  ;;  %v3971_v60 = vld [vmem:[#allocation4 + $0xd0] sm:$0x3f] }
 0x1a6   :  { %2342 = vrot.lane.b32.xlu0 %v3861_v10, %s2814_s13  ;;  %v2112_v44 = vpop.permute.xlu1 %2111  ;;  %4576 = vst [vmem:[#allocation8_spill] sm:$0xff] %v3971_v60  ;;  %v3974_v5 = vld [vmem:[#allocation4 + $0xc8] sm:$0x3f]  ;;  %v3983_v8 = vld [vmem:[#allocation4 + $0xd8] sm:$0x3f] }
 0x1a7   :  { %2147 = vrot.lane.b32.xlu1 %v2004_v30, %s2813_s0  ;;  %2227 = vst.msk [vmem:[#allocation4 + $0xe8] sm:$0x3f] %vm2197_vm5, %v2112_v44  ;;  %4577 = vst [vmem:[#allocation9_spill] sm:$0xff] %v3983_v8 }
 0x1aa   :  { %2346 = vrot.lane.b32.xlu0 %v3867_v9, %s2814_s13  ;;  %v2114_v42 = vpop.permute.xlu0 %2113 }
 0x1ab   :  { %2344 = vrot.lane.b32.xlu1 %v3869_v32, %s2814_s13  ;;  %2228 = vst.msk [vmem:[#allocation4 + $0xf0] sm:$0x3f] %vm2197_vm5, %v2114_v42  ;;  %v3981_v62 = vld [vmem:[#allocation4 + $0xe0] sm:$0x3f] }
 0x1ae   :  { %2350 = vrot.lane.b32.xlu0 %v3876_v52, %s2814_s13  ;;  %v3991_v56 = vld [vmem:[#allocation4 + $0xe8] sm:$0x3f] }
 0x1af   :  { %2348 = vrot.lane.b32.xlu1 %v3878_v35, %s2814_s13  ;;  %4578 = vst [vmem:[#allocation10_spill] sm:$0xff] %v3991_v56 }
 0x1b2   :  { %2354 = vrot.lane.b32.xlu0 %v3884_v36, %s2814_s13  ;;  %v3989_v12 = vld [vmem:[#allocation4 + $0xf0] sm:$0x3f] }
 0x1b3   :  { %2352 = vrot.lane.b32.xlu1 %v3886_v38, %s2814_s13 }
 0x1b6   :  { %2358 = vrot.lane.b32.xlu0 %v3893_v41, %s2814_s13  ;;  %v2116_v50 = vpop.permute.xlu1 %2115 }
 0x1b7   :  { %2356 = vrot.lane.b32.xlu1 %v3895_v21, %s2814_s13  ;;  %2229 = vst.msk [vmem:[#allocation4 + $0xf8] sm:$0x3f] %vm2197_vm5, %v2116_v50 }
 0x1ba   :  { %2362 = vrot.lane.b32.xlu0 %v3902_v0, %s2814_s13 }
 0x1bb   :  { %2360 = vrot.lane.b32.xlu1 %v3904_v45, %s2814_s13  ;;  %v2118_v53 = vpop.permute.xlu0 %2117 }
 0x1bc   :  { %2230 = vst.msk [vmem:[#allocation4 + $0x100] sm:$0x3f] %vm2197_vm5, %v2118_v53 }
 0x1be   :  { %2366 = vrot.lane.b32.xlu0 %v3911_v46, %s2814_s13  ;;  %v2120_v11 = vpop.permute.xlu1 %2119  ;;  %v3999_v61 = vld [vmem:[#allocation4 + $0xf8] sm:$0x3f] }
 0x1bf   :  { %2364 = vrot.lane.b32.xlu1 %v3913_v47, %s2814_s13  ;;  %2231 = vst.msk [vmem:[#allocation4 + $0x108] sm:$0x3f] %vm2197_vm5, %v2120_v11 }
 0x1c2   :  { %2370 = vrot.lane.b32.xlu0 %v3919_v48, %s2814_s13 }
 0x1c3   :  { %2368 = vrot.lane.b32.xlu1 %v3921_v49, %s2814_s13  ;;  %v3997_v59 = vld [vmem:[#allocation4 + $0x100] sm:$0x3f] }
 0x1c4   :  { %4579 = vst [vmem:[#allocation11_spill] sm:$0xff] %v3997_v59 }
 0x1c6   :  { %2374 = vrot.lane.b32.xlu0 %v3927_v51, %s2814_s13  ;;  %v4008_v57 = vld [vmem:[#allocation4 + $0x108] sm:$0x3f] }
 0x1c7   :  { %2372 = vrot.lane.b32.xlu1 %v3930_v54, %s2814_s13  ;;  %4581 = vst [vmem:[#allocation13_spill] sm:$0xff] %v4008_v57 }
 0x1c9   :  { %v2122_v40 = vpop.permute.xlu0 %2121 }
 0x1ca   :  { %2378 = vrot.lane.b32.xlu0 %v3936_v55, %s2814_s13  ;;  %2232 = vst.msk [vmem:[#allocation4 + $0x110] sm:$0x3f] %vm2197_vm5, %v2122_v40 }
 0x1cb   :  { %2376 = vrot.lane.b32.xlu1 %v3939_v39, %s2814_s13 }
 0x1ce   :  { %2382 = vrot.lane.b32.xlu0 %v3946_v37, %s2814_s13 }
 0x1cf   :  { %2380 = vrot.lane.b32.xlu1 %v3948_v58, %s2814_s13  ;;  %v2124_v4 = vpop.permute.xlu1 %2123 }
 0x1d0   :  { %2233 = vst.msk [vmem:[#allocation4 + $0x118] sm:$0x3f] %vm2197_vm5, %v2124_v4 }
 0x1d1   :  { %v4006_v33 = vld [vmem:[#allocation4 + $0x110] sm:$0x3f] }
 0x1d2   :  { %2386 = vrot.lane.b32.xlu0 %v3954_v63, %s2814_s13  ;;  %v2126_v7 = vpop.permute.xlu0 %2125  ;;  %4580 = vst [vmem:[#allocation12_spill] sm:$0xff] %v4006_v33 }
 0x1d3   :  { %2384 = vrot.lane.b32.xlu1 %v3956_v1, %s2814_s13  ;;  %2234 = vst.msk [vmem:[#allocation4 + $0x120] sm:$0x3f] %vm2197_vm5, %v2126_v7 }
 0x1d6   :  { %2390 = vrot.lane.b32.xlu0 %v3963_v2, %s2814_s13 }
 0x1d7   :  { %2388 = vrot.lane.b32.xlu1 %v3965_v3, %s2814_s13  ;;  %v4018_v19 = vld [vmem:[#allocation4 + $0x118] sm:$0x3f] }
 0x1d8   :  { %4582 = vst [vmem:[#allocation14_spill] sm:$0xff] %v4018_v19 }
 0x1da   :  { %2394 = vrot.lane.b32.xlu0 %v3971_v60, %s2814_s13  ;;  %v4016_v17 = vld [vmem:[#allocation4 + $0x120] sm:$0x3f] }
 0x1db   :  { %2392 = vrot.lane.b32.xlu1 %v3974_v5, %s2814_s13 }
 0x1de   :  { %2398 = vrot.lane.b32.xlu0 %v3981_v62, %s2814_s13  ;;  %v2128_v34 = vpop.permute.xlu1 %2127 }
 0x1df   :  { %2396 = vrot.lane.b32.xlu1 %v3983_v8, %s2814_s13  ;;  %2235 = vst.msk [vmem:[#allocation4 + $0x128] sm:$0x3f] %vm2197_vm5, %v2128_v34 }
 0x1e2   :  { %2402 = vrot.lane.b32.xlu0 %v3989_v12, %s2814_s13 }
 0x1e3   :  { %2400 = vrot.lane.b32.xlu1 %v3991_v56, %s2814_s13  ;;  %v2130_v16 = vpop.permute.xlu0 %2129 }
 0x1e4   :  { %2236 = vst.msk [vmem:[#allocation4 + $0x130] sm:$0x3f] %vm2197_vm5, %v2130_v16 }
 0x1e6   :  { %2406 = vrot.lane.b32.xlu0 %v3997_v59, %s2814_s13  ;;  %v2132_v43 = vpop.permute.xlu1 %2131  ;;  %v4024_v6 = vld [vmem:[#allocation4 + $0x128] sm:$0x3f] }
 0x1e7   :  { %2404 = vrot.lane.b32.xlu1 %v3999_v61, %s2814_s13  ;;  %2237 = vst.msk [vmem:[#allocation4 + $0x138] sm:$0x3f] %vm2197_vm5, %v2132_v43  ;;  %4583 = vst [vmem:[#allocation15_spill] sm:$0xff] %v4024_v6 }
 0x1ea   :  { %2410 = vrot.lane.b32.xlu0 %v4006_v33, %s2814_s13 }
 0x1eb   :  { %2408 = vrot.lane.b32.xlu1 %v4008_v57, %s2814_s13  ;;  %v4026_v20 = vld [vmem:[#allocation4 + $0x130] sm:$0x3f] }
 0x1ec   :  { %4584 = vst [vmem:[#allocation16_spill] sm:$0xff] %v4026_v20 }
 0x1ee   :  { %2414 = vrot.lane.b32.xlu0 %v4016_v17, %s2814_s13  ;;  %v4033_v22 = vld [vmem:[#allocation4 + $0x138] sm:$0x3f] }
 0x1ef   :  { %2412 = vrot.lane.b32.xlu1 %v4018_v19, %s2814_s13  ;;  %4585 = vst [vmem:[#allocation17_spill] sm:$0xff] %v4033_v22 }
 0x1f0   :  { %v2134_v14 = vpop.permute.xlu0 %2133 }
 0x1f1   :  { %2238 = vst.msk [vmem:[#allocation4 + $0x140] sm:$0x3f] %vm2197_vm5, %v2134_v14 }
 0x1f2   :  { %2418 = vrot.lane.b32.xlu0 %v4026_v20, %s2814_s13 }
 0x1f3   :  { %2416 = vrot.lane.b32.xlu1 %v4024_v6, %s2814_s13 }
 0x1f5   :  { %v2136_v23 = vpop.permute.xlu1 %2135 }
 0x1f6   :  { %2239 = vst.msk [vmem:[#allocation4 + $0x148] sm:$0x3f] %vm2197_vm5, %v2136_v23 }
 0x1f7   :  { %2420 = vrot.lane.b32.xlu1 %v4033_v22, %s2814_s13 }
 0x1f8   :  { %v4039_v25 = vld [vmem:[#allocation4 + $0x140] sm:$0x3f] }
 0x1f9   :  { %v2138_v24 = vpop.permute.xlu0 %2137  ;;  %4586 = vst [vmem:[#allocation18_spill] sm:$0xff] %v4039_v25  ;;  %2422 = vrot.lane.b32.xlu0 %v4039_v25, %s2814_s13 }
 0x1fa   :  { %2240 = vst.msk [vmem:[#allocation4 + $0x150] sm:$0x3f] %vm2197_vm5, %v2138_v24 }
 0x1fd   :  { %v4043_v15 = vld [vmem:[#allocation4 + $0x148] sm:$0x3f] }
 0x1fe   :  { %4587 = vst [vmem:[#allocation19_spill] sm:$0xff] %v4043_v15  ;;  %2424 = vrot.lane.b32.xlu1 %v4043_v15, %s2814_s13 }
 0x201   :  { %v4047_v26 = vld [vmem:[#allocation4 + $0x150] sm:$0x3f] }
 0x202   :  { %4588 = vst [vmem:[#allocation20_spill] sm:$0xff] %v4047_v26  ;;  %2426 = vrot.lane.b32.xlu0 %v4047_v26, %s2814_s13 }
 0x205   :  { %v2140_v27 = vpop.permute.xlu1 %2139 }
 0x206   :  { %2241 = vst.msk [vmem:[#allocation4 + $0x158] sm:$0x3f] %vm2197_vm5, %v2140_v27 }
 0x208   :  { %v2142_v28 = vpop.permute.xlu0 %2141 }
 0x209   :  { %2242 = vst.msk [vmem:[#allocation4 + $0x160] sm:$0x3f] %vm2197_vm5, %v2142_v28 }
 0x20b   :  { %v2144_v29 = vpop.permute.xlu1 %2143 }
 0x20c   :  { %2243 = vst.msk [vmem:[#allocation4 + $0x168] sm:$0x3f] %vm2197_vm5, %v2144_v29 }
 0x20d   :  { %v4054_v30 = vld [vmem:[#allocation4 + $0x158] sm:$0x3f] }
 0x20e   :  { %4589 = vst [vmem:[#allocation21_spill] sm:$0xff] %v4054_v30  ;;  %2428 = vrot.lane.b32.xlu1 %v4054_v30, %s2814_s13 }
 0x210   :  { %v4058_v31 = vld [vmem:[#allocation4 + $0x160] sm:$0x3f] }
 0x211   :  { %4590 = vst [vmem:[#allocation22_spill] sm:$0xff] %v4058_v31  ;;  %2430 = vrot.lane.b32.xlu0 %v4058_v31, %s2814_s13 }
 0x213   :  { %v4062_v13 = vld [vmem:[#allocation4 + $0x168] sm:$0x3f] }
 0x214   :  { %4591 = vst [vmem:[#allocation23_spill] sm:$0xff] %v4062_v13  ;;  %v2146_v18 = vpop.permute.xlu0 %2145  ;;  %2432 = vrot.lane.b32.xlu1 %v4062_v13, %s2814_s13 }
 0x215   :  { %2244 = vst.msk [vmem:[#allocation4 + $0x170] sm:$0x3f] %vm2197_vm5, %v2146_v18 }
 0x218   :  { %v4067_v44 = vpop.permute.xlu0 %2342 }
 0x219   :  { %v2148_v42 = vpop.permute.xlu1 %2147 }
 0x21a   :  { %2245 = vst.msk [vmem:[#allocation4 + $0x178] sm:$0x3f] %vm2197_vm5, %v2148_v42 }
 0x21c   :  { %v4070_v50 = vld [vmem:[#allocation4 + $0x170] sm:$0x3f]  ;;  %v4072_v53 = vpop.permute.xlu0 %2346 }
 0x21d   :  { %4592 = vst [vmem:[#allocation24_spill] sm:$0xff] %v4070_v50  ;;  %2434 = vrot.lane.b32.xlu0 %v4070_v50, %s2814_s13  ;;  %v4076_v11 = vpop.permute.xlu1 %2344 }
 0x220   :  { %v4078_v40 = vpop.permute.xlu0 %2350 }
 0x221   :  { %v4080_v4 = vld [vmem:[#allocation4 + $0x178] sm:$0x3f]  ;;  %2534 = vrot.lane.b32.xlu0 %v3861_v10, %s2815_s14  ;;  %v4084_v7 = vpop.permute.xlu1 %2348 }
 0x222   :  { %4593 = vst [vmem:[#allocation25_spill] sm:$0xff] %v4080_v4  ;;  %2436 = vrot.lane.b32.xlu1 %v4080_v4, %s2814_s13 }
 0x224   :  { %v4088_v34 = vpop.permute.xlu0 %2354 }
 0x225   :  { %2538 = vrot.lane.b32.xlu0 %v3867_v9, %s2815_s14  ;;  %v4092_v16 = vpop.permute.xlu1 %2352 }
 0x226   :  { %2536 = vrot.lane.b32.xlu1 %v3869_v32, %s2815_s14 }
 0x228   :  { %v4096_v43 = vpop.permute.xlu0 %2358 }
 0x229   :  { %2542 = vrot.lane.b32.xlu0 %v3876_v52, %s2815_s14  ;;  %v4100_v14 = vpop.permute.xlu1 %2356 }
 0x22a   :  { %2540 = vrot.lane.b32.xlu1 %v3878_v35, %s2815_s14 }
 0x22c   :  { %v4104_v23 = vpop.permute.xlu0 %2362 }
 0x22d   :  { %2546 = vrot.lane.b32.xlu0 %v3884_v36, %s2815_s14  ;;  %v4108_v24 = vpop.permute.xlu1 %2360 }
 0x22e   :  { %2544 = vrot.lane.b32.xlu1 %v3886_v38, %s2815_s14 }
 0x230   :  { %v4112_v27 = vpop.permute.xlu0 %2366 }
 0x231   :  { %4594 = vst [vmem:[#allocation26_spill] sm:$0xff] %v4112_v27  ;;  %2550 = vrot.lane.b32.xlu0 %v3893_v41, %s2815_s14  ;;  %v4116_v28 = vpop.permute.xlu1 %2364 }
 0x232   :  { %4595 = vst [vmem:[#allocation27_spill] sm:$0xff] %v4116_v28  ;;  %2548 = vrot.lane.b32.xlu1 %v3895_v21, %s2815_s14 }
 0x234   :  { %v4120_v29 = vpop.permute.xlu0 %2370 }
 0x235   :  { %4596 = vst [vmem:[#allocation28_spill] sm:$0xff] %v4120_v29  ;;  %2554 = vrot.lane.b32.xlu0 %v3902_v0, %s2815_s14  ;;  %v4124_v18 = vpop.permute.xlu1 %2368 }
 0x236   :  { %4597 = vst [vmem:[#allocation29_spill] sm:$0xff] %v4124_v18  ;;  %2552 = vrot.lane.b32.xlu1 %v3904_v45, %s2815_s14 }
 0x238   :  { %v4128_v42 = vpop.permute.xlu0 %2374 }
 0x239   :  { %4598 = vst [vmem:[#allocation30_spill] sm:$0xff] %v4128_v42  ;;  %2558 = vrot.lane.b32.xlu0 %v3911_v46, %s2815_s14  ;;  %v4132_v27 = vpop.permute.xlu1 %2372 }
 0x23a   :  { %2556 = vrot.lane.b32.xlu1 %v3913_v47, %s2815_s14 }
 0x23c   :  { %v4136_v28 = vpop.permute.xlu0 %2378 }
 0x23d   :  { %4599 = vst [vmem:[#allocation31_spill] sm:$0xff] %v4136_v28  ;;  %2562 = vrot.lane.b32.xlu0 %v3919_v48, %s2815_s14  ;;  %v4140_v29 = vpop.permute.xlu1 %2376 }
 0x23e   :  { %4600 = vst [vmem:[#allocation32_spill] sm:$0xff] %v4140_v29  ;;  %2560 = vrot.lane.b32.xlu1 %v3921_v49, %s2815_s14 }
 0x240   :  { %v4148_v18 = vpop.permute.xlu0 %2382 }
 0x241   :  { %2566 = vrot.lane.b32.xlu0 %v3927_v51, %s2815_s14  ;;  %v4146_v42 = vpop.permute.xlu1 %2380  ;;  %4602 = vst [vmem:[#allocation34_spill] sm:$0xff] %v4148_v18 }
 0x242   :  { %4601 = vst [vmem:[#allocation33_spill] sm:$0xff] %v4146_v42  ;;  %2564 = vrot.lane.b32.xlu1 %v3930_v54, %s2815_s14 }
 0x244   :  { %v4158_v28 = vpop.permute.xlu0 %2386 }
 0x245   :  { %2570 = vrot.lane.b32.xlu0 %v3936_v55, %s2815_s14  ;;  %v4156_v29 = vpop.permute.xlu1 %2384  ;;  %4604 = vst [vmem:[#allocation36_spill] sm:$0xff] %v4158_v28 }
 0x246   :  { %2568 = vrot.lane.b32.xlu1 %v3939_v39, %s2815_s14  ;;  %4603 = vst [vmem:[#allocation35_spill] sm:$0xff] %v4156_v29 }
 0x248   :  { %v4168_v18 = vpop.permute.xlu0 %2390 }
 0x249   :  { %2574 = vrot.lane.b32.xlu0 %v3946_v37, %s2815_s14  ;;  %v4164_v42 = vpop.permute.xlu1 %2388  ;;  %4606 = vst [vmem:[#allocation38_spill] sm:$0xff] %v4168_v18 }
 0x24a   :  { %2572 = vrot.lane.b32.xlu1 %v3948_v58, %s2815_s14  ;;  %4605 = vst [vmem:[#allocation37_spill] sm:$0xff] %v4164_v42 }
 0x24c   :  { %v4178_v28 = vpop.permute.xlu0 %2394 }
 0x24d   :  { %2578 = vrot.lane.b32.xlu0 %v3954_v63, %s2815_s14  ;;  %v4176_v29 = vpop.permute.xlu1 %2392 }
 0x24e   :  { %2576 = vrot.lane.b32.xlu1 %v3956_v1, %s2815_s14  ;;  %4607 = vst [vmem:[#allocation39_spill] sm:$0xff] %v4176_v29 }
 0x250   :  { %v4188_v18 = vpop.permute.xlu0 %2398 }
 0x251   :  { %2582 = vrot.lane.b32.xlu0 %v3963_v2, %s2815_s14  ;;  %v4184_v42 = vpop.permute.xlu1 %2396 }
 0x252   :  { %2580 = vrot.lane.b32.xlu1 %v3965_v3, %s2815_s14  ;;  %4608 = vst [vmem:[#allocation40_spill] sm:$0xff] %v4184_v42 }
 0x255   :  { %2586 = vrot.lane.b32.xlu0 %v3971_v60, %s2815_s14  ;;  %v4196_v29 = vpop.permute.xlu1 %2400  ;;  %v4198_v60 = vpop.permute.xlu0 %2402 }
 0x256   :  { %2584 = vrot.lane.b32.xlu1 %v3974_v5, %s2815_s14 }
 0x259   :  { %2590 = vrot.lane.b32.xlu0 %v3981_v62, %s2815_s14  ;;  %v4204_v42 = vpop.permute.xlu1 %2404 }
 0x25a   :  { %2588 = vrot.lane.b32.xlu1 %v3983_v8, %s2815_s14  ;;  %v4208_v8 = vpop.permute.xlu0 %2406 }
 0x25d   :  { %2594 = vrot.lane.b32.xlu0 %v3989_v12, %s2815_s14 }
 0x25e   :  { %2592 = vrot.lane.b32.xlu1 %v3991_v56, %s2815_s14  ;;  %v4218_v56 = vpop.permute.xlu0 %2410 }
 0x261   :  { %2598 = vrot.lane.b32.xlu0 %v3997_v59, %s2815_s14  ;;  %v4216_v59 = vpop.permute.xlu1 %2408 }
 0x262   :  { %2596 = vrot.lane.b32.xlu1 %v3999_v61, %s2815_s14 }
 0x265   :  { %2602 = vrot.lane.b32.xlu0 %v4006_v33, %s2815_s14  ;;  %v4224_v33 = vpop.permute.xlu1 %2412 }
 0x266   :  { %2600 = vrot.lane.b32.xlu1 %v4008_v57, %s2815_s14  ;;  %v4228_v57 = vpop.permute.xlu0 %2414 }
 0x269   :  { %2606 = vrot.lane.b32.xlu0 %v4016_v17, %s2815_s14 }
 0x26a   :  { %2604 = vrot.lane.b32.xlu1 %v4018_v19, %s2815_s14  ;;  %v4238_v19 = vpop.permute.xlu0 %2418 }
 0x26d   :  { %2610 = vrot.lane.b32.xlu0 %v4026_v20, %s2815_s14  ;;  %v4236_v20 = vpop.permute.xlu1 %2416 }
 0x26e   :  { %2608 = vrot.lane.b32.xlu1 %v4024_v6, %s2815_s14 }
 0x271   :  { %2614 = vrot.lane.b32.xlu0 %v4039_v25, %s2815_s14  ;;  %v4244_v25 = vpop.permute.xlu1 %2420 }
 0x272   :  { %2612 = vrot.lane.b32.xlu1 %v4033_v22, %s2815_s14  ;;  %4609 = vst [vmem:[#allocation41_spill] sm:$0xff] %v4244_v25  ;;  %v4248_v22 = vpop.permute.xlu0 %2422 }
 0x273   :  { %4610 = vst [vmem:[#allocation42_spill] sm:$0xff] %v4248_v22 }
 0x275   :  { %2618 = vrot.lane.b32.xlu0 %v4047_v26, %s2815_s14 }
 0x276   :  { %2616 = vrot.lane.b32.xlu1 %v4043_v15, %s2815_s14  ;;  %v4254_v15 = vpop.permute.xlu1 %2424  ;;  %v4256_v26 = vpop.permute.xlu0 %2426 }
 0x277   :  { %4611 = vst [vmem:[#allocation43_spill] sm:$0xff] %v4254_v15  ;;  %v2488_v15 = vmax.f32 %v3867_v9, %v4072_v53  ;;  %v2489_v9 = vmax.f32 %v3878_v35, %v4084_v7  ;;  %v2491_v35 = vmax.f32 %v3886_v38, %v4092_v16  ;;  %v2493_v38 = vmax.f32 %v3895_v21, %v4100_v14  ;;  %v4616_v14 = vld [vmem:[#allocation26_spill] sm:$0xff] }
 0x278   :  { %v2495_v21 = vmax.f32 %v3904_v45, %v4108_v24 }
 0x279   :  { %2622 = vrot.lane.b32.xlu0 %v4058_v31, %s2815_s14 }
 0x27a   :  { %2620 = vrot.lane.b32.xlu1 %v4054_v30, %s2815_s14 }
 0x27d   :  { %2626 = vrot.lane.b32.xlu0 %v4070_v50, %s2815_s14  ;;  %v2486_v50 = vmax.f32 %v3861_v10, %v4067_v44  ;;  %v2490_v44 = vmax.f32 %v3876_v52, %v4078_v40  ;;  %v2492_v52 = vmax.f32 %v3884_v36, %v4088_v34  ;;  %v2494_v36 = vmax.f32 %v3893_v41, %v4096_v43 }
 0x27e   :  { %2624 = vrot.lane.b32.xlu1 %v4062_v13, %s2815_s14  ;;  %v2496_v41 = vmax.f32 %v3902_v0, %v4104_v23  ;;  %v2498_v0 = vmax.f32 %v3911_v46, %v4616_v14  ;;  %v4617_v23 = vld [vmem:[#allocation27_spill] sm:$0xff]  ;;  %v4625_v14 = vld [vmem:[#allocation36_spill] sm:$0xff] }
 0x27f   :  { %v2497_v45 = vmax.f32 %v3913_v47, %v4617_v23 }
 0x280   :  { %v4258_v31 = vpop.permute.xlu1 %2428 }
 0x281   :  { %4612 = vst [vmem:[#allocation44_spill] sm:$0xff] %v4258_v31 }
 0x282   :  { %2628 = vrot.lane.b32.xlu1 %v4080_v4, %s2815_s14 }
 0x283   :  { %v4260_v30 = vpop.permute.xlu0 %2430 }
 0x284   :  { %4613 = vst [vmem:[#allocation45_spill] sm:$0xff] %v4260_v30 }
 0x286   :  { %v4262_v25 = vpop.permute.xlu1 %2432 }
 0x287   :  { %4614 = vst [vmem:[#allocation46_spill] sm:$0xff] %v4262_v25  ;;  %v2487_v25 = vmax.f32 %v3869_v32, %v4076_v11 }
 0x28f   :  { %v4264_v6 = vpop.permute.xlu0 %2434 }
 0x290   :  { %4615 = vst [vmem:[#allocation47_spill] sm:$0xff] %v4264_v6 }
 0x293   :  { %v2535_v13 = vpop.permute.xlu0 %2534 }
 0x294   :  { %v4268_v22 = vpop.permute.xlu1 %2436  ;;  %v2678_v4 = vmax.f32 %v2486_v50, %v2535_v13 }
 0x296   :  { %2727 = vst.msk [vmem:[%s4557_s1] sm:$0x3f] %vm2726_vm6, %v2678_v4 }
 0x297   :  { %v2539_v6 = vpop.permute.xlu0 %2538 }
 0x298   :  { %v2537_v31 = vpop.permute.xlu1 %2536  ;;  %v2680_v30 = vmax.f32 %v2488_v15, %v2539_v6 }
 0x299   :  { %v2679_v10 = vmax.f32 %v2487_v25, %v2537_v31 }
 0x29a   :  { %2729 = vst.msk [vmem:[%s4557_s1 + $0x10] sm:$0x3f] %vm2726_vm6, %v2680_v30 }
 0x29b   :  { %2728 = vst.msk [vmem:[%s4557_s1 + $0x8] sm:$0x3f] %vm2726_vm6, %v2679_v10  ;;  %v2543_v32 = vpop.permute.xlu0 %2542 }
 0x29c   :  { %v2541_v13 = vpop.permute.xlu1 %2540  ;;  %v2682_v6 = vmax.f32 %v2490_v44, %v2543_v32  ;;  %v4618_v32 = vld [vmem:[#allocation28_spill] sm:$0xff] }
 0x29d   :  { %v2681_v25 = vmax.f32 %v2489_v9, %v2541_v13  ;;  %v2500_v46 = vmax.f32 %v3919_v48, %v4618_v32  ;;  %v4619_v13 = vld [vmem:[#allocation29_spill] sm:$0xff] }
 0x29e   :  { %2731 = vst.msk [vmem:[%s4557_s1 + $0x20] sm:$0x3f] %vm2726_vm6, %v2682_v6  ;;  %v2499_v47 = vmax.f32 %v3921_v49, %v4619_v13  ;;  %v2501_v49 = vmax.f32 %v3930_v54, %v4132_v27 }
 0x29f   :  { %2730 = vst.msk [vmem:[%s4557_s1 + $0x18] sm:$0x3f] %vm2726_vm6, %v2681_v25  ;;  %v2547_v15 = vpop.permute.xlu0 %2546 }
 0x2a0   :  { %v2545_v30 = vpop.permute.xlu1 %2544  ;;  %v2684_v31 = vmax.f32 %v2492_v52, %v2547_v15  ;;  %v4620_v15 = vld [vmem:[#allocation30_spill] sm:$0xff] }
 0x2a1   :  { %v2683_v50 = vmax.f32 %v2491_v35, %v2545_v30  ;;  %v2502_v48 = vmax.f32 %v3927_v51, %v4620_v15 }
 0x2a2   :  { %2733 = vst.msk [vmem:[%s4557_s1 + $0x30] sm:$0x3f] %vm2726_vm6, %v2684_v31 }
 0x2a3   :  { %2732 = vst.msk [vmem:[%s4557_s1 + $0x28] sm:$0x3f] %vm2726_vm6, %v2683_v50  ;;  %v2551_v53 = vpop.permute.xlu0 %2550 }
 0x2a4   :  { %v2549_v11 = vpop.permute.xlu1 %2548  ;;  %v2686_v40 = vmax.f32 %v2494_v36, %v2551_v53  ;;  %v4622_v53 = vld [vmem:[#allocation32_spill] sm:$0xff] }
 0x2a5   :  { %v2685_v4 = vmax.f32 %v2493_v38, %v2549_v11  ;;  %v4621_v38 = vld [vmem:[#allocation31_spill] sm:$0xff]  ;;  %v2503_v54 = vmax.f32 %v3939_v39, %v4622_v53 }
 0x2a6   :  { %2735 = vst.msk [vmem:[%s4557_s1 + $0x40] sm:$0x3f] %vm2726_vm6, %v2686_v40  ;;  %v2504_v51 = vmax.f32 %v3936_v55, %v4621_v38 }
 0x2a7   :  { %2734 = vst.msk [vmem:[%s4557_s1 + $0x38] sm:$0x3f] %vm2726_vm6, %v2685_v4  ;;  %v2555_v7 = vpop.permute.xlu0 %2554 }
 0x2a8   :  { %v2553_v34 = vpop.permute.xlu1 %2552  ;;  %v2688_v16 = vmax.f32 %v2496_v41, %v2555_v7  ;;  %v4623_v41 = vld [vmem:[#allocation34_spill] sm:$0xff] }
 0x2a9   :  { %v2687_v43 = vmax.f32 %v2495_v21, %v2553_v34  ;;  %v2506_v55 = vmax.f32 %v3946_v37, %v4623_v41  ;;  %v4624_v21 = vld [vmem:[#allocation33_spill] sm:$0xff]  ;;  %v2508_v37 = vmax.f32 %v3954_v63, %v4625_v14 }
 0x2aa   :  { %2737 = vst.msk [vmem:[%s4557_s1 + $0x50] sm:$0x3f] %vm2726_vm6, %v2688_v16  ;;  %v2505_v39 = vmax.f32 %v3948_v58, %v4624_v21  ;;  %v4635_v21 = vld [vmem:[#allocation12_spill] sm:$0xff] }
 0x2ab   :  { %2736 = vst.msk [vmem:[%s4557_s1 + $0x48] sm:$0x3f] %vm2726_vm6, %v2687_v43  ;;  %v2559_v24 = vpop.permute.xlu0 %2558 }
 0x2ac   :  { %v2557_v10 = vpop.permute.xlu1 %2556  ;;  %v2690_v44 = vmax.f32 %v2498_v0, %v2559_v24  ;;  %v4626_v0 = vld [vmem:[#allocation35_spill] sm:$0xff] }
 0x2ad   :  { %v2689_v9 = vmax.f32 %v2497_v45, %v2557_v10  ;;  %v2507_v58 = vmax.f32 %v3956_v1, %v4626_v0 }
 0x2ae   :  { %2739 = vst.msk [vmem:[%s4557_s1 + $0x60] sm:$0x3f] %vm2726_vm6, %v2690_v44  ;;  %v4627_v44 = vld [vmem:[#allocation38_spill] sm:$0xff] }
 0x2af   :  { %2738 = vst.msk [vmem:[%s4557_s1 + $0x58] sm:$0x3f] %vm2726_vm6, %v2689_v9  ;;  %v2563_v6 = vpop.permute.xlu0 %2562  ;;  %v2510_v63 = vmax.f32 %v3963_v2, %v4627_v44  ;;  %v4628_v9 = vld [vmem:[#allocation37_spill] sm:$0xff] }
 0x2b0   :  { %v2561_v25 = vpop.permute.xlu1 %2560  ;;  %v2692_v52 = vmax.f32 %v2500_v46, %v2563_v6  ;;  %v2509_v1 = vmax.f32 %v3965_v3, %v4628_v9  ;;  %v4629_v6 = vld [vmem:[#allocation8_spill] sm:$0xff]  ;;  %v4641_v9 = vld [vmem:[#allocation18_spill] sm:$0xff] }
 0x2b1   :  { %v2691_v35 = vmax.f32 %v2499_v47, %v2561_v25  ;;  %v2512_v2 = vmax.f32 %v4629_v6, %v4178_v28  ;;  %v4630_v25 = vld [vmem:[#allocation39_spill] sm:$0xff]  ;;  %v2514_v28 = vmax.f32 %v3981_v62, %v4188_v18  ;;  %v2516_v62 = vmax.f32 %v3989_v12, %v4198_v60  ;;  %v4633_v18 = vld [vmem:[#allocation10_spill] sm:$0xff] }
 0x2b2   :  { %2741 = vst.msk [vmem:[%s4557_s1 + $0x70] sm:$0x3f] %vm2726_vm6, %v2692_v52  ;;  %v2511_v3 = vmax.f32 %v3974_v5, %v4630_v25  ;;  %v2517_v12 = vmax.f32 %v3999_v61, %v4204_v42 }
 0x2b3   :  { %2740 = vst.msk [vmem:[%s4557_s1 + $0x68] sm:$0x3f] %vm2726_vm6, %v2691_v35  ;;  %v2567_v30 = vpop.permute.xlu0 %2566 }
 0x2b4   :  { %v2565_v31 = vpop.permute.xlu1 %2564  ;;  %v2694_v50 = vmax.f32 %v2502_v48, %v2567_v30  ;;  %v4632_v30 = vld [vmem:[#allocation9_spill] sm:$0xff] }
 0x2b5   :  { %v2693_v36 = vmax.f32 %v2501_v49, %v2565_v31  ;;  %v4631_v49 = vld [vmem:[#allocation40_spill] sm:$0xff] }
 0x2b6   :  { %2743 = vst.msk [vmem:[%s4557_s1 + $0x80] sm:$0x3f] %vm2726_vm6, %v2694_v50  ;;  %v2513_v5 = vmax.f32 %v4632_v30, %v4631_v49  ;;  %v4647_v30 = vld [vmem:[#allocation45_spill] sm:$0xff] }
 0x2b7   :  { %2742 = vst.msk [vmem:[%s4557_s1 + $0x78] sm:$0x3f] %vm2726_vm6, %v2693_v36  ;;  %v2571_v27 = vpop.permute.xlu0 %2570 }
 0x2b8   :  { %v2569_v11 = vpop.permute.xlu1 %2568  ;;  %v2696_v40 = vmax.f32 %v2504_v51, %v2571_v27  ;;  %v2515_v51 = vmax.f32 %v4633_v18, %v4196_v29 }
 0x2b9   :  { %v2695_v4 = vmax.f32 %v2503_v54, %v2569_v11 }
 0x2ba   :  { %2745 = vst.msk [vmem:[%s4557_s1 + $0x90] sm:$0x3f] %vm2726_vm6, %v2696_v40  ;;  %v4634_v40 = vld [vmem:[#allocation11_spill] sm:$0xff] }
 0x2bb   :  { %2744 = vst.msk [vmem:[%s4557_s1 + $0x88] sm:$0x3f] %vm2726_vm6, %v2695_v4  ;;  %v2575_v7 = vpop.permute.xlu0 %2574  ;;  %v2518_v60 = vmax.f32 %v4634_v40, %v4208_v8  ;;  %v2520_v8 = vmax.f32 %v4635_v21, %v4218_v56  ;;  %v2522_v56 = vmax.f32 %v4016_v17, %v4228_v57  ;;  %v4639_v17 = vld [vmem:[#allocation15_spill] sm:$0xff] }
 0x2bc   :  { %v2573_v34 = vpop.permute.xlu1 %2572  ;;  %v2698_v16 = vmax.f32 %v2506_v55, %v2575_v7  ;;  %v4654_v40 = vld [vmem:[#allocation23_spill] sm:$0xff] }
 0x2bd   :  { %v2697_v43 = vmax.f32 %v2505_v39, %v2573_v34  ;;  %v4636_v39 = vld [vmem:[#allocation13_spill] sm:$0xff] }
 0x2be   :  { %2747 = vst.msk [vmem:[%s4557_s1 + $0xa0] sm:$0x3f] %vm2726_vm6, %v2698_v16  ;;  %v2519_v61 = vmax.f32 %v4636_v39, %v4216_v59 }
 0x2bf   :  { %2746 = vst.msk [vmem:[%s4557_s1 + $0x98] sm:$0x3f] %vm2726_vm6, %v2697_v43  ;;  %v2579_v23 = vpop.permute.xlu0 %2578  ;;  %v4637_v43 = vld [vmem:[#allocation14_spill] sm:$0xff] }
 0x2c0   :  { %v2577_v45 = vpop.permute.xlu1 %2576  ;;  %v2700_v24 = vmax.f32 %v2508_v37, %v2579_v23  ;;  %v2521_v59 = vmax.f32 %v4637_v43, %v4224_v33  ;;  %v4638_v23 = vld [vmem:[#allocation16_spill] sm:$0xff]  ;;  %v2523_v33 = vmax.f32 %v4639_v17, %v4236_v20 }
 0x2c1   :  { %v2699_v10 = vmax.f32 %v2507_v58, %v2577_v45  ;;  %v2524_v57 = vmax.f32 %v4638_v23, %v4238_v19 }
 0x2c2   :  { %2749 = vst.msk [vmem:[%s4557_s1 + $0xb0] sm:$0x3f] %vm2726_vm6, %v2700_v24 }
 0x2c3   :  { %2748 = vst.msk [vmem:[%s4557_s1 + $0xa8] sm:$0x3f] %vm2726_vm6, %v2699_v10  ;;  %v2583_v32 = vpop.permute.xlu0 %2582 }
 0x2c4   :  { %v2581_v46 = vpop.permute.xlu1 %2580  ;;  %v2702_v13 = vmax.f32 %v2510_v63, %v2583_v32  ;;  %v4640_v63 = vld [vmem:[#allocation42_spill] sm:$0xff]  ;;  %v4643_v32 = vld [vmem:[#allocation17_spill] sm:$0xff] }
 0x2c5   :  { %v2701_v47 = vmax.f32 %v2509_v1, %v2581_v46  ;;  %v2526_v19 = vmax.f32 %v4641_v9, %v4640_v63  ;;  %v4642_v1 = vld [vmem:[#allocation41_spill] sm:$0xff] }
 0x2c6   :  { %2751 = vst.msk [vmem:[%s4557_s1 + $0xc0] sm:$0x3f] %vm2726_vm6, %v2702_v13  ;;  %v2525_v20 = vmax.f32 %v4643_v32, %v4642_v1 }
 0x2c7   :  { %2750 = vst.msk [vmem:[%s4557_s1 + $0xb8] sm:$0x3f] %vm2726_vm6, %v2701_v47  ;;  %v2587_v52 = vpop.permute.xlu0 %2586 }
 0x2c8   :  { %v2585_v35 = vpop.permute.xlu1 %2584  ;;  %v2704_v15 = vmax.f32 %v2512_v2, %v2587_v52  ;;  %v4644_v2 = vld [vmem:[#allocation20_spill] sm:$0xff]  ;;  %v4646_v52 = vld [vmem:[#allocation19_spill] sm:$0xff] }
 0x2c9   :  { %v2703_v48 = vmax.f32 %v2511_v3, %v2585_v35  ;;  %v2528_v25 = vmax.f32 %v4644_v2, %v4256_v26  ;;  %v4645_v3 = vld [vmem:[#allocation43_spill] sm:$0xff] }
 0x2ca   :  { %2753 = vst.msk [vmem:[%s4557_s1 + $0xd0] sm:$0x3f] %vm2726_vm6, %v2704_v15  ;;  %v2527_v35 = vmax.f32 %v4646_v52, %v4645_v3 }
 0x2cb   :  { %2752 = vst.msk [vmem:[%s4557_s1 + $0xc8] sm:$0x3f] %vm2726_vm6, %v2703_v48  ;;  %v2591_v31 = vpop.permute.xlu0 %2590 }
 0x2cc   :  { %v2589_v50 = vpop.permute.xlu1 %2588  ;;  %v2706_v36 = vmax.f32 %v2514_v28, %v2591_v31  ;;  %v4649_v31 = vld [vmem:[#allocation44_spill] sm:$0xff] }
 0x2cd   :  { %v2705_v38 = vmax.f32 %v2513_v5, %v2589_v50  ;;  %v4648_v5 = vld [vmem:[#allocation22_spill] sm:$0xff]  ;;  %v4650_v50 = vld [vmem:[#allocation21_spill] sm:$0xff] }
 0x2ce   :  { %2755 = vst.msk [vmem:[%s4557_s1 + $0xe0] sm:$0x3f] %vm2726_vm6, %v2706_v36  ;;  %v2530_v26 = vmax.f32 %v4648_v5, %v4647_v30  ;;  %v2529_v36 = vmax.f32 %v4650_v50, %v4649_v31 }
 0x2cf   :  { %2754 = vst.msk [vmem:[%s4557_s1 + $0xd8] sm:$0x3f] %vm2726_vm6, %v2705_v38  ;;  %v2595_v53 = vpop.permute.xlu0 %2594 }
 0x2d0   :  { %v2593_v54 = vpop.permute.xlu1 %2592  ;;  %v2708_v27 = vmax.f32 %v2516_v62, %v2595_v53  ;;  %v4651_v53 = vld [vmem:[#allocation47_spill] sm:$0xff] }
 0x2d1   :  { %v2707_v11 = vmax.f32 %v2515_v51, %v2593_v54  ;;  %v4652_v54 = vld [vmem:[#allocation24_spill] sm:$0xff] }
 0x2d2   :  { %2757 = vst.msk [vmem:[%s4557_s1 + $0xf0] sm:$0x3f] %vm2726_vm6, %v2708_v27  ;;  %v2532_v27 = vmax.f32 %v4652_v54, %v4651_v53 }
 0x2d3   :  { %2756 = vst.msk [vmem:[%s4557_s1 + $0xe8] sm:$0x3f] %vm2726_vm6, %v2707_v11  ;;  %v2599_v29 = vpop.permute.xlu0 %2598  ;;  %v4653_v11 = vld [vmem:[#allocation46_spill] sm:$0xff] }
 0x2d4   :  { %v2597_v4 = vpop.permute.xlu1 %2596  ;;  %v2710_v41 = vmax.f32 %v2518_v60, %v2599_v29  ;;  %v2531_v60 = vmax.f32 %v4654_v40, %v4653_v11 }
 0x2d5   :  { %v2709_v55 = vmax.f32 %v2517_v12, %v2597_v4 }
 0x2d6   :  { %2759 = vst.msk [vmem:[%s4557_s1 + $0x100] sm:$0x3f] %vm2726_vm6, %v2710_v41 }
 0x2d7   :  { %2758 = vst.msk [vmem:[%s4557_s1 + $0xf8] sm:$0x3f] %vm2726_vm6, %v2709_v55  ;;  %v2603_v42 = vpop.permute.xlu0 %2602  ;;  %v4655_v55 = vld [vmem:[#allocation25_spill] sm:$0xff] }
 0x2d8   :  { %v2601_v7 = vpop.permute.xlu1 %2600  ;;  %v2712_v34 = vmax.f32 %v2520_v8, %v2603_v42  ;;  %v2533_v21 = vmax.f32 %v4655_v55, %v4268_v22 }
 0x2d9   :  { %v2711_v16 = vmax.f32 %v2519_v61, %v2601_v7 }
 0x2da   :  { %2761 = vst.msk [vmem:[%s4557_s1 + $0x110] sm:$0x3f] %vm2726_vm6, %v2712_v34 }
 0x2db   :  { %2760 = vst.msk [vmem:[%s4557_s1 + $0x108] sm:$0x3f] %vm2726_vm6, %v2711_v16  ;;  %v2607_v14 = vpop.permute.xlu0 %2606 }
 0x2dc   :  { %v2605_v37 = vpop.permute.xlu1 %2604  ;;  %v2714_v0 = vmax.f32 %v2522_v56, %v2607_v14 }
 0x2dd   :  { %v2713_v58 = vmax.f32 %v2521_v59, %v2605_v37 }
 0x2de   :  { %2763 = vst.msk [vmem:[%s4557_s1 + $0x120] sm:$0x3f] %vm2726_vm6, %v2714_v0 }
 0x2df   :  { %2762 = vst.msk [vmem:[%s4557_s1 + $0x118] sm:$0x3f] %vm2726_vm6, %v2713_v58  ;;  %v2611_v45 = vpop.permute.xlu0 %2610 }
 0x2e0   :  { %v2609_v24 = vpop.permute.xlu1 %2608  ;;  %v2716_v10 = vmax.f32 %v2524_v57, %v2611_v45 }
 0x2e1   :  { %v2715_v44 = vmax.f32 %v2523_v33, %v2609_v24 }
 0x2e2   :  { %2765 = vst.msk [vmem:[%s4557_s1 + $0x130] sm:$0x3f] %vm2726_vm6, %v2716_v10 }
 0x2e3   :  { %2764 = vst.msk [vmem:[%s4557_s1 + $0x128] sm:$0x3f] %vm2726_vm6, %v2715_v44  ;;  %v2615_v46 = vpop.permute.xlu0 %2614 }
 0x2e4   :  { %v2613_v13 = vpop.permute.xlu1 %2612  ;;  %v2718_v47 = vmax.f32 %v2526_v19, %v2615_v46 }
 0x2e5   :  { %v2717_v6 = vmax.f32 %v2525_v20, %v2613_v13 }
 0x2e6   :  { %2767 = vst.msk [vmem:[%s4557_s1 + $0x140] sm:$0x3f] %vm2726_vm6, %v2718_v47 }
 0x2e7   :  { %2766 = vst.msk [vmem:[%s4557_s1 + $0x138] sm:$0x3f] %vm2726_vm6, %v2717_v6  ;;  %v2619_v15 = vpop.permute.xlu0 %2618 }
 0x2e8   :  { %v2617_v48 = vpop.permute.xlu1 %2616  ;;  %v2720_v28 = vmax.f32 %v2528_v25, %v2619_v15 }
 0x2e9   :  { %v2719_v49 = vmax.f32 %v2527_v35, %v2617_v48 }
 0x2ea   :  { %2769 = vst.msk [vmem:[%s4557_s1 + $0x150] sm:$0x3f] %vm2726_vm6, %v2720_v28 }
 0x2eb   :  { %2768 = vst.msk [vmem:[%s4557_s1 + $0x148] sm:$0x3f] %vm2726_vm6, %v2719_v49  ;;  %v2623_v38 = vpop.permute.xlu0 %2622 }
 0x2ec   :  { %v2621_v62 = vpop.permute.xlu1 %2620  ;;  %v2722_v18 = vmax.f32 %v2530_v26, %v2623_v38 }
 0x2ed   :  { %v2721_v51 = vmax.f32 %v2529_v36, %v2621_v62 }
 0x2ee   :  { %2771 = vst.msk [vmem:[%s4557_s1 + $0x160] sm:$0x3f] %vm2726_vm6, %v2722_v18 }
 0x2ef   :  { %2770 = vst.msk [vmem:[%s4557_s1 + $0x158] sm:$0x3f] %vm2726_vm6, %v2721_v51  ;;  %v2627_v12 = vpop.permute.xlu0 %2626 }
 0x2f0   :  { %v2625_v29 = vpop.permute.xlu1 %2624  ;;  %v2724_v4 = vmax.f32 %v2532_v27, %v2627_v12 }
 0x2f1   :  { %v2723_v41 = vmax.f32 %v2531_v60, %v2625_v29 }
 0x2f2   :  { %2773 = vst.msk [vmem:[%s4557_s1 + $0x170] sm:$0x3f] %vm2726_vm6, %v2724_v4 }
 0x2f3   :  { %2772 = vst.msk [vmem:[%s4557_s1 + $0x168] sm:$0x3f] %vm2726_vm6, %v2723_v41 }
 0x2f4   :  { %v2629_v8 = vpop.permute.xlu1 %2628 }
 0x2f5   :  { %v2725_v39 = vmax.f32 %v2533_v21, %v2629_v8 }
 0x2f7   :  { %2774 = vst.msk [vmem:[%s4557_s1 + $0x178] sm:$0x3f] %vm2726_vm6, %v2725_v39 }
 0x2f8   :  { %2779 = vsyncpa [#allocation6], 1 }

</bundles_post_ra>
